<compile_context>
chip_gen: v5e
topology: v5e:2x2
jax: 0.10.0
libtpu: 0.0.40
codegen_flags: <defaults>
</compile_context>

<pallas_src>
from functools import partial

import numpy as np
import jax
import jax.numpy as jnp
from jax.experimental import pallas as pl
from jax.experimental.pallas import tpu as pltpu

H1_RAW, H2_RAW = 400, 300     # PyTorch hidden sizes
H1, H2 = 512, 384             # zero-padded to multiples of 128
_LANE = 128                   # minimum lane-dense tile width
_MAX_TILE_B = 2048            # batch-tile cap (sweepable 1024-4096)
_VMEM_LIMIT = 48 * 1024 * 1024  # > 16/32 MiB default scoped, < v7x 64 MiB phys


def _round_up(x, m):
    return ((x + m - 1) // m) * m


def _choose_tiling(batch, max_tile_b):
    """Pick (n_tiles, tile_b): minimal 128-padding, large tiles, >=2 tiles for
    decently sized batches so v7x's two TensorCores both get work."""
    b128 = _round_up(max(batch, 1), _LANE)
    n_tiles = pl.cdiv(b128, max_tile_b)
    if n_tiles == 1 and b128 >= 4 * _LANE:
        # one extra ~0.35us step on 1-TC chips, up to 2x on dual-TC v7x
        n_tiles = 2
    tile_b = _round_up(pl.cdiv(b128, n_tiles), _LANE)
    n_tiles = pl.cdiv(b128, tile_b)
    return n_tiles, tile_b


def _critic_kernel(sa_ref,                       # (F+A, TB) bf16  streamed
                   w_in_ref, b1_ref,             # (H1+H2, F+A) bf16, (H1,1) f32
                   w2x_ref, b2_ref,              # (H2, H1) bf16, (H2,1) f32
                   w3_ref, b3_ref,               # (H2, 1) f32, (1,1) f32
                   out_ref):                     # (1, TB) f32
    # One fused tiny-K MXU pass: [[W1,0],[0,W2a]] @ [s; a]   -> (H1+H2, TB)
    pre = jnp.dot(w_in_ref[...], sa_ref[...],
                  preferred_element_type=jnp.float32)

    # h1 = relu(W1 @ s + b1); bf16 for the MXU-bound fc2 matmul.   (H1, TB)
    h1 = jnp.maximum(pre[:H1, :] + b1_ref[...], 0.0).astype(jnp.bfloat16)

    # h2 = relu(fc2(cat(h1, a))) = relu(W2x @ h1 + W2a @ a + b2)   (H2, TB)
    h2 = (jnp.dot(w2x_ref[...], h1, preferred_element_type=jnp.float32)
          + pre[H1:, :] + b2_ref[...])
    h2 = jnp.maximum(h2, 0.0)

    # fc3 (300 -> 1): VPU multiply + sublane reduction -> lane-dense (1, TB).
    out_ref[...] = jnp.sum(h2 * w3_ref[...], axis=0, keepdims=True) + b3_ref[...]


def prepare_critic_params(p):
    """One-time weight prep (pad/cast/fold); keep OFF the per-step path."""
    bf16, f32 = jnp.bfloat16, jnp.float32
    num_feature = p["fc1_w"].shape[1]
    num_action = p["fc2_w"].shape[1] - H1_RAW
    fa = num_feature + num_action

    # Block-diagonal input weight [[W1, 0], [0, W2a]] : (H1+H2, F+A)
    w_in = jnp.zeros((H1 + H2, fa), bf16)
    w_in = w_in.at[:H1_RAW, :num_feature].set(p["fc1_w"].astype(bf16))
    w_in = w_in.at[H1:H1 + H2_RAW, num_feature:].set(
        p["fc2_w"][:, H1_RAW:].astype(bf16))

    b1 = jnp.zeros((H1, 1), f32).at[:H1_RAW, 0].set(p["fc1_b"].astype(f32))
    w2x = jnp.zeros((H2, H1), bf16).at[:H2_RAW, :H1_RAW].set(
        p["fc2_w"][:, :H1_RAW].astype(bf16))
    b2 = jnp.zeros((H2, 1), f32).at[:H2_RAW, 0].set(p["fc2_b"].astype(f32))
    w3 = jnp.zeros((H2, 1), f32).at[:H2_RAW, :].set(p["fc3_w"].T.astype(f32))
    b3 = p["fc3_b"].reshape(1, 1).astype(f32)
    return dict(w_in=w_in, b1=b1, w2x=w2x, b2=b2, w3=w3, b3=b3)


@partial(jax.jit, static_argnames=("max_tile_b",))
def critic_forward(states, actions, prepped, *, max_tile_b=_MAX_TILE_B):
    """states: (B, F) f32, actions: (B, A) f32 -> (B, 1) f32."""
    bf16 = jnp.bfloat16
    B, F = states.shape
    A = actions.shape[1]
    FA = F + A

    n_tiles, tile_b = _choose_tiling(B, max_tile_b)
    b_pad = n_tiles * tile_b

    # Single fused relayout (cast -> concat -> transpose -> pad) under this jit.
    sa = jnp.concatenate([states.astype(bf16), actions.astype(bf16)], axis=1).T
    sa = jax.lax.pad(sa, jnp.array(0, dtype=bf16),
                     ((0, 0, 0), (0, b_pad - B, 0)))            # (F+A, b_pad)

    flops = 2 * b_pad * ((H1 + H2) * FA + H2 * H1 + H2)
    bytes_accessed = (2 * ((H1 + H2) * FA + H2 * H1)   # bf16 weights (read once)
                      + 4 * (H1 + H2 + H2 + 1)         # f32 biases + w3
                      + 2 * b_pad * FA                 # streamed bf16 input
                      + 4 * b_pad)                     # f32 output

    resident = lambda shape: pl.BlockSpec(shape, lambda i: (0, 0))

    out = pl.pallas_call(
        _critic_kernel,
        out_shape=jax.ShapeDtypeStruct((1, b_pad), jnp.float32),
        grid=(n_tiles,),
        in_specs=[
            pl.BlockSpec((FA, tile_b), lambda i: (0, i)),   # streamed [s; a]
            resident((H1 + H2, FA)), resident((H1, 1)),
            resident((H2, H1)), resident((H2, 1)),
            resident((H2, 1)), resident((1, 1)),
        ],
        out_specs=pl.BlockSpec((1, tile_b), lambda i: (0, i)),
        compiler_params=pltpu.CompilerParams(
            dimension_semantics=("parallel",),
            vmem_limit_bytes=_VMEM_LIMIT),
        cost_estimate=pl.CostEstimate(flops=flops, transcendentals=0,
                                      bytes_accessed=bytes_accessed),
    )(sa, prepped["w_in"], prepped["b1"], prepped["w2x"], prepped["b2"],
      prepped["w3"], prepped["b3"])

    return out[0, :B, None]                                   # (B, 1) f32


def init_critic_params(key, num_feature, num_action):
    """Deterministic init mirroring the module's __init__ shapes/ranges."""
    ks = jax.random.split(key, 6)

    def uniform(k, shape, lim):
        return jax.random.uniform(k, shape, jnp.float32, -lim, lim)

    v1 = 1.0 / np.sqrt(num_feature)
    fc1_w = uniform(ks[0], (400, num_feature), v1)
    fc1_b = uniform(ks[1], (400,), v1)
    v2 = 1.0 / np.sqrt(400 + num_action)
    fc2_w = uniform(ks[2], (300, 400 + num_action), v2)
    fc2_b = uniform(ks[3], (300,), v2)
    fc3_w = uniform(ks[4], (1, 300), 0.003)
    fc3_b = uniform(ks[5], (1,), 0.003)
    return dict(fc1_w=fc1_w, fc1_b=fc1_b,
                fc2_w=fc2_w, fc2_b=fc2_b,
                fc3_w=fc3_w, fc3_b=fc3_b)


def critic_reference(states, actions, p):
    """Pure-JAX f32 reference of the PyTorch forward (correctness check)."""
    h1 = jax.nn.relu(states @ p["fc1_w"].T + p["fc1_b"])
    x = jnp.concatenate([h1, actions], axis=1)
    h2 = jax.nn.relu(x @ p["fc2_w"].T + p["fc2_b"])
    return h2 @ p["fc3_w"].T + p["fc3_b"]


if __name__ == "__main__":
    key = jax.random.PRNGKey(0)
    k_params, k_states, k_actions = jax.random.split(key, 3)

    batch = 2
    num_feature = 8
    num_action = 4

    params = init_critic_params(k_params, num_feature, num_action)
    prepped = prepare_critic_params(params)     # one-time, off the step path

    states = jax.random.normal(k_states, (batch, num_feature), jnp.float32)
    actions = jax.random.normal(k_actions, (batch, num_action), jnp.float32)

    out = critic_forward(states, actions, prepped)
    out = jax.block_until_ready(out)

    ref = critic_reference(states, actions, params)
    # bf16 weights/activations with f32 accumulation -> looser tolerance.
    np.testing.assert_allclose(np.asarray(out), np.asarray(ref),
                               rtol=5e-2, atol=1e-2)
    print("KERNEL_OK")
</pallas_src>

<mosaic_0001>
module attributes {stable_mosaic.version = 11 : i64} {
  func.func @_critic_kernel(%arg0: i32, %arg1: memref<12x128xbf16, #tpu.memory_space<vmem>>, %arg2: memref<896x12xbf16, #tpu.memory_space<vmem>>, %arg3: memref<512x1xf32, #tpu.memory_space<vmem>>, %arg4: memref<384x512xbf16, #tpu.memory_space<vmem>>, %arg5: memref<384x1xf32, #tpu.memory_space<vmem>>, %arg6: memref<384x1xf32, #tpu.memory_space<vmem>>, %arg7: memref<1x1xf32, #tpu.memory_space<vmem>>, %arg8: memref<1x128xf32, #tpu.memory_space<vmem>>) attributes {dimension_semantics = [#tpu.dimension_semantics<parallel>], iteration_bounds = array<i64: 1>, scalar_prefetch = 0 : i64, scratch_operands = 0 : i64, tpu.core_type = #tpu.core_type<tc>, window_params = [{transform_indices = @transform_0, window_bounds = array<i64: 12, 128>}, {pipeline_mode = #tpu.pipeline_mode<synchronous>, transform_indices = @transform_1, window_bounds = array<i64: 896, 12>}, {pipeline_mode = #tpu.pipeline_mode<synchronous>, transform_indices = @transform_2, window_bounds = array<i64: 512, 1>}, {pipeline_mode = #tpu.pipeline_mode<synchronous>, transform_indices = @transform_3, window_bounds = array<i64: 384, 512>}, {pipeline_mode = #tpu.pipeline_mode<synchronous>, transform_indices = @transform_4, window_bounds = array<i64: 384, 1>}, {pipeline_mode = #tpu.pipeline_mode<synchronous>, transform_indices = @transform_5, window_bounds = array<i64: 384, 1>}, {pipeline_mode = #tpu.pipeline_mode<synchronous>, transform_indices = @transform_6, window_bounds = array<i64: 1, 1>}, {transform_indices = @transform_7, window_bounds = array<i64: 1, 128>}]} {
    %c0 = arith.constant 0 : index
    %c0_0 = arith.constant 0 : index
    %0 = vector.load %arg2[%c0, %c0_0] : memref<896x12xbf16, #tpu.memory_space<vmem>>, vector<896x12xbf16>
    %c0_1 = arith.constant 0 : index
    %c0_2 = arith.constant 0 : index
    %1 = vector.load %arg1[%c0_1, %c0_2] : memref<12x128xbf16, #tpu.memory_space<vmem>>, vector<12x128xbf16>
    %cst = arith.constant dense<0.000000e+00> : vector<896x128xf32>
    %2 = tpu.matmul %0, %1, %cst {dimension_numbers = #tpu.dot_dimension_numbers<[1], [0], [0], [1], [0, 0, 1, 1], [], []>} : vector<896x12xbf16>, vector<12x128xbf16>, vector<896x128xf32> -> vector<896x128xf32>
    %3 = vector.extract_strided_slice %2 {offsets = [0, 0], sizes = [512, 128], strides = [1, 1]} : vector<896x128xf32> to vector<512x128xf32>
    %c0_3 = arith.constant 0 : index
    %c0_4 = arith.constant 0 : index
    %4 = vector.load %arg3[%c0_3, %c0_4] : memref<512x1xf32, #tpu.memory_space<vmem>>, vector<512x1xf32>
    %5 = vector.broadcast %4 : vector<512x1xf32> to vector<512x128xf32>
    %6 = arith.addf %3, %5 : vector<512x128xf32>
    %cst_5 = arith.constant 0.000000e+00 : f32
    %7 = vector.broadcast %cst_5 : f32 to vector<512x128xf32>
    %8 = arith.maximumf %6, %7 : vector<512x128xf32>
    %9 = arith.truncf %8 : vector<512x128xf32> to vector<512x128xbf16>
    %c0_6 = arith.constant 0 : index
    %c0_7 = arith.constant 0 : index
    %10 = vector.load %arg4[%c0_6, %c0_7] : memref<384x512xbf16, #tpu.memory_space<vmem>>, vector<384x512xbf16>
    %cst_8 = arith.constant dense<0.000000e+00> : vector<384x128xf32>
    %11 = tpu.matmul %10, %9, %cst_8 {dimension_numbers = #tpu.dot_dimension_numbers<[1], [0], [0], [1], [0, 0, 1, 1], [], []>} : vector<384x512xbf16>, vector<512x128xbf16>, vector<384x128xf32> -> vector<384x128xf32>
    %12 = vector.extract_strided_slice %2 {offsets = [512, 0], sizes = [384, 128], strides = [1, 1]} : vector<896x128xf32> to vector<384x128xf32>
    %13 = arith.addf %11, %12 : vector<384x128xf32>
    %c0_9 = arith.constant 0 : index
    %c0_10 = arith.constant 0 : index
    %14 = vector.load %arg5[%c0_9, %c0_10] : memref<384x1xf32, #tpu.memory_space<vmem>>, vector<384x1xf32>
    %15 = vector.broadcast %14 : vector<384x1xf32> to vector<384x128xf32>
    %16 = arith.addf %13, %15 : vector<384x128xf32>
    %cst_11 = arith.constant 0.000000e+00 : f32
    %17 = vector.broadcast %cst_11 : f32 to vector<384x128xf32>
    %18 = arith.maximumf %16, %17 : vector<384x128xf32>
    %c0_12 = arith.constant 0 : index
    %c0_13 = arith.constant 0 : index
    %19 = vector.load %arg6[%c0_12, %c0_13] : memref<384x1xf32, #tpu.memory_space<vmem>>, vector<384x1xf32>
    %20 = vector.broadcast %19 : vector<384x1xf32> to vector<384x128xf32>
    %21 = arith.mulf %18, %20 : vector<384x128xf32>
    %cst_14 = arith.constant dense<0.000000e+00> : vector<128xf32>
    %22 = vector.multi_reduction <add>, %21, %cst_14 [0] : vector<384x128xf32> to vector<128xf32>
    %23 = vector.shape_cast %22 : vector<128xf32> to vector<1x128xf32>
    %c0_15 = arith.constant 0 : index
    %c0_16 = arith.constant 0 : index
    %24 = vector.load %arg7[%c0_15, %c0_16] : memref<1x1xf32, #tpu.memory_space<vmem>>, vector<1x1xf32>
    %25 = vector.broadcast %24 : vector<1x1xf32> to vector<1x128xf32>
    %26 = arith.addf %23, %25 : vector<1x128xf32>
    %c0_17 = arith.constant 0 : index
    %c0_18 = arith.constant 0 : index
    %27 = vector.load %arg8[%c0_17, %c0_18] : memref<1x128xf32, #tpu.memory_space<vmem>>, vector<1x128xf32>
    tpu.vector_store %arg8[%c0_17, %c0_18], %26 {strides = array<i32>} : memref<1x128xf32, #tpu.memory_space<vmem>>, vector<1x128xf32>,
    return
  }
  func.func @transform_0(%arg0: i32) -> (i32, i32) {
    %c0_i32 = arith.constant 0 : i32
    %c0_i32_0 = arith.constant 0 : i32
    return %c0_i32, %arg0 : i32, i32
  }
  func.func @transform_1(%arg0: i32) -> (i32, i32) {
    %c0_i32 = arith.constant 0 : i32
    %c0_i32_0 = arith.constant 0 : i32
    %c0_i32_1 = arith.constant 0 : i32
    return %c0_i32, %c0_i32_0 : i32, i32
  }
  func.func @transform_2(%arg0: i32) -> (i32, i32) {
    %c0_i32 = arith.constant 0 : i32
    %c0_i32_0 = arith.constant 0 : i32
    %c0_i32_1 = arith.constant 0 : i32
    return %c0_i32, %c0_i32_0 : i32, i32
  }
  func.func @transform_3(%arg0: i32) -> (i32, i32) {
    %c0_i32 = arith.constant 0 : i32
    %c0_i32_0 = arith.constant 0 : i32
    %c0_i32_1 = arith.constant 0 : i32
    return %c0_i32, %c0_i32_0 : i32, i32
  }
  func.func @transform_4(%arg0: i32) -> (i32, i32) {
    %c0_i32 = arith.constant 0 : i32
    %c0_i32_0 = arith.constant 0 : i32
    %c0_i32_1 = arith.constant 0 : i32
    return %c0_i32, %c0_i32_0 : i32, i32
  }
  func.func @transform_5(%arg0: i32) -> (i32, i32) {
    %c0_i32 = arith.constant 0 : i32
    %c0_i32_0 = arith.constant 0 : i32
    %c0_i32_1 = arith.constant 0 : i32
    return %c0_i32, %c0_i32_0 : i32, i32
  }
  func.func @transform_6(%arg0: i32) -> (i32, i32) {
    %c0_i32 = arith.constant 0 : i32
    %c0_i32_0 = arith.constant 0 : i32
    %c0_i32_1 = arith.constant 0 : i32
    return %c0_i32, %c0_i32_0 : i32, i32
  }
  func.func @transform_7(%arg0: i32) -> (i32, i32) {
    %c0_i32 = arith.constant 0 : i32
    %c0_i32_0 = arith.constant 0 : i32
    return %c0_i32, %arg0 : i32, i32
  }
}

</mosaic_0001>

<bundles_post_ra>
// kernel: critic_forward.1
= control target key start
LH: loop header
LB: loop body
LE: loop exit
PB: predicated region body
PF: predicated region fallthrough
CT: control target
= control target key end

     0   :  { %v4155_v0 = vmov 0   ;;  %vm597_vm0 = vcmask 1045504   ;;  %vm428_vm1 = vcmask 97280   ;;  %s6207_s2 = inlined_call_operand.vmem [shape: f32[512,1], index: 2, kind: input, shape index: {}]   ;;  %s6208_s0 = inlined_call_operand.vmem [shape: bf16[12,128], index: 0, kind: input, shape index: {}]   ;;  %s6209_s1 = inlined_call_operand.vmem [shape: bf16[896,12], index: 1, kind: input, shape index: {}]   ;;  %s6210_s4 = inlined_call_operand.vmem [shape: f32[384,1], index: 4, kind: input, shape index: {}]   ;;  %s6211_s3 = inlined_call_operand.vmem [shape: bf16[384,512], index: 3, kind: input, shape index: {}]   ;;  %s6212_s5 = inlined_call_operand.vmem [shape: f32[384,1], index: 5, kind: input, shape index: {}]   ;;  %s6213_s6 = inlined_call_operand.<no memory space> [shape: f32[1,1], index: 6, kind: input, shape index: {}]   ;;  %s6214_s7 = inlined_call_operand.vmem [shape: f32[1,128], index: 7, kind: output, shape index: {}]  }
   0x1   :  { %4154 = vset.pattern.permute.xlu2 %v4155_v0  ;;  %4153 = vset.pattern.permute.xlu1 %v4155_v0  ;;  %v894_v1 = vld [vmem:[%s6207_s2 + $0x20] sm:$0xff]  ;;  %v892_v2 = vld [vmem:[%s6207_s2 + $0x10] sm:$0xff]  ;;  %v895_v9 = vld [vmem:[%s6207_s2 + $0x28] sm:$0xff] }
   0x2   :  { %v890_v3 = vld [vmem:[%s6207_s2] sm:$0xff]  ;;  %4152 = vset.pattern.permute.xlu0 %v4155_v0  ;;  %976 = vperm.xlu2 %4154, %v894_v1   ;;  %v893_v10 = vld [vmem:[%s6207_s2 + $0x18] sm:$0xff]  ;;  %v891_v11 = vld [vmem:[%s6207_s2 + $0x8] sm:$0xff] }
   0x3   :  { %v3538_v4 = vld [vmem:[%s6208_s0] sm:$0xf]  ;;  %v4036_v5 = vld [vmem:[%s6208_s0] sm:$0x30]  ;;  %966 = vperm.xlu1 %4153, %v892_v2   ;;  %956 = vperm.xlu0 %4152, %v890_v3   ;;  %v897_v13 = vld [vmem:[%s6207_s2 + $0x38] sm:$0xff] }
   0x4   :  { %v3539_v6 = vor.u32 %v4036_v5, %v3538_v4  ;;  %v3980_v8 = vld [vmem:[%s6209_s1] sm:$0xff]  ;;  %v896_v14 = vld [vmem:[%s6207_s2 + $0x30] sm:$0xff]  ;;  %v3981_v15 = vld [vmem:[%s6209_s1 + $0x8] sm:$0xff] }
   0x5   :  { %v898_v12 = vld [vmem:[%s6207_s2 + $0x40] sm:$0xff]  ;;  %v901_v16 = vld [vmem:[%s6207_s2 + $0x58] sm:$0xff]  ;;  %v900_v17 = vld [vmem:[%s6207_s2 + $0x50] sm:$0xff] }
   0x6   :  { %v599_v7 = vsel %vm597_vm0, %v3539_v6, 0  ;;  %v899_v18 = vld [vmem:[%s6207_s2 + $0x48] sm:$0xff]  ;;  %v904_v19 = vld [vmem:[%s6207_s2 + $0x70] sm:$0xff]  ;;  %v902_v21 = vld [vmem:[%s6207_s2 + $0x60] sm:$0xff] }
   0x7   :  { %608 = vmatpush.bf16.msra.mxu0 %v599_v7  ;;  %4133 = vmatpush.bf16.msra.mxu2 %v599_v7  ;;  %v903_v20 = vld [vmem:[%s6207_s2 + $0x68] sm:$0xff]  ;;  %v3982_v22 = vld [vmem:[%s6209_s1 + $0x10] sm:$0xff]  ;;  %v906_v24 = vld [vmem:[%s6207_s2 + $0x80] sm:$0xff] }
   0x8   :  { %4134 = vmatpush.bf16.msra.mxu3 %v599_v7  ;;  %v907_v23 = vld [vmem:[%s6207_s2 + $0x88] sm:$0xff]  ;;  %v905_v25 = vld [vmem:[%s6207_s2 + $0x78] sm:$0xff]  ;;  %v910_v26 = vld [vmem:[%s6207_s2 + $0xa0] sm:$0xff] }
   0x9   :  { %v909_v27 = vld [vmem:[%s6207_s2 + $0x98] sm:$0xff]  ;;  %v908_v28 = vld [vmem:[%s6207_s2 + $0x90] sm:$0xff]  ;;  %v911_v32 = vld [vmem:[%s6207_s2 + $0xa8] sm:$0xff] }
   0xa   :  { %3540 = vmatmul.msk.bf16.vlgmr.msra.gmra.mxu0 %vm428_vm1, %v3980_v8  ;;  %981 = vperm.xlu2 %4154, %v895_v9   ;;  %v3983_v29 = vld [vmem:[%s6209_s1 + $0x18] sm:$0xff]  ;;  %v912_v31 = vld [vmem:[%s6207_s2 + $0xb0] sm:$0xff]  ;;  %v915_v34 = vld [vmem:[%s6207_s2 + $0xc8] sm:$0xff] }
   0xb   :  { %971 = vperm.xlu1 %4153, %v893_v10   ;;  %961 = vperm.xlu0 %4152, %v891_v11   ;;  %v913_v30 = vld [vmem:[%s6207_s2 + $0xb8] sm:$0xff]  ;;  %v916_v33 = vld [vmem:[%s6207_s2 + $0xd0] sm:$0xff]  ;;  %v914_v35 = vld [vmem:[%s6207_s2 + $0xc0] sm:$0xff] }
   0xc   :  { %v3984_v36 = vld [vmem:[%s6209_s1 + $0x20] sm:$0xff]  ;;  %v919_v37 = vld [vmem:[%s6207_s2 + $0xe8] sm:$0xff]  ;;  %v917_v39 = vld [vmem:[%s6207_s2 + $0xd8] sm:$0xff] }
   0xd   :  { %v918_v38 = vld [vmem:[%s6207_s2 + $0xe0] sm:$0xff]  ;;  %v921_v41 = vld [vmem:[%s6207_s2 + $0xf8] sm:$0xff]  ;;  %v920_v42 = vld [vmem:[%s6207_s2 + $0xf0] sm:$0xff] }
   0xe   :  { %v922_v40 = vld [vmem:[%s6207_s2 + $0x100] sm:$0xff]  ;;  %v3985_v43 = vld [vmem:[%s6209_s1 + $0x28] sm:$0xff]  ;;  %v925_v44 = vld [vmem:[%s6207_s2 + $0x118] sm:$0xff] }
   0xf   :  { %v924_v45 = vld [vmem:[%s6207_s2 + $0x110] sm:$0xff]  ;;  %v923_v46 = vld [vmem:[%s6207_s2 + $0x108] sm:$0xff]  ;;  %v926_v49 = vld [vmem:[%s6207_s2 + $0x120] sm:$0xff] }
  0x10   :  { %v928_v47 = vld [vmem:[%s6207_s2 + $0x130] sm:$0xff]  ;;  %v927_v48 = vld [vmem:[%s6207_s2 + $0x128] sm:$0xff]  ;;  %v930_v52 = vld [vmem:[%s6207_s2 + $0x140] sm:$0xff] }
  0x11   :  { %v3986_v50 = vld [vmem:[%s6209_s1 + $0x30] sm:$0xff]  ;;  %v931_v51 = vld [vmem:[%s6207_s2 + $0x148] sm:$0xff]  ;;  %v929_v53 = vld [vmem:[%s6207_s2 + $0x138] sm:$0xff] }
  0x12   :  { %996 = vperm.xlu2 %4154, %v898_v12   ;;  %v934_v54 = vld [vmem:[%s6207_s2 + $0x160] sm:$0xff]  ;;  %v933_v55 = vld [vmem:[%s6207_s2 + $0x158] sm:$0xff]  ;;  %v932_v56 = vld [vmem:[%s6207_s2 + $0x150] sm:$0xff] }
  0x13   :  { %991 = vperm.xlu1 %4153, %v897_v13   ;;  %986 = vperm.xlu0 %4152, %v896_v14   ;;  %v3987_v57 = vld [vmem:[%s6209_s1 + $0x38] sm:$0xff]  ;;  %v936_v59 = vld [vmem:[%s6207_s2 + $0x170] sm:$0xff]  ;;  %v935_v60 = vld [vmem:[%s6207_s2 + $0x168] sm:$0xff] }
  0x14   :  { %v937_v58 = vld [vmem:[%s6207_s2 + $0x178] sm:$0xff]  ;;  %v940_v61 = vld [vmem:[%s6207_s2 + $0x190] sm:$0xff]  ;;  %v939_v62 = vld [vmem:[%s6207_s2 + $0x188] sm:$0xff] }
  0x15   :  { %v938_v63 = vld [vmem:[%s6207_s2 + $0x180] sm:$0xff]  ;;  %v943_v3 = vld [vmem:[%s6207_s2 + $0x1a8] sm:$0xff]  ;;  %v941_v5 = vld [vmem:[%s6207_s2 + $0x198] sm:$0xff] }
  0x16   :  { %v3988_v1 = vld [vmem:[%s6209_s1 + $0x40] sm:$0xff]  ;;  %v945_v11 = vld [vmem:[%s6207_s2 + $0x1b8] sm:$0xff]  ;;  %v944_v12 = vld [vmem:[%s6207_s2 + $0x1b0] sm:$0xff] }
  0x17   :  { %v942_v4 = vld [vmem:[%s6207_s2 + $0x1a0] sm:$0xff] }
  0x18   :  { %v946_v10 = vld [vmem:[%s6207_s2 + $0x1c0] sm:$0xff] }
  0x1a   :  { %3541 = vmatmul.msk.bf16.gmra.mxu0 %vm428_vm1, %v3981_v15  ;;  %1011 = vperm.xlu2 %4154, %v901_v16   ;;  %v4019_v15 = vld [vmem:[%s6209_s1 + $0x138] sm:$0xff] }
  0x1b   :  { %1006 = vperm.xlu1 %4153, %v900_v17   ;;  %1001 = vperm.xlu0 %4152, %v899_v18   ;;  %v3989_v18 = vld [vmem:[%s6209_s1 + $0x48] sm:$0xff] }
  0x1c   :  { %3579 = vmatmul.msk.bf16.vlgmr.msra.gmra.mxu2 %vm428_vm1, %v4019_v15 }
  0x22   :  { %1026 = vperm.xlu2 %4154, %v904_v19  }
  0x23   :  { %1021 = vperm.xlu1 %4153, %v903_v20   ;;  %1016 = vperm.xlu0 %4152, %v902_v21   ;;  %v949_v20 = vld [vmem:[%s6207_s2 + $0x1d8] sm:$0xff]  ;;  %v948_v21 = vld [vmem:[%s6207_s2 + $0x1d0] sm:$0xff] }
  0x2a   :  { %3542 = vmatmul.msk.bf16.gmra.mxu0 %vm428_vm1, %v3982_v22  ;;  %1041 = vperm.xlu2 %4154, %v907_v23   ;;  %v947_v22 = vld [vmem:[%s6207_s2 + $0x1c8] sm:$0xff] }
  0x2b   :  { %1036 = vperm.xlu1 %4153, %v906_v24   ;;  %1031 = vperm.xlu0 %4152, %v905_v25  }
  0x32   :  { %1056 = vperm.xlu2 %4154, %v910_v26  }
  0x33   :  { %1051 = vperm.xlu1 %4153, %v909_v27   ;;  %1046 = vperm.xlu0 %4152, %v908_v28   ;;  %v952_v27 = vld [vmem:[%s6207_s2 + $0x1f0] sm:$0xff]  ;;  %v951_v28 = vld [vmem:[%s6207_s2 + $0x1e8] sm:$0xff] }
  0x3a   :  { %3543 = vmatmul.msk.bf16.gmra.mxu0 %vm428_vm1, %v3983_v29  ;;  %1071 = vperm.xlu2 %4154, %v913_v30   ;;  %v950_v29 = vld [vmem:[%s6207_s2 + $0x1e0] sm:$0xff] }
  0x3b   :  { %1066 = vperm.xlu1 %4153, %v912_v31   ;;  %1061 = vperm.xlu0 %4152, %v911_v32   ;;  %v4020_v32 = vld [vmem:[%s6209_s1 + $0x140] sm:$0xff] }
  0x3c   :  { %3580 = vmatmul.msk.bf16.gmra.mxu2 %vm428_vm1, %v4020_v32 }
  0x42   :  { %1086 = vperm.xlu2 %4154, %v916_v33  }
  0x43   :  { %1081 = vperm.xlu1 %4153, %v915_v34   ;;  %1076 = vperm.xlu0 %4152, %v914_v35   ;;  %v3990_v35 = vld [vmem:[%s6209_s1 + $0x50] sm:$0xff] }
  0x4a   :  { %3544 = vmatmul.msk.bf16.gmra.mxu0 %vm428_vm1, %v3984_v36  ;;  %1101 = vperm.xlu2 %4154, %v919_v37   ;;  %v2527_v37 = vld [vmem:[%s6210_s4 + $0x8] sm:$0xff] }
  0x4b   :  { %1096 = vperm.xlu1 %4153, %v918_v38   ;;  %1091 = vperm.xlu0 %4152, %v917_v39   ;;  %v2526_v38 = vld [vmem:[%s6210_s4] sm:$0xff]  ;;  %v953_v39 = vld [vmem:[%s6207_s2 + $0x1f8] sm:$0xff] }
  0x52   :  { %1116 = vperm.xlu2 %4154, %v922_v40  }
  0x53   :  { %1111 = vperm.xlu1 %4153, %v921_v41   ;;  %1106 = vperm.xlu0 %4152, %v920_v42  }
  0x5a   :  { %3545 = vmatmul.msk.bf16.gmra.mxu0 %vm428_vm1, %v3985_v43  ;;  %1131 = vperm.xlu2 %4154, %v925_v44   ;;  %v2530_v44 = vld [vmem:[%s6210_s4 + $0x20] sm:$0xff] }
  0x5b   :  { %1126 = vperm.xlu1 %4153, %v924_v45   ;;  %1121 = vperm.xlu0 %4152, %v923_v46   ;;  %v2529_v45 = vld [vmem:[%s6210_s4 + $0x18] sm:$0xff]  ;;  %v2528_v46 = vld [vmem:[%s6210_s4 + $0x10] sm:$0xff] }
  0x5c   :  { %v977_v34 = vpop.permute.xlu2 %976 }
  0x62   :  { %1146 = vperm.xlu2 %4154, %v928_v47  }
  0x63   :  { %1141 = vperm.xlu1 %4153, %v927_v48   ;;  %1136 = vperm.xlu0 %4152, %v926_v49   ;;  %v4021_v49 = vld [vmem:[%s6209_s1 + $0x148] sm:$0xff] }
  0x64   :  { %v982_v41 = vpop.permute.xlu2 %981  ;;  %3581 = vmatmul.msk.bf16.gmra.mxu2 %vm428_vm1, %v4021_v49 }
  0x6a   :  { %3546 = vmatmul.msk.bf16.gmra.mxu0 %vm428_vm1, %v3986_v50  ;;  %1161 = vperm.xlu2 %4154, %v931_v51   ;;  %v3991_v51 = vld [vmem:[%s6209_s1 + $0x58] sm:$0xff] }
  0x6b   :  { %1156 = vperm.xlu1 %4153, %v930_v52   ;;  %1151 = vperm.xlu0 %4152, %v929_v53   ;;  %v2533_v53 = vld [vmem:[%s6210_s4 + $0x38] sm:$0xff] }
  0x72   :  { %1176 = vperm.xlu2 %4154, %v934_v54   ;;  %v2532_v54 = vld [vmem:[%s6210_s4 + $0x30] sm:$0xff] }
  0x73   :  { %1171 = vperm.xlu1 %4153, %v933_v55   ;;  %1166 = vperm.xlu0 %4152, %v932_v56   ;;  %v2531_v55 = vld [vmem:[%s6210_s4 + $0x28] sm:$0xff] }
  0x75   :  { %v957_v0 = vpop.permute.xlu0 %956  ;;  %v967_v17 = vpop.permute.xlu1 %966 }
  0x7a   :  { %3547 = vmatmul.msk.bf16.gmra.mxu0 %vm428_vm1, %v3987_v57  ;;  %1191 = vperm.xlu2 %4154, %v937_v58  }
  0x7b   :  { %1186 = vperm.xlu1 %4153, %v936_v59   ;;  %1181 = vperm.xlu0 %4152, %v935_v60  }
  0x7d   :  { %v962_v7 = vpop.permute.xlu0 %961  ;;  %v972_v24 = vpop.permute.xlu1 %971 }
  0x82   :  { %1206 = vperm.xlu2 %4154, %v940_v61   ;;  %v2536_v61 = vld [vmem:[%s6210_s4 + $0x50] sm:$0xff] }
  0x83   :  { %1201 = vperm.xlu1 %4153, %v939_v62   ;;  %1196 = vperm.xlu0 %4152, %v938_v63   ;;  %v2535_v62 = vld [vmem:[%s6210_s4 + $0x48] sm:$0xff]  ;;  %v2534_v63 = vld [vmem:[%s6210_s4 + $0x40] sm:$0xff] }
  0x85   :  { %v987_v56 = vpop.permute.xlu0 %986  ;;  %v992_v58 = vpop.permute.xlu1 %991 }
  0x87   :  { %v610_v2 = vpop.f32.mrf.mxu0 }
  0x88   :  { %v1274_v6 = vadd.f32 %v957_v0, %v610_v2  ;;  %v4022_v2 = vld [vmem:[%s6209_s1 + $0x150] sm:$0xff] }
  0x89   :  { %3582 = vmatmul.msk.bf16.gmra.mxu2 %vm428_vm1, %v4022_v2 }
  0x8a   :  { %3548 = vmatmul.msk.bf16.gmra.mxu0 %vm428_vm1, %v3988_v1  ;;  %1221 = vperm.xlu2 %4154, %v943_v3   ;;  %v1338_v13 = vmax.f32 %v1274_v6, 0.0  ;;  %v2539_v6 = vld [vmem:[%s6210_s4 + $0x68] sm:$0xff] }
  0x8b   :  { %1216 = vperm.xlu1 %4153, %v942_v4   ;;  %1211 = vperm.xlu0 %4152, %v941_v5   ;;  %v3992_v4 = vld [vmem:[%s6209_s1 + $0x60] sm:$0xff] }
  0x8f   :  { %v612_v8 = vpop.f32.mrf.mxu0 }
  0x90   :  { %v1275_v9 = vadd.f32 %v962_v7, %v612_v8  ;;  %v2538_v7 = vld [vmem:[%s6210_s4 + $0x60] sm:$0xff]  ;;  %v2537_v8 = vld [vmem:[%s6210_s4 + $0x58] sm:$0xff] }
  0x92   :  { %v1339_v14 = vmax.f32 %v1275_v9, 0.0  ;;  %1236 = vperm.xlu2 %4154, %v946_v10   ;;  %v2542_v10 = vld [vmem:[%s6210_s4 + $0x80] sm:$0xff] }
  0x93   :  { %1231 = vperm.xlu1 %4153, %v945_v11   ;;  %1226 = vperm.xlu0 %4152, %v944_v12   ;;  %v2541_v11 = vld [vmem:[%s6210_s4 + $0x78] sm:$0xff]  ;;  %v2540_v12 = vld [vmem:[%s6210_s4 + $0x70] sm:$0xff] }
  0x94   :  { %v4412_v16 = vpack.c.bf16 %v1339_v14, %v1338_v13  ;;  %v4023_v13 = vld [vmem:[%s6209_s1 + $0x158] sm:$0xff]  ;;  %v3993_v14 = vld [vmem:[%s6209_s1 + $0x68] sm:$0xff] }
  0x97   :  { %v615_v19 = vpop.f32.mrf.mxu0 }
  0x98   :  { %v1276_v23 = vadd.f32 %v967_v17, %v615_v19  ;;  %v2545_v17 = vld [vmem:[%s6210_s4 + $0x98] sm:$0xff]  ;;  %v2543_v19 = vld [vmem:[%s6210_s4 + $0x88] sm:$0xff] }
  0x99   :  { %3583 = vmatmul.msk.bf16.gmra.mxu2 %vm428_vm1, %v4023_v13  ;;  %v2563_v13 = vld [vmem:[%s6210_s4 + $0x128] sm:$0xff] }
  0x9a   :  { %3549 = vmatmul.msk.bf16.gmra.mxu0 %vm428_vm1, %v3989_v18  ;;  %1251 = vperm.xlu2 %4154, %v949_v20   ;;  %v1340_v30 = vmax.f32 %v1276_v23, 0.0  ;;  %v2544_v18 = vld [vmem:[%s6210_s4 + $0x90] sm:$0xff]  ;;  %v2546_v23 = vld [vmem:[%s6210_s4 + $0xa0] sm:$0xff] }
  0x9b   :  { %1246 = vperm.xlu1 %4153, %v948_v21   ;;  %1241 = vperm.xlu0 %4152, %v947_v22   ;;  %v2548_v21 = vld [vmem:[%s6210_s4 + $0xb0] sm:$0xff]  ;;  %v2547_v22 = vld [vmem:[%s6210_s4 + $0xa8] sm:$0xff] }
  0x9f   :  { %v617_v25 = vpop.f32.mrf.mxu0 }
  0xa0   :  { %v1277_v26 = vadd.f32 %v972_v24, %v617_v25  ;;  %v4024_v24 = vld [vmem:[%s6209_s1 + $0x160] sm:$0xff]  ;;  %v3994_v25 = vld [vmem:[%s6209_s1 + $0x70] sm:$0xff] }
  0xa2   :  { %v1341_v31 = vmax.f32 %v1277_v26, 0.0  ;;  %1266 = vperm.xlu2 %4154, %v952_v27   ;;  %v2551_v27 = vld [vmem:[%s6210_s4 + $0xc8] sm:$0xff] }
  0xa3   :  { %1261 = vperm.xlu1 %4153, %v951_v28   ;;  %1256 = vperm.xlu0 %4152, %v950_v29   ;;  %v4563_v28 = vpop.permute.xlu2 %996  ;;  %v2550_v29 = vld [vmem:[%s6210_s4 + $0xc0] sm:$0xff] }
  0xa4   :  { %v4440_v33 = vpack.c.bf16 %v1341_v31, %v1340_v30  ;;  %v2549_v30 = vld [vmem:[%s6210_s4 + $0xb8] sm:$0xff]  ;;  %v1002_v31 = vpop.permute.xlu0 %1001 }
  0xa7   :  { %v620_v36 = vpop.f32.mrf.mxu0 }
  0xa8   :  { %v1278_v40 = vadd.f32 %v977_v34, %v620_v36  ;;  %v2554_v34 = vld [vmem:[%s6210_s4 + $0xe0] sm:$0xff]  ;;  %v2552_v36 = vld [vmem:[%s6210_s4 + $0xd0] sm:$0xff] }
  0xa9   :  { %3584 = vmatmul.msk.bf16.gmra.mxu2 %vm428_vm1, %v4024_v24 }
  0xaa   :  { %3550 = vmatmul.msk.bf16.gmra.mxu0 %vm428_vm1, %v3990_v35  ;;  %2581 = vperm.xlu2 %4154, %v2527_v37   ;;  %v1342_v47 = vmax.f32 %v1278_v40, 0.0  ;;  %v2553_v35 = vld [vmem:[%s6210_s4 + $0xd8] sm:$0xff] }
  0xab   :  { %2576 = vperm.xlu1 %4153, %v2526_v38   ;;  %1271 = vperm.xlu0 %4152, %v953_v39   ;;  %v1012_v37 = vpop.permute.xlu2 %1011  ;;  %v1007_v38 = vpop.permute.xlu1 %1006  ;;  %v4025_v39 = vld [vmem:[%s6209_s1 + $0x168] sm:$0xff] }
  0xac   :  { %v1017_v40 = vpop.permute.xlu0 %1016 }
  0xaf   :  { %v622_v42 = vpop.f32.mrf.mxu0 }
  0xb0   :  { %v1279_v43 = vadd.f32 %v982_v41, %v622_v42  ;;  %v3995_v41 = vld [vmem:[%s6209_s1 + $0x78] sm:$0xff] }
  0xb2   :  { %v1343_v48 = vmax.f32 %v1279_v43, 0.0  ;;  %2596 = vperm.xlu2 %4154, %v2530_v44   ;;  %v2557_v43 = vld [vmem:[%s6210_s4 + $0xf8] sm:$0xff]  ;;  %v2556_v44 = vld [vmem:[%s6210_s4 + $0xf0] sm:$0xff] }
  0xb3   :  { %2591 = vperm.xlu1 %4153, %v2529_v45   ;;  %2586 = vperm.xlu0 %4152, %v2528_v46   ;;  %v2555_v45 = vld [vmem:[%s6210_s4 + $0xe8] sm:$0xff]  ;;  %v4034_v46 = vld [vmem:[%s6209_s1 + $0x1b0] sm:$0xff] }
  0xb4   :  { %v4468_v50 = vpack.c.bf16 %v1343_v48, %v1342_v47  ;;  %v1027_v47 = vpop.permute.xlu2 %1026  ;;  %v1022_v48 = vpop.permute.xlu1 %1021  ;;  %3594 = vmatmul.msk.bf16.vlgmr.msra.gmra.mxu3 %vm428_vm1, %v4034_v46  ;;  %v2572_v46 = vld [vmem:[%s6210_s4 + $0x170] sm:$0xff] }
  0xb7   :  { %v625_v52 = vpop.f32.mrf.mxu0 }
  0xb8   :  { %v1280_v57 = vadd.f32 %v987_v56, %v625_v52  ;;  %v2559_v56 = vld [vmem:[%s6210_s4 + $0x108] sm:$0xff] }
  0xb9   :  { %3585 = vmatmul.msk.bf16.gmra.mxu2 %vm428_vm1, %v4025_v39 }
  0xba   :  { %3551 = vmatmul.msk.bf16.gmra.mxu0 %vm428_vm1, %v3991_v51  ;;  %2611 = vperm.xlu2 %4154, %v2533_v53   ;;  %v1344_v0 = vmax.f32 %v1280_v57, 0.0  ;;  %v1032_v51 = vpop.permute.xlu0 %1031  ;;  %v2558_v57 = vld [vmem:[%s6210_s4 + $0x100] sm:$0xff] }
  0xbb   :  { %2606 = vperm.xlu1 %4153, %v2532_v54   ;;  %2601 = vperm.xlu0 %4152, %v2531_v55   ;;  %v2560_v55 = vld [vmem:[%s6210_s4 + $0x110] sm:$0xff] }
  0xbf   :  { %v627_v59 = vpop.f32.mrf.mxu0 }
  0xc0   :  { %v1281_v60 = vadd.f32 %v992_v58, %v627_v59 }
  0xc2   :  { %v1345_v1 = vmax.f32 %v1281_v60, 0.0  ;;  %2626 = vperm.xlu2 %4154, %v2536_v61  }
  0xc3   :  { %2621 = vperm.xlu1 %4153, %v2535_v62   ;;  %2616 = vperm.xlu0 %4152, %v2534_v63  }
  0xc4   :  { %v4496_v3 = vpack.c.bf16 %v1345_v1, %v1344_v0  ;;  %v4026_v0 = vld [vmem:[%s6209_s1 + $0x170] sm:$0xff] }
  0xc7   :  { %v4502_v5 = vpop.f32.mrf.mxu0 }
  0xc9   :  { %3586 = vmatmul.msk.bf16.gmra.mxu2 %vm428_vm1, %v4026_v0  ;;  %v4043_v0 = vld [vmem:[%s6211_s3 + $0x2c] sm:$0xf0] }
  0xca   :  { %3552 = vmatmul.msk.bf16.gmra.mxu0 %vm428_vm1, %v3992_v4  ;;  %2641 = vperm.xlu2 %4154, %v2539_v6   ;;  %v3996_v4 = vld [vmem:[%s6209_s1 + $0x80] sm:$0xff]  ;;  %v1037_v6 = vpop.permute.xlu1 %1036 }
  0xcb   :  { %2636 = vperm.xlu1 %4153, %v2538_v7   ;;  %2631 = vperm.xlu0 %4152, %v2537_v8  }
  0xcf   :  { %v4514_v9 = vpop.f32.mrf.mxu0 }
  0xd0   :  { %v1283_v8 = vadd.f32 %v1002_v31, %v4514_v9  ;;  %v4035_v9 = vld [vmem:[%s6209_s1 + $0x1b8] sm:$0xff] }
  0xd1   :  { %3595 = vmatmul.msk.bf16.gmra.mxu3 %vm428_vm1, %v4035_v9 }
  0xd2   :  { %2656 = vperm.xlu2 %4154, %v2542_v10  }
  0xd3   :  { %2651 = vperm.xlu1 %4153, %v2541_v11   ;;  %2646 = vperm.xlu0 %4152, %v2540_v12  }
  0xd7   :  { %v4532_v15 = vpop.f32.mrf.mxu0 }
  0xd8   :  { %v1284_v1 = vadd.f32 %v1007_v38, %v4532_v15  ;;  %v2561_v15 = vld [vmem:[%s6210_s4 + $0x118] sm:$0xff]  ;;  %v4665_v38 = vpop.f32.mrf.mxu2 }
  0xda   :  { %3553 = vmatmul.msk.bf16.gmra.mxu0 %vm428_vm1, %v3993_v14  ;;  %2671 = vperm.xlu2 %4154, %v2545_v17   ;;  %v2562_v14 = vld [vmem:[%s6210_s4 + $0x120] sm:$0xff]  ;;  %v1282_v17 = vadd.f32 %v4563_v28, %v4502_v5 }
  0xdb   :  { %2666 = vperm.xlu1 %4153, %v2544_v18   ;;  %2661 = vperm.xlu0 %4152, %v2543_v19   ;;  %v1348_v18 = vmax.f32 %v1284_v1, 0.0  ;;  %v1347_v19 = vmax.f32 %v1283_v8, 0.0  ;;  %v2914_v8 = vld [vmem:[%s6212_s5 + $0x20] sm:$0xff] }
  0xdf   :  { %v637_v20 = vpop.f32.mrf.mxu0 }
  0xe0   :  { %v1285_v61 = vadd.f32 %v1012_v37, %v637_v20  ;;  %v2567_v37 = vld [vmem:[%s6210_s4 + $0x148] sm:$0xff] }
  0xe2   :  { %2686 = vperm.xlu2 %4154, %v2548_v21   ;;  %v1349_v10 = vmax.f32 %v1285_v61, 0.0  ;;  %v1346_v21 = vmax.f32 %v1282_v17, 0.0 }
  0xe3   :  { %2681 = vperm.xlu1 %4153, %v2547_v22   ;;  %2676 = vperm.xlu0 %4152, %v2546_v23   ;;  %v1042_v22 = vpop.permute.xlu2 %1041 }
  0xe4   :  { %v1407_v20 = vpack.c.bf16 %v1349_v10, %v1348_v18  ;;  %v1406_v24 = vpack.c.bf16 %v1347_v19, %v1346_v21  ;;  %v2913_v10 = vld [vmem:[%s6212_s5 + $0x18] sm:$0xff]  ;;  %v4029_v18 = vld [vmem:[%s6209_s1 + $0x188] sm:$0xff] }
  0xe5   :  { %v3999_v19 = vld [vmem:[%s6209_s1 + $0x98] sm:$0xff] }
  0xe6   :  { %v2917_v21 = vld [vmem:[%s6212_s5 + $0x38] sm:$0xff] }
  0xe7   :  { %v640_v26 = vpop.f32.mrf.mxu0 }
  0xe8   :  { %v1286_v58 = vadd.f32 %v1017_v40, %v640_v26  ;;  %v2565_v26 = vld [vmem:[%s6210_s4 + $0x138] sm:$0xff]  ;;  %v3598_v40 = vld [vmem:[%s6211_s3] sm:$0xf] }
  0xea   :  { %3554 = vmatmul.msk.bf16.gmra.mxu0 %vm428_vm1, %v3994_v25  ;;  %2701 = vperm.xlu2 %4154, %v2551_v27   ;;  %v1350_v2 = vmax.f32 %v1286_v58, 0.0  ;;  %v2566_v25 = vld [vmem:[%s6210_s4 + $0x140] sm:$0xff]  ;;  %v2564_v27 = vld [vmem:[%s6210_s4 + $0x130] sm:$0xff] }
  0xeb   :  { %2696 = vperm.xlu1 %4153, %v2550_v29   ;;  %2691 = vperm.xlu0 %4152, %v2549_v30   ;;  %v4027_v30 = vld [vmem:[%s6209_s1 + $0x178] sm:$0xff]  ;;  %v2910_v58 = vld [vmem:[%s6212_s5] sm:$0xff]  ;;  %v1057_v61 = vpop.permute.xlu2 %1056 }
  0xec   :  { %3587 = vmatmul.msk.bf16.gmra.mxu2 %vm428_vm1, %v4027_v30  ;;  %v3854_v30 = vld [vmem:[%s6211_s3 + $0x200] sm:$0xf] }
  0xef   :  { %v642_v32 = vpop.f32.mrf.mxu0 }
  0xf0   :  { %v1287_v53 = vadd.f32 %v1022_v48, %v642_v32  ;;  %v3997_v32 = vld [vmem:[%s6209_s1 + $0x88] sm:$0xff]  ;;  %v4693_v48 = vpop.f32.mrf.mxu2 }
  0xf2   :  { %2716 = vperm.xlu2 %4154, %v2554_v34   ;;  %v1351_v62 = vmax.f32 %v1287_v53, 0.0 }
  0xf3   :  { %2711 = vperm.xlu1 %4153, %v2553_v35   ;;  %2706 = vperm.xlu0 %4152, %v2552_v36   ;;  %v2569_v35 = vld [vmem:[%s6210_s4 + $0x158] sm:$0xff]  ;;  %v2568_v36 = vld [vmem:[%s6210_s4 + $0x150] sm:$0xff] }
  0xf4   :  { %v1408_v12 = vpack.c.bf16 %v1351_v62, %v1350_v2 }
  0xf7   :  { %v645_v42 = vpop.f32.mrf.mxu0 }
  0xf8   :  { %v1288_v49 = vadd.f32 %v1027_v47, %v645_v42  ;;  %v1052_v42 = vpop.permute.xlu1 %1051  ;;  %v2571_v47 = vld [vmem:[%s6210_s4 + $0x168] sm:$0xff] }
  0xfa   :  { %3555 = vmatmul.msk.bf16.gmra.mxu0 %vm428_vm1, %v3995_v41  ;;  %2731 = vperm.xlu2 %4154, %v2557_v43   ;;  %v1352_v59 = vmax.f32 %v1288_v49, 0.0  ;;  %v4039_v41 = vld [vmem:[%s6211_s3 + $0xc] sm:$0xf0] }
  0xfb   :  { %2726 = vperm.xlu1 %4153, %v2556_v44   ;;  %2721 = vperm.xlu0 %4152, %v2555_v45   ;;  %v4095_v44 = vld [vmem:[%s6211_s3 + $0x1cc] sm:$0xf0]  ;;  %v3599_v49 = vor.u32 %v4039_v41, %v3598_v40 }
  0xff   :  { %v647_v52 = vpop.f32.mrf.mxu0 }
 0x100   :  { %v1289_v54 = vadd.f32 %v1032_v51, %v647_v52 }
 0x102   :  { %v1353_v60 = vmax.f32 %v1289_v54, 0.0  ;;  %2746 = vperm.xlu2 %4154, %v2560_v55   ;;  %v4028_v54 = vld [vmem:[%s6209_s1 + $0x180] sm:$0xff] }
 0x103   :  { %2741 = vperm.xlu1 %4153, %v2559_v56   ;;  %2736 = vperm.xlu0 %4152, %v2558_v57   ;;  %v3998_v56 = vld [vmem:[%s6209_s1 + $0x90] sm:$0xff] }
 0x104   :  { %v1409_v63 = vpack.c.bf16 %v1353_v60, %v1352_v59  ;;  %3588 = vmatmul.msk.bf16.gmra.mxu2 %vm428_vm1, %v4028_v54  ;;  %v2573_v59 = vld [vmem:[%s6210_s4 + $0x178] sm:$0xff]  ;;  %v4715_v60 = vpop.f32.mrf.mxu2  ;;  %v3870_v54 = vld [vmem:[%s6211_s3 + $0x220] sm:$0xf] }
 0x106   :  { %2010 = vmatpush.bf16.msra.mxu1 %v1409_v63  ;;  %4135 = vmatpush.bf16.msrb.mxu3 %v1409_v63  ;;  %v3614_v63 = vld [vmem:[%s6211_s3 + $0x20] sm:$0xf] }
 0x107   :  { %v650_v7 = vpop.f32.mrf.mxu0 }
 0x108   :  { %v1290_v11 = vadd.f32 %v1037_v6, %v650_v7  ;;  %v4099_v6 = vld [vmem:[%s6211_s3 + $0x1ec] sm:$0xf0] }
 0x10a   :  { %3556 = vmatmul.msk.bf16.gmra.mxu0 %vm428_vm1, %v3996_v4  ;;  %2011 = vmatpush.bf16.msra.mxu1 %v1408_v12  ;;  %v1354_v28 = vmax.f32 %v1290_v11, 0.0  ;;  %v3838_v4 = vld [vmem:[%s6211_s3 + $0x1e0] sm:$0xf]  ;;  %v2912_v11 = vld [vmem:[%s6212_s5 + $0x10] sm:$0xff] }
 0x10b   :  { %4136 = vmatpush.bf16.msrb.mxu3 %v1408_v12  ;;  %2761 = vperm.xlu2 %4154, %v2563_v13   ;;  %v3615_v13 = vor.u32 %v4043_v0, %v3614_v63  ;;  %v3839_v17 = vor.u32 %v4099_v6, %v3838_v4  ;;  %v4031_v63 = vld [vmem:[%s6209_s1 + $0x198] sm:$0xff]  ;;  %v4001_v0 = vld [vmem:[%s6209_s1 + $0xa8] sm:$0xff]  ;;  %v2928_v4 = vld [vmem:[%s6212_s5 + $0x90] sm:$0xff] }
 0x10c   :  { %2756 = vperm.xlu1 %4153, %v2562_v14   ;;  %2751 = vperm.xlu0 %4152, %v2561_v15   ;;  %v4739_v12 = vpop.f32.mrf.mxu2  ;;  %v2927_v6 = vld [vmem:[%s6212_s5 + $0x88] sm:$0xff] }
 0x10e   :  { %2012 = vmatpush.bf16.msra.mxu1 %v1407_v20 }
 0x10f   :  { %4137 = vmatpush.bf16.msrb.mxu3 %v1407_v20  ;;  %v652_v5 = vpop.f32.mrf.mxu0 }
 0x110   :  { %v1291_v23 = vadd.f32 %v1042_v22, %v652_v5  ;;  %v2916_v22 = vld [vmem:[%s6212_s5 + $0x30] sm:$0xff]  ;;  %v2915_v5 = vld [vmem:[%s6212_s5 + $0x28] sm:$0xff] }
 0x112   :  { %v1355_v29 = vmax.f32 %v1291_v23, 0.0  ;;  %2013 = vmatpush.bf16.msra.mxu1 %v1406_v24 }
 0x113   :  { %4138 = vmatpush.bf16.msrb.mxu3 %v1406_v24  ;;  %2776 = vperm.xlu2 %4154, %v2566_v25   ;;  %v1067_v24 = vpop.permute.xlu1 %1066 }
 0x114   :  { %2771 = vperm.xlu1 %4153, %v2565_v26   ;;  %2766 = vperm.xlu0 %4152, %v2564_v27   ;;  %v4648_v31 = vpack.c.bf16 %v1355_v29, %v1354_v28  ;;  %v4759_v23 = vpop.f32.mrf.mxu2  ;;  %v3630_v26 = vld [vmem:[%s6211_s3 + $0x40] sm:$0xf]  ;;  %v4047_v27 = vld [vmem:[%s6211_s3 + $0x4c] sm:$0xf0]  ;;  %v1072_v28 = vpop.permute.xlu2 %1071 }
 0x115   :  { %3589 = vmatmul.msk.bf16.gmra.mxu2 %vm428_vm1, %v4029_v18  ;;  %v2930_v18 = vld [vmem:[%s6212_s5 + $0xa0] sm:$0xff] }
 0x116   :  { %2014 = vmatpush.bf16.msra.mxu1 %v4496_v3 }
 0x117   :  { %4139 = vmatpush.bf16.msrb.mxu3 %v4496_v3  ;;  %v655_v34 = vpop.f32.mrf.mxu0  ;;  %v1047_v3 = vpop.permute.xlu0 %1046 }
 0x118   :  { %v1292_v39 = vadd.f32 %v1047_v3, %v655_v34 }
 0x11a   :  { %3557 = vmatmul.msk.bf16.gmra.mxu0 %vm428_vm1, %v3997_v32  ;;  %2015 = vmatpush.bf16.msra.mxu1 %v4468_v50  ;;  %v1356_v51 = vmax.f32 %v1292_v39, 0.0  ;;  %v4103_v32 = vld [vmem:[%s6211_s3 + $0x20c] sm:$0xf0]  ;;  %v3631_v39 = vor.u32 %v4047_v27, %v3630_v26  ;;  %v2934_v27 = vld [vmem:[%s6212_s5 + $0xc0] sm:$0xff] }
 0x11b   :  { %4140 = vmatpush.bf16.msrb.mxu3 %v4468_v50  ;;  %2791 = vperm.xlu2 %4154, %v2569_v35   ;;  %v3822_v50 = vld [vmem:[%s6211_s3 + $0x1c0] sm:$0xf]  ;;  %v2920_v35 = vld [vmem:[%s6212_s5 + $0x50] sm:$0xff] }
 0x11c   :  { %2786 = vperm.xlu1 %4153, %v2568_v36   ;;  %2781 = vperm.xlu0 %4152, %v2567_v37   ;;  %v3823_v53 = vor.u32 %v4095_v44, %v3822_v50  ;;  %v2919_v36 = vld [vmem:[%s6212_s5 + $0x48] sm:$0xff]  ;;  %v2918_v37 = vld [vmem:[%s6212_s5 + $0x40] sm:$0xff]  ;;  %v4783_v3 = vpop.f32.mrf.mxu2 }
 0x11d   :  { %6215 = vst [vmem:[#allocation3_spill] sm:$0xff] %v4783_v3  ;;  %v4000_v44 = vld [vmem:[%s6209_s1 + $0xa0] sm:$0xff] }
 0x11e   :  { %2016 = vmatpush.bf16.msra.mxu1 %v4440_v33 }
 0x11f   :  { %4141 = vmatpush.bf16.msrb.mxu3 %v4440_v33  ;;  %v657_v43 = vpop.f32.mrf.mxu0  ;;  %v2570_v33 = vld [vmem:[%s6210_s4 + $0x160] sm:$0xff]  ;;  %v1062_v1 = vpop.permute.xlu0 %1061 }
 0x120   :  { %v1293_v45 = vadd.f32 %v1052_v42, %v657_v43  ;;  %v3855_v42 = vor.u32 %v4103_v32, %v3854_v30  ;;  %v4030_v43 = vld [vmem:[%s6209_s1 + $0x190] sm:$0xff]  ;;  %v4900_v30 = vpop.permute.xlu1 %1081  ;;  %v3678_v32 = vld [vmem:[%s6211_s3 + $0xa0] sm:$0xf] }
 0x122   :  { %v1357_v52 = vmax.f32 %v1293_v45, 0.0  ;;  %2017 = vmatpush.bf16.msra.mxu1 %v4412_v16 }
 0x123   :  { %4142 = vmatpush.bf16.msrb.mxu3 %v4412_v16  ;;  %2806 = vperm.xlu2 %4154, %v2572_v46   ;;  %v2911_v16 = vld [vmem:[%s6212_s5 + $0x8] sm:$0xff] }
 0x124   :  { %2801 = vperm.xlu1 %4153, %v2571_v47   ;;  %2796 = vperm.xlu0 %4152, %v2570_v33   ;;  %v4700_v55 = vpack.c.bf16 %v1357_v52, %v1356_v51  ;;  %v2923_v46 = vld [vmem:[%s6212_s5 + $0x68] sm:$0xff]  ;;  %v2922_v47 = vld [vmem:[%s6212_s5 + $0x60] sm:$0xff]  ;;  %v2921_v33 = vld [vmem:[%s6212_s5 + $0x58] sm:$0xff] }
 0x125   :  { %2018 = vmatmul.bf16.vlgmr.msra.gmra.mxu1 %v3599_v49  ;;  %3590 = vmatmul.msk.bf16.gmra.mxu2 %vm428_vm1, %v4030_v43  ;;  %v4805_v49 = vpop.f32.mrf.mxu2  ;;  %v3646_v51 = vld [vmem:[%s6211_s3 + $0x60] sm:$0xf]  ;;  %v4051_v52 = vld [vmem:[%s6211_s3 + $0x6c] sm:$0xf0] }
 0x126   :  { %2088 = vmatmul.bf16.vlgmr.msrb.gmra.mxu3 %v3823_v53 }
 0x127   :  { %v660_v57 = vpop.f32.mrf.mxu0  ;;  %v4889_v26 = vpop.permute.xlu0 %1076 }
 0x128   :  { %v1294_v62 = vadd.f32 %v1057_v61, %v660_v57  ;;  %v2926_v57 = vld [vmem:[%s6212_s5 + $0x80] sm:$0xff]  ;;  %v3647_v61 = vor.u32 %v4051_v52, %v3646_v51  ;;  %v1097_v51 = vpop.permute.xlu1 %1096  ;;  %v4003_v52 = vld [vmem:[%s6209_s1 + $0xb8] sm:$0xff] }
 0x12a   :  { %3558 = vmatmul.msk.bf16.gmra.mxu0 %vm428_vm1, %v3998_v56  ;;  %v1358_v14 = vmax.f32 %v1294_v62, 0.0  ;;  %v4107_v56 = vld [vmem:[%s6211_s3 + $0x22c] sm:$0xf0] }
 0x12b   :  { %2965 = vperm.xlu2 %4154, %v2911_v16   ;;  %v2925_v16 = vld [vmem:[%s6212_s5 + $0x78] sm:$0xff]  ;;  %v3871_v62 = vor.u32 %v4107_v56, %v3870_v54 }
 0x12c   :  { %2960 = vperm.xlu1 %4153, %v2910_v58   ;;  %2811 = vperm.xlu0 %4152, %v2573_v59   ;;  %v2924_v58 = vld [vmem:[%s6212_s5 + $0x70] sm:$0xff]  ;;  %v2941_v56 = vld [vmem:[%s6212_s5 + $0xf8] sm:$0xff] }
 0x12d   :  { %v4831_v59 = vpop.f32.mrf.mxu2 }
 0x12e   :  { %6216 = vst [vmem:[#allocation4_spill] sm:$0xff] %v4831_v59 }
 0x12f   :  { %v662_v2 = vpop.f32.mrf.mxu0 }
 0x130   :  { %v1295_v7 = vadd.f32 %v1062_v1, %v662_v2  ;;  %v2929_v2 = vld [vmem:[%s6212_s5 + $0x98] sm:$0xff] }
 0x132   :  { %v1359_v15 = vmax.f32 %v1295_v7, 0.0 }
 0x133   :  { %2980 = vperm.xlu2 %4154, %v2914_v8   ;;  %v3662_v8 = vld [vmem:[%s6211_s3 + $0x80] sm:$0xf] }
 0x134   :  { %2975 = vperm.xlu1 %4153, %v2913_v10   ;;  %2970 = vperm.xlu0 %4152, %v2912_v11   ;;  %v4744_v9 = vpack.c.bf16 %v1359_v15, %v1358_v14  ;;  %v4055_v10 = vld [vmem:[%s6211_s3 + $0x8c] sm:$0xf0] }
 0x135   :  { %2023 = vmatmul.bf16.gmra.mxu1 %v3615_v13  ;;  %3591 = vmatmul.msk.bf16.gmra.mxu2 %vm428_vm1, %v4031_v63  ;;  %v4851_v7 = vpop.f32.mrf.mxu2  ;;  %v3886_v13 = vld [vmem:[%s6211_s3 + $0x240] sm:$0xf]  ;;  %v4111_v14 = vld [vmem:[%s6211_s3 + $0x24c] sm:$0xf0] }
 0x136   :  { %2093 = vmatmul.bf16.gmra.mxu3 %v3839_v17  ;;  %v2932_v15 = vld [vmem:[%s6212_s5 + $0xb0] sm:$0xff]  ;;  %v2931_v17 = vld [vmem:[%s6212_s5 + $0xa8] sm:$0xff] }
 0x137   :  { %v665_v20 = vpop.f32.mrf.mxu0 }
 0x138   :  { %v1296_v25 = vadd.f32 %v1067_v24, %v665_v20  ;;  %v3663_v20 = vor.u32 %v4055_v10, %v3662_v8  ;;  %v3918_v8 = vld [vmem:[%s6211_s3 + $0x280] sm:$0xf]  ;;  %v4119_v10 = vld [vmem:[%s6211_s3 + $0x28c] sm:$0xf0] }
 0x13a   :  { %3559 = vmatmul.msk.bf16.gmra.mxu0 %vm428_vm1, %v3999_v19  ;;  %v1360_v40 = vmax.f32 %v1296_v25, 0.0  ;;  %v2935_v25 = vld [vmem:[%s6212_s5 + $0xc8] sm:$0xff] }
 0x13b   :  { %2995 = vperm.xlu2 %4154, %v2917_v21   ;;  %v3887_v21 = vor.u32 %v4111_v14, %v3886_v13 }
 0x13c   :  { %2990 = vperm.xlu1 %4153, %v2916_v22   ;;  %2985 = vperm.xlu0 %4152, %v2915_v5   ;;  %v4032_v22 = vld [vmem:[%s6209_s1 + $0x1a0] sm:$0xff]  ;;  %v4002_v5 = vld [vmem:[%s6209_s1 + $0xb0] sm:$0xff] }
 0x13d   :  { %v4877_v19 = vpop.f32.mrf.mxu2 }
 0x13e   :  { %6217 = vst [vmem:[#allocation5_spill] sm:$0xff] %v4877_v19 }
 0x13f   :  { %v667_v29 = vpop.f32.mrf.mxu0 }
 0x140   :  { %v1297_v34 = vadd.f32 %v1072_v28, %v667_v29  ;;  %v2933_v28 = vld [vmem:[%s6212_s5 + $0xb8] sm:$0xff] }
 0x142   :  { %v1361_v41 = vmax.f32 %v1297_v34, 0.0  ;;  %v4059_v34 = vld [vmem:[%s6211_s3 + $0xac] sm:$0xf0] }
 0x143   :  { %3010 = vperm.xlu2 %4154, %v2920_v35   ;;  %v3679_v43 = vor.u32 %v4059_v34, %v3678_v32 }
 0x144   :  { %3005 = vperm.xlu1 %4153, %v2919_v36   ;;  %3000 = vperm.xlu0 %4152, %v2918_v37   ;;  %v4788_v50 = vpack.c.bf16 %v1361_v41, %v1360_v40  ;;  %v3902_v36 = vld [vmem:[%s6211_s3 + $0x260] sm:$0xf]  ;;  %v4115_v37 = vld [vmem:[%s6211_s3 + $0x26c] sm:$0xf0]  ;;  %v2937_v40 = vld [vmem:[%s6212_s5 + $0xd8] sm:$0xff] }
 0x145   :  { %2028 = vmatmul.bf16.gmra.mxu1 %v3631_v39  ;;  %3592 = vmatmul.msk.bf16.gmra.mxu2 %vm428_vm1, %v4032_v22  ;;  %v4897_v29 = vpop.f32.mrf.mxu2  ;;  %v2938_v39 = vld [vmem:[%s6212_s5 + $0xe0] sm:$0xff]  ;;  %v2936_v41 = vld [vmem:[%s6212_s5 + $0xd0] sm:$0xff] }
 0x146   :  { %2098 = vmatmul.bf16.gmra.mxu3 %v3855_v42 }
 0x147   :  { %v4793_v45 = vpop.f32.mrf.mxu0 }
 0x14a   :  { %3560 = vmatmul.msk.bf16.gmra.mxu0 %vm428_vm1, %v4000_v44  ;;  %v3903_v44 = vor.u32 %v4115_v37, %v3902_v36 }
 0x14b   :  { %3025 = vperm.xlu2 %4154, %v2923_v46   ;;  %v1087_v46 = vpop.permute.xlu2 %1086 }
 0x14c   :  { %3020 = vperm.xlu1 %4153, %v2922_v47   ;;  %3015 = vperm.xlu0 %4152, %v2921_v33   ;;  %v1092_v47 = vpop.permute.xlu0 %1091  ;;  %v4033_v33 = vld [vmem:[%s6209_s1 + $0x1a8] sm:$0xff] }
 0x14d   :  { %v4923_v42 = vpop.f32.mrf.mxu2 }
 0x14e   :  { %6218 = vst [vmem:[#allocation6_spill] sm:$0xff] %v4923_v42 }
 0x14f   :  { %v4814_v53 = vpop.f32.mrf.mxu0 }
 0x153   :  { %3040 = vperm.xlu2 %4154, %v2926_v57   ;;  %v2940_v57 = vld [vmem:[%s6212_s5 + $0xf0] sm:$0xff] }
 0x154   :  { %3035 = vperm.xlu1 %4153, %v2925_v16   ;;  %3030 = vperm.xlu0 %4152, %v2924_v58   ;;  %v2939_v16 = vld [vmem:[%s6212_s5 + $0xe8] sm:$0xff] }
 0x155   :  { %2033 = vmatmul.bf16.gmra.mxu1 %v3647_v61  ;;  %3593 = vmatmul.msk.bf16.gmra.mxu2 %vm428_vm1, %v4033_v33  ;;  %v4941_v58 = vpop.f32.mrf.mxu2  ;;  %v1102_v61 = vpop.permute.xlu2 %1101  ;;  %v1298_v33 = vadd.f32 %v4889_v26, %v4793_v45  ;;  %v4067_v45 = vld [vmem:[%s6211_s3 + $0xec] sm:$0xf0] }
 0x156   :  { %2103 = vmatmul.bf16.gmra.mxu3 %v3871_v62  ;;  %v1107_v62 = vpop.permute.xlu0 %1106 }
 0x157   :  { %v4839_v1 = vpop.f32.mrf.mxu0 }
 0x158   :  { %v1300_v36 = vadd.f32 %v1087_v46, %v4839_v1  ;;  %v2946_v1 = vld [vmem:[%s6212_s5 + $0x120] sm:$0xff]  ;;  %v2945_v46 = vld [vmem:[%s6212_s5 + $0x118] sm:$0xff] }
 0x15a   :  { %3561 = vmatmul.msk.bf16.gmra.mxu0 %vm428_vm1, %v4001_v0  ;;  %v3694_v0 = vld [vmem:[%s6211_s3 + $0xc0] sm:$0xf] }
 0x15b   :  { %3055 = vperm.xlu2 %4154, %v2929_v2   ;;  %v4063_v2 = vld [vmem:[%s6211_s3 + $0xcc] sm:$0xf0] }
 0x15c   :  { %3050 = vperm.xlu1 %4153, %v2928_v4   ;;  %3045 = vperm.xlu0 %4152, %v2927_v6   ;;  %v1112_v4 = vpop.permute.xlu1 %1111 }
 0x15e   :  { %v1122_v26 = vpop.permute.xlu0 %1121 }
 0x15f   :  { %v4860_v11 = vpop.f32.mrf.mxu0 }
 0x163   :  { %3070 = vperm.xlu2 %4154, %v2932_v15   ;;  %v2944_v15 = vld [vmem:[%s6212_s5 + $0x110] sm:$0xff] }
 0x164   :  { %3065 = vperm.xlu1 %4153, %v2931_v17   ;;  %3060 = vperm.xlu0 %4152, %v2930_v18   ;;  %v2943_v17 = vld [vmem:[%s6212_s5 + $0x108] sm:$0xff]  ;;  %v2942_v18 = vld [vmem:[%s6212_s5 + $0x100] sm:$0xff] }
 0x165   :  { %2038 = vmatmul.bf16.gmra.mxu1 %v3663_v20  ;;  %v4965_v20 = vpop.f32.mrf.mxu2 }
 0x166   :  { %2108 = vmatmul.bf16.gmra.mxu3 %v3887_v21  ;;  %6219 = vst [vmem:[#allocation7_spill] sm:$0xff] %v4965_v20  ;;  %v3695_v21 = vor.u32 %v4063_v2, %v3694_v0  ;;  %v2950_v0 = vld [vmem:[%s6212_s5 + $0x140] sm:$0xff]  ;;  %v2949_v2 = vld [vmem:[%s6212_s5 + $0x138] sm:$0xff] }
 0x167   :  { %v680_v24 = vpop.f32.mrf.mxu0 }
 0x168   :  { %v1302_v22 = vadd.f32 %v1097_v51, %v680_v24  ;;  %v4004_v24 = vld [vmem:[%s6209_s1 + $0xc0] sm:$0xff]  ;;  %v1364_v51 = vmax.f32 %v1300_v36, 0.0 }
 0x16a   :  { %3562 = vmatmul.msk.bf16.gmra.mxu0 %vm428_vm1, %v4002_v5  ;;  %v1366_v37 = vmax.f32 %v1302_v22, 0.0  ;;  %v2952_v22 = vld [vmem:[%s6212_s5 + $0x150] sm:$0xff] }
 0x16b   :  { %3085 = vperm.xlu2 %4154, %v2935_v25  }
 0x16c   :  { %3080 = vperm.xlu1 %4153, %v2934_v27   ;;  %3075 = vperm.xlu0 %4152, %v2933_v28   ;;  %v3919_v27 = vor.u32 %v4119_v10, %v3918_v8  ;;  %v1301_v28 = vadd.f32 %v1092_v47, %v4860_v11  ;;  %v1117_v11 = vpop.permute.xlu2 %1116  ;;  %v2947_v47 = vld [vmem:[%s6212_s5 + $0x128] sm:$0xff] }
 0x16f   :  { %v682_v35 = vpop.f32.mrf.mxu0 }
 0x170   :  { %v1303_v13 = vadd.f32 %v1102_v61, %v682_v35  ;;  %v12_v35 = vstv %s6213_s6  ;;  %v4123_v61 = vld [vmem:[%s6211_s3 + $0x2ac] sm:$0xf0] }
 0x171   :  { %13 = vst [vmem:[#allocation2] sm:$0x1] %v12_v35 }
 0x172   :  { %v1367_v32 = vmax.f32 %v1303_v13, 0.0 }
 0x173   :  { %3100 = vperm.xlu2 %4154, %v2938_v39  }
 0x174   :  { %3095 = vperm.xlu1 %4153, %v2937_v40   ;;  %3090 = vperm.xlu0 %4152, %v2936_v41   ;;  %v1299_v40 = vadd.f32 %v4900_v30, %v4814_v53  ;;  %v1365_v41 = vmax.f32 %v1301_v28, 0.0  ;;  %v4989_v53 = vpop.f32.mrf.mxu2  ;;  %v1132_v35 = vpop.permute.xlu2 %1131 }
 0x175   :  { %2043 = vmatmul.bf16.gmra.mxu1 %v3679_v43 }
 0x176   :  { %2113 = vmatmul.bf16.gmra.mxu3 %v3903_v44  ;;  %v1416_v44 = vpack.c.bf16 %v1367_v32, %v1366_v37  ;;  %v1363_v30 = vmax.f32 %v1299_v40, 0.0  ;;  %v3600_v32 = vld [vmem:[%s6211_s3 + $0x10] sm:$0xf0]  ;;  %v3950_v37 = vld [vmem:[%s6211_s3 + $0x2c0] sm:$0xf] }
 0x177   :  { %v685_v54 = vpop.f32.mrf.mxu0  ;;  %v2954_v40 = vld [vmem:[%s6212_s5 + $0x160] sm:$0xff] }
 0x178   :  { %v1304_v63 = vadd.f32 %v1107_v62, %v685_v54  ;;  %v1362_v54 = vmax.f32 %v1298_v33, 0.0  ;;  %v4006_v33 = vld [vmem:[%s6209_s1 + $0xd0] sm:$0xff] }
 0x17a   :  { %3563 = vmatmul.msk.bf16.gmra.mxu0 %vm428_vm1, %v4003_v52  ;;  %v1368_v5 = vmax.f32 %v1304_v63, 0.0  ;;  %v1415_v52 = vpack.c.bf16 %v1365_v41, %v1364_v51  ;;  %v1414_v63 = vpack.c.bf16 %v1363_v30, %v1362_v54  ;;  %v1137_v54 = vpop.permute.xlu0 %1136 }
 0x17b   :  { %3115 = vperm.xlu2 %4154, %v2941_v56   ;;  %v3710_v56 = vld [vmem:[%s6211_s3 + $0xe0] sm:$0xf] }
 0x17c   :  { %3110 = vperm.xlu1 %4153, %v2940_v57   ;;  %3105 = vperm.xlu0 %4152, %v2939_v16   ;;  %v3934_v16 = vld [vmem:[%s6211_s3 + $0x2a0] sm:$0xf]  ;;  %v5012_v13 = vpop.f32.mrf.mxu2 }
 0x17d   :  { %6220 = vst [vmem:[#allocation8_spill] sm:$0xff] %v5012_v13 }
 0x17f   :  { %v687_v6 = vpop.f32.mrf.mxu0 }
 0x180   :  { %v1305_v14 = vadd.f32 %v1112_v4, %v687_v6  ;;  %v2948_v4 = vld [vmem:[%s6212_s5 + $0x130] sm:$0xff]  ;;  %v3711_v6 = vor.u32 %v4067_v45, %v3710_v56  ;;  %v4041_v56 = vld [vmem:[%s6211_s3 + $0x24] sm:$0xf] }
 0x182   :  { %v1369_v25 = vmax.f32 %v1305_v14, 0.0  ;;  %v3935_v14 = vor.u32 %v4123_v61, %v3934_v16  ;;  %v4075_v16 = vld [vmem:[%s6211_s3 + $0x12c] sm:$0xf0] }
 0x183   :  { %3130 = vperm.xlu2 %4154, %v2944_v15  }
 0x184   :  { %3125 = vperm.xlu1 %4153, %v2943_v17   ;;  %3120 = vperm.xlu0 %4152, %v2942_v18   ;;  %v1417_v34 = vpack.c.bf16 %v1369_v25, %v1368_v5  ;;  %v4005_v17 = vld [vmem:[%s6209_s1 + $0xc8] sm:$0xff]  ;;  %v1127_v25 = vpop.permute.xlu1 %1126 }
 0x185   :  { %2048 = vmatmul.bf16.gmra.mxu1 %v3695_v21  ;;  %v2953_v21 = vld [vmem:[%s6212_s5 + $0x158] sm:$0xff]  ;;  %v2951_v5 = vld [vmem:[%s6212_s5 + $0x148] sm:$0xff] }
 0x186   :  { %2139 = vmatpush.bf16.msrb.mxu2 %v1417_v34  ;;  %2118 = vmatmul.bf16.gmra.mxu3 %v3919_v27  ;;  %v4037_v27 = vld [vmem:[%s6211_s3 + $0x4] sm:$0xf]  ;;  %v4071_v34 = vld [vmem:[%s6211_s3 + $0x10c] sm:$0xf0] }
 0x187   :  { %v690_v39 = vpop.f32.mrf.mxu0  ;;  %v3603_v41 = vor.u32 %v4037_v27, %v3600_v32  ;;  %v1147_v27 = vpop.permute.xlu2 %1146 }
 0x188   :  { %v1306_v43 = vadd.f32 %v1117_v11, %v690_v39  ;;  %v2956_v11 = vld [vmem:[%s6212_s5 + $0x170] sm:$0xff]  ;;  %v2955_v39 = vld [vmem:[%s6212_s5 + $0x168] sm:$0xff] }
 0x18a   :  { %3564 = vmatmul.msk.bf16.gmra.mxu0 %vm428_vm1, %v4004_v24  ;;  %2140 = vmatpush.bf16.msrb.mxu2 %v1416_v44  ;;  %v1370_v8 = vmax.f32 %v1306_v43, 0.0 }
 0x18b   :  { %3145 = vperm.xlu2 %4154, %v2947_v47  }
 0x18c   :  { %3140 = vperm.xlu1 %4153, %v2946_v1   ;;  %3135 = vperm.xlu0 %4152, %v2945_v46   ;;  %v1142_v61 = vpop.permute.xlu1 %1141 }
 0x18e   :  { %2141 = vmatpush.bf16.msrb.mxu2 %v1415_v52  ;;  %v3299_v52 = vld [vmem:[#allocation2] sm:$0x1] }
 0x18f   :  { %v692_v57 = vpop.f32.mrf.mxu0 }
 0x190   :  { %v1307_v62 = vadd.f32 %v1122_v26, %v692_v57  ;;  %v3616_v26 = vld [vmem:[%s6211_s3 + $0x30] sm:$0xf0]  ;;  %v3742_v57 = vld [vmem:[%s6211_s3 + $0x120] sm:$0xf] }
 0x192   :  { %v1371_v10 = vmax.f32 %v1307_v62, 0.0  ;;  %2142 = vmatpush.bf16.msrb.mxu2 %v1414_v63  ;;  %v3966_v63 = vld [vmem:[%s6211_s3 + $0x2e0] sm:$0xf] }
 0x193   :  { %3160 = vperm.xlu2 %4154, %v2950_v0   ;;  %v4131_v0 = vld [vmem:[%s6211_s3 + $0x2ec] sm:$0xf0] }
 0x194   :  { %3155 = vperm.xlu1 %4153, %v2949_v2   ;;  %3150 = vperm.xlu0 %4152, %v2948_v4   ;;  %v5014_v15 = vpack.c.bf16 %v1371_v10, %v1370_v8  ;;  %v3743_v8 = vor.u32 %v4075_v16, %v3742_v57  ;;  %v4009_v16 = vld [vmem:[%s6209_s1 + $0xe8] sm:$0xff] }
 0x195   :  { %2053 = vmatmul.bf16.gmra.mxu1 %v3711_v6  ;;  %v3619_v6 = vor.u32 %v4041_v56, %v3616_v26  ;;  %v4083_v56 = vld [vmem:[%s6211_s3 + $0x16c] sm:$0xf0] }
 0x196   :  { %2143 = vmatpush.bf16.msrb.mxu2 %v4788_v50  ;;  %2123 = vmatmul.bf16.gmra.mxu3 %v3935_v14  ;;  %v5031_v50 = vpop.f32.mrf.mxu2 }
 0x197   :  { %v695_v18 = vpop.f32.mrf.mxu0 }
 0x198   :  { %v1308_v28 = vadd.f32 %v1127_v25, %v695_v18  ;;  %v5101_v25 = vpop.f32.mrf.mxu3 }
 0x199   :  { %6223 = vst [vmem:[#allocation11_spill] sm:$0xff] %v5101_v25 }
 0x19a   :  { %3565 = vmatmul.msk.bf16.gmra.mxu0 %vm428_vm1, %v4005_v17  ;;  %2144 = vmatpush.bf16.msrb.mxu2 %v4744_v9  ;;  %v3726_v9 = vld [vmem:[%s6211_s3 + $0x100] sm:$0xf]  ;;  %v1372_v44 = vmax.f32 %v1308_v28, 0.0  ;;  %v3967_v17 = vor.u32 %v4131_v0, %v3966_v63  ;;  %v4045_v28 = vld [vmem:[%s6211_s3 + $0x44] sm:$0xf] }
 0x19b   :  { %3175 = vperm.xlu2 %4154, %v2953_v21   ;;  %v3727_v43 = vor.u32 %v4071_v34, %v3726_v9  ;;  %v4007_v21 = vld [vmem:[%s6209_s1 + $0xd8] sm:$0xff]  ;;  %v3632_v9 = vld [vmem:[%s6211_s3 + $0x50] sm:$0xf0]  ;;  %v3758_v34 = vld [vmem:[%s6211_s3 + $0x140] sm:$0xf] }
 0x19c   :  { %3170 = vperm.xlu1 %4153, %v2952_v22   ;;  %3165 = vperm.xlu0 %4152, %v2951_v5  }
 0x19e   :  { %2145 = vmatpush.bf16.msrb.mxu2 %v4700_v55  ;;  %v4127_v55 = vld [vmem:[%s6211_s3 + $0x2cc] sm:$0xf0]  ;;  %v5067_v51 = vpop.f32.mrf.mxu2 }
 0x19f   :  { %v697_v36 = vpop.f32.mrf.mxu0  ;;  %v3951_v1 = vor.u32 %v4127_v55, %v3950_v37  ;;  %6221 = vst [vmem:[#allocation9_spill] sm:$0xff] %v5067_v51 }
 0x1a0   :  { %v1309_v24 = vadd.f32 %v1132_v35, %v697_v36  ;;  %v4079_v35 = vld [vmem:[%s6211_s3 + $0x14c] sm:$0xf0]  ;;  %v1152_v36 = vpop.permute.xlu0 %1151 }
 0x1a2   :  { %v1373_v47 = vmax.f32 %v1309_v24, 0.0  ;;  %2146 = vmatpush.bf16.msrb.mxu2 %v4648_v31  ;;  %v2957_v31 = vld [vmem:[%s6212_s5 + $0x178] sm:$0xff]  ;;  %v3635_v24 = vor.u32 %v4045_v28, %v3632_v9 }
 0x1a3   :  { %3190 = vperm.xlu2 %4154, %v2956_v11   ;;  %v3759_v11 = vor.u32 %v4079_v35, %v3758_v34  ;;  %v1157_v34 = vpop.permute.xlu1 %1156  ;;  %v1162_v35 = vpop.permute.xlu2 %1161 }
 0x1a4   :  { %3185 = vperm.xlu1 %4153, %v2955_v39   ;;  %3180 = vperm.xlu0 %4152, %v2954_v40   ;;  %v5062_v46 = vpack.c.bf16 %v1373_v47, %v1372_v44  ;;  %v4008_v47 = vld [vmem:[%s6209_s1 + $0xe0] sm:$0xff] }
 0x1a5   :  { %2147 = vmatmul.bf16.vlgmr.msrb.gmra.mxu2 %v3603_v41  ;;  %2058 = vmatmul.bf16.gmra.mxu1 %v3727_v43  ;;  %v5117_v43 = vpop.f32.mrf.mxu3 }
 0x1a6   :  { %2128 = vmatmul.bf16.gmra.mxu3 %v3951_v1  ;;  %v5091_v4 = vpop.f32.mrf.mxu2  ;;  %6224 = vst [vmem:[#allocation12_spill] sm:$0xff] %v5117_v43 }
 0x1a7   :  { %v700_v30 = vpop.f32.mrf.mxu0 }
 0x1a8   :  { %v1310_v45 = vadd.f32 %v1137_v54, %v700_v30  ;;  %v3648_v30 = vld [vmem:[%s6211_s3 + $0x70] sm:$0xf0]  ;;  %v3774_v54 = vld [vmem:[%s6211_s3 + $0x160] sm:$0xf] }
 0x1a9   :  { %v3775_v57 = vor.u32 %v4083_v56, %v3774_v54  ;;  %v1167_v56 = vpop.permute.xlu0 %1166 }
 0x1aa   :  { %3566 = vmatmul.msk.bf16.gmra.mxu0 %vm428_vm1, %v4006_v33  ;;  %v1374_v10 = vmax.f32 %v1310_v45, 0.0  ;;  %v4049_v33 = vld [vmem:[%s6211_s3 + $0x64] sm:$0xf] }
 0x1ab   :  { %v3651_v26 = vor.u32 %v4049_v33, %v3648_v30  ;;  %v1172_v54 = vpop.permute.xlu1 %1171 }
 0x1ac   :  { %3302 = vperm.xlu1 %4153, %v3299_v52   ;;  %3195 = vperm.xlu0 %4152, %v2957_v31  }
 0x1ad   :  { %v5135_v31 = vpop.f32.mrf.mxu3 }
 0x1ae   :  { %v5099_v5 = vpop.f32.mrf.mxu2  ;;  %6226 = vst [vmem:[#allocation14_spill] sm:$0xff] %v5135_v31 }
 0x1af   :  { %v702_v62 = vpop.f32.mrf.mxu0  ;;  %6222 = vst [vmem:[#allocation10_spill] sm:$0xff] %v5099_v5  ;;  %v4018_v5 = vld [vmem:[%s6209_s1 + $0x130] sm:$0xff] }
 0x1b0   :  { %v1311_v2 = vadd.f32 %v1142_v61, %v702_v62  ;;  %v5148_v62 = vpop.f32.mrf.mxu1 }
 0x1b2   :  { %v1375_v14 = vmax.f32 %v1311_v2, 0.0  ;;  %v4053_v2 = vld [vmem:[%s6211_s3 + $0x84] sm:$0xf] }
 0x1b4   :  { %v5093_v18 = vpack.c.bf16 %v1375_v14, %v1374_v10  ;;  %v4087_v10 = vld [vmem:[%s6211_s3 + $0x18c] sm:$0xf0] }
 0x1b5   :  { %2152 = vmatmul.bf16.gmra.mxu2 %v3619_v6  ;;  %2063 = vmatmul.bf16.gmra.mxu1 %v3743_v8  ;;  %v5152_v0 = vpop.f32.mrf.mxu3  ;;  %v3664_v6 = vld [vmem:[%s6211_s3 + $0x90] sm:$0xf0]  ;;  %v3790_v8 = vld [vmem:[%s6211_s3 + $0x180] sm:$0xf] }
 0x1b6   :  { %2133 = vmatmul.bf16.gmra.mxu3 %v3967_v17  ;;  %v5115_v41 = vpop.f32.mrf.mxu2  ;;  %6228 = vst [vmem:[#allocation16_spill] sm:$0xff] %v5152_v0  ;;  %v3667_v17 = vor.u32 %v4053_v2, %v3664_v6 }
 0x1b7   :  { %v705_v22 = vpop.f32.mrf.mxu0 }
 0x1b8   :  { %v1312_v32 = vadd.f32 %v1147_v27, %v705_v22  ;;  %v3791_v22 = vor.u32 %v4087_v10, %v3790_v8  ;;  %v1187_v10 = vpop.permute.xlu1 %1186 }
 0x1ba   :  { %3567 = vmatmul.msk.bf16.gmra.mxu0 %vm428_vm1, %v4007_v21  ;;  %v1376_v39 = vmax.f32 %v1312_v32, 0.0  ;;  %v5167_v21 = vpop.f32.mrf.mxu1  ;;  %v4010_v32 = vld [vmem:[%s6209_s1 + $0xf0] sm:$0xff] }
 0x1bd   :  { %v5171_v28 = vpop.f32.mrf.mxu3 }
 0x1be   :  { %v5133_v52 = vpop.f32.mrf.mxu2 }
 0x1bf   :  { %v707_v37 = vpop.f32.mrf.mxu0  ;;  %6225 = vst [vmem:[#allocation13_spill] sm:$0xff] %v5133_v52 }
 0x1c0   :  { %v1313_v55 = vadd.f32 %v1152_v36, %v707_v37 }
 0x1c2   :  { %v1377_v40 = vmax.f32 %v1313_v55, 0.0  ;;  %v5177_v36 = vpop.f32.mrf.mxu1 }
 0x1c4   :  { %v5119_v44 = vpack.c.bf16 %v1377_v40, %v1376_v39  ;;  %v3806_v39 = vld [vmem:[%s6211_s3 + $0x1a0] sm:$0xf]  ;;  %v4091_v40 = vld [vmem:[%s6211_s3 + $0x1ac] sm:$0xf0] }
 0x1c5   :  { %2157 = vmatmul.bf16.gmra.mxu2 %v3635_v24  ;;  %2068 = vmatmul.bf16.gmra.mxu1 %v3759_v11  ;;  %v5181_v55 = vpop.f32.mrf.mxu3  ;;  %v4057_v24 = vld [vmem:[%s6211_s3 + $0xa4] sm:$0xf]  ;;  %v3680_v11 = vld [vmem:[%s6211_s3 + $0xb0] sm:$0xf0]  ;;  %v3807_v30 = vor.u32 %v4091_v40, %v3806_v39 }
 0x1c6   :  { %v5150_v63 = vpop.f32.mrf.mxu2  ;;  %6231 = vst [vmem:[#allocation19_spill] sm:$0xff] %v5181_v55  ;;  %v3683_v33 = vor.u32 %v4057_v24, %v3680_v11  ;;  %v3696_v24 = vld [vmem:[%s6211_s3 + $0xd0] sm:$0xf0] }
 0x1c7   :  { %v5124_v1 = vpop.f32.mrf.mxu0  ;;  %6227 = vst [vmem:[#allocation15_spill] sm:$0xff] %v5150_v63 }
 0x1ca   :  { %3568 = vmatmul.msk.bf16.gmra.mxu0 %vm428_vm1, %v4008_v47 }
 0x1cd   :  { %v5202_v6 = vpop.f32.mrf.mxu3 }
 0x1ce   :  { %v5169_v27 = vpop.f32.mrf.mxu2 }
 0x1cf   :  { %v5143_v45 = vpop.f32.mrf.mxu0  ;;  %6229 = vst [vmem:[#allocation17_spill] sm:$0xff] %v5169_v27 }
 0x1d5   :  { %2162 = vmatmul.bf16.gmra.mxu2 %v3651_v26  ;;  %2073 = vmatmul.bf16.gmra.mxu1 %v3775_v57  ;;  %v1177_v26 = vpop.permute.xlu2 %1176  ;;  %v5195_v57 = vpop.f32.mrf.mxu1 }
 0x1d6   :  { %v5179_v37 = vpop.f32.mrf.mxu2  ;;  %v5213_v43 = vpop.f32.mrf.mxu3 }
 0x1d7   :  { %v715_v61 = vpop.f32.mrf.mxu0  ;;  %6230 = vst [vmem:[#allocation18_spill] sm:$0xff] %v5179_v37 }
 0x1d8   :  { %6234 = vst [vmem:[#allocation22_spill] sm:$0xff] %v5213_v43  ;;  %v1316_v27 = vadd.f32 %v1167_v56, %v715_v61 }
 0x1da   :  { %3569 = vmatmul.msk.bf16.gmra.mxu0 %vm428_vm1, %v4009_v16  ;;  %v4011_v16 = vld [vmem:[%s6209_s1 + $0xf8] sm:$0xff] }
 0x1dd   :  { %v1192_v11 = vpop.permute.xlu2 %1191 }
 0x1de   :  { %v5200_v2 = vpop.f32.mrf.mxu2  ;;  %v5222_v61 = vpop.f32.mrf.mxu3 }
 0x1df   :  { %v717_v14 = vpop.f32.mrf.mxu0  ;;  %6232 = vst [vmem:[#allocation20_spill] sm:$0xff] %v5200_v2 }
 0x1e5   :  { %2167 = vmatmul.bf16.gmra.mxu2 %v3667_v17  ;;  %2078 = vmatmul.bf16.gmra.mxu1 %v3791_v22  ;;  %v1182_v17 = vpop.permute.xlu0 %1181 }
 0x1e7   :  { %v720_v9 = vpop.f32.mrf.mxu0 }
 0x1e8   :  { %v1318_v0 = vadd.f32 %v1177_v26, %v720_v9  ;;  %v1314_v26 = vadd.f32 %v1157_v34, %v5124_v1  ;;  %v1202_v1 = vpop.permute.xlu1 %1201 }
 0x1ea   :  { %3570 = vmatmul.msk.bf16.gmra.mxu0 %vm428_vm1, %v4010_v32  ;;  %v4061_v32 = vld [vmem:[%s6211_s3 + $0xc4] sm:$0xf]  ;;  %v1382_v37 = vmax.f32 %v1318_v0, 0.0  ;;  %v1378_v56 = vmax.f32 %v1314_v26, 0.0 }
 0x1ef   :  { %v722_v47 = vpop.f32.mrf.mxu0 }
 0x1f0   :  { %v1319_v40 = vadd.f32 %v1182_v17, %v722_v47  ;;  %v4012_v47 = vld [vmem:[%s6209_s1 + $0x100] sm:$0xff]  ;;  %v1197_v17 = vpop.permute.xlu0 %1196 }
 0x1f2   :  { %v1383_v25 = vmax.f32 %v1319_v40, 0.0  ;;  %v5233_v40 = vpop.f32.mrf.mxu3 }
 0x1f3   :  { %6237 = vst [vmem:[#allocation25_spill] sm:$0xff] %v5233_v40 }
 0x1f4   :  { %v1424_v9 = vpack.c.bf16 %v1383_v25, %v1382_v37  ;;  %v3712_v25 = vld [vmem:[%s6211_s3 + $0xf0] sm:$0xf0] }
 0x1f5   :  { %2172 = vmatmul.bf16.gmra.mxu2 %v3683_v33  ;;  %2083 = vmatmul.bf16.gmra.mxu1 %v3807_v30  ;;  %v5211_v30 = vpop.f32.mrf.mxu2 }
 0x1f6   :  { %6233 = vst [vmem:[#allocation21_spill] sm:$0xff] %v5211_v30 }
 0x1f7   :  { %v725_v8 = vpop.f32.mrf.mxu0 }
 0x1f8   :  { %v1320_v22 = vadd.f32 %v1187_v10, %v725_v8  ;;  %v1317_v10 = vadd.f32 %v1172_v54, %v717_v14  ;;  %v1380_v14 = vmax.f32 %v1316_v27, 0.0 }
 0x1fa   :  { %3571 = vmatmul.msk.bf16.gmra.mxu0 %vm428_vm1, %v4011_v16  ;;  %v3699_v16 = vor.u32 %v4061_v32, %v3696_v24  ;;  %v1384_v31 = vmax.f32 %v1320_v22, 0.0  ;;  %v1381_v30 = vmax.f32 %v1317_v10, 0.0  ;;  %v1207_v10 = vpop.permute.xlu2 %1206 }
 0x1fc   :  { %v1423_v54 = vpack.c.bf16 %v1381_v30, %v1380_v14  ;;  %v4013_v30 = vld [vmem:[%s6209_s1 + $0x108] sm:$0xff] }
 0x1ff   :  { %v727_v39 = vpop.f32.mrf.mxu0 }
 0x200   :  { %v1321_v33 = vadd.f32 %v1192_v11, %v727_v39  ;;  %v1315_v39 = vadd.f32 %v1162_v35, %v5143_v45  ;;  %v4065_v45 = vld [vmem:[%s6211_s3 + $0xe4] sm:$0xf] }
 0x201   :  { %v3715_v37 = vor.u32 %v4065_v45, %v3712_v25 }
 0x202   :  { %v1385_v8 = vmax.f32 %v1321_v33, 0.0  ;;  %v1379_v0 = vmax.f32 %v1315_v39, 0.0  ;;  %v4040_v39 = vld [vmem:[%s6211_s3 + $0x14] sm:$0xf0] }
 0x204   :  { %v1425_v2 = vpack.c.bf16 %v1385_v8, %v1384_v31  ;;  %v5220_v31 = vpop.f32.mrf.mxu2  ;;  %v1422_v35 = vpack.c.bf16 %v1379_v0, %v1378_v56  ;;  %v5241_v8 = vpop.f32.mrf.mxu1 }
 0x205   :  { %2177 = vmatmul.bf16.gmra.mxu2 %v3699_v16  ;;  %6235 = vst [vmem:[#allocation23_spill] sm:$0xff] %v5220_v31  ;;  %v4016_v31 = vld [vmem:[%s6209_s1 + $0x120] sm:$0xff] }
 0x206   :  { %2268 = vmatpush.bf16.msra.mxu3 %v1425_v2 }
 0x207   :  { %v730_v11 = vpop.f32.mrf.mxu0 }
 0x208   :  { %v1322_v32 = vadd.f32 %v1197_v17, %v730_v11  ;;  %v3728_v11 = vld [vmem:[%s6211_s3 + $0x110] sm:$0xf0] }
 0x20a   :  { %2269 = vmatpush.bf16.msra.mxu3 %v1424_v9  ;;  %3572 = vmatmul.msk.bf16.gmra.mxu0 %vm428_vm1, %v4012_v47  ;;  %v1386_v2 = vmax.f32 %v1322_v32, 0.0  ;;  %v4069_v47 = vld [vmem:[%s6211_s3 + $0x104] sm:$0xf]  ;;  %v5260_v32 = vpop.f32.mrf.mxu3  ;;  %v1212_v9 = vpop.permute.xlu0 %1211 }
 0x20c   :  { %v5231_v24 = vpop.f32.mrf.mxu2  ;;  %v5263_v45 = vpop.f32.mrf.mxu1 }
 0x20d   :  { %6236 = vst [vmem:[#allocation24_spill] sm:$0xff] %v5231_v24 }
 0x20e   :  { %2270 = vmatpush.bf16.msra.mxu3 %v1423_v54  ;;  %6239 = vst [vmem:[#allocation27_spill] sm:$0xff] %v5263_v45 }
 0x20f   :  { %v732_v27 = vpop.f32.mrf.mxu0 }
 0x210   :  { %v1323_v34 = vadd.f32 %v1202_v1, %v732_v27  ;;  %v4014_v1 = vld [vmem:[%s6209_s1 + $0x110] sm:$0xff] }
 0x212   :  { %v1387_v22 = vmax.f32 %v1323_v34, 0.0  ;;  %2271 = vmatpush.bf16.msra.mxu3 %v1422_v35  ;;  %v5272_v35 = vpop.f32.mrf.mxu3 }
 0x213   :  { %6240 = vst [vmem:[#allocation28_spill] sm:$0xff] %v5272_v35 }
 0x214   :  { %v5235_v33 = vpack.c.bf16 %v1387_v22, %v1386_v2  ;;  %v5278_v2 = vpop.f32.mrf.mxu1 }
 0x215   :  { %2182 = vmatmul.bf16.gmra.mxu2 %v3715_v37  ;;  %v1217_v37 = vpop.permute.xlu1 %1216  ;;  %6241 = vst [vmem:[#allocation29_spill] sm:$0xff] %v5278_v2 }
 0x216   :  { %2272 = vmatpush.bf16.msra.mxu3 %v5119_v44  ;;  %v5249_v44 = vpop.f32.mrf.mxu2 }
 0x217   :  { %v735_v16 = vpop.f32.mrf.mxu0  ;;  %6238 = vst [vmem:[#allocation26_spill] sm:$0xff] %v5249_v44 }
 0x218   :  { %v1324_v17 = vadd.f32 %v1207_v10, %v735_v16  ;;  %v3622_v16 = vld [vmem:[%s6211_s3 + $0x28] sm:$0xf]  ;;  %v4044_v10 = vld [vmem:[%s6211_s3 + $0x34] sm:$0xf0] }
 0x21a   :  { %2273 = vmatpush.bf16.msra.mxu3 %v5093_v18  ;;  %3573 = vmatmul.msk.bf16.gmra.mxu0 %vm428_vm1, %v4013_v30  ;;  %v3606_v18 = vld [vmem:[%s6211_s3 + $0x8] sm:$0xf]  ;;  %v1388_v54 = vmax.f32 %v1324_v17, 0.0  ;;  %v3744_v30 = vld [vmem:[%s6211_s3 + $0x130] sm:$0xf0] }
 0x21b   :  { %v3607_v0 = vor.u32 %v4040_v39, %v3606_v18 }
 0x21e   :  { %2274 = vmatpush.bf16.msra.mxu3 %v5062_v46  ;;  %v3731_v46 = vor.u32 %v4069_v47, %v3728_v11  ;;  %v1222_v47 = vpop.permute.xlu2 %1221 }
 0x21f   :  { %v737_v26 = vpop.f32.mrf.mxu0 }
 0x220   :  { %v1325_v14 = vadd.f32 %v1212_v9, %v737_v26  ;;  %v3623_v9 = vor.u32 %v4044_v10, %v3622_v16  ;;  %v3760_v16 = vld [vmem:[%s6211_s3 + $0x150] sm:$0xf0]  ;;  %v3638_v10 = vld [vmem:[%s6211_s3 + $0x48] sm:$0xf] }
 0x222   :  { %v1389_v56 = vmax.f32 %v1325_v14, 0.0  ;;  %2275 = vmatpush.bf16.msra.mxu3 %v5014_v15  ;;  %v4073_v15 = vld [vmem:[%s6211_s3 + $0x124] sm:$0xf] }
 0x223   :  { %v3747_v39 = vor.u32 %v4073_v15, %v3744_v30  ;;  %v1227_v15 = vpop.permute.xlu0 %1226 }
 0x224   :  { %v5265_v25 = vpack.c.bf16 %v1389_v56, %v1388_v54  ;;  %v4015_v54 = vld [vmem:[%s6209_s1 + $0x118] sm:$0xff] }
 0x225   :  { %2187 = vmatmul.bf16.gmra.mxu2 %v3731_v46  ;;  %2276 = vmatmul.bf16.vlgmr.msra.gmra.mxu3 %v3607_v0  ;;  %v5291_v46 = vpop.f32.mrf.mxu3 }
 0x226   :  { %6242 = vst [vmem:[#allocation30_spill] sm:$0xff] %v5291_v46  ;;  %v1237_v55 = vpop.permute.xlu2 %1236 }
 0x227   :  { %v740_v27 = vpop.f32.mrf.mxu0 }
 0x228   :  { %v5270_v34 = vpop.f32.mrf.mxu2  ;;  %v1326_v22 = vadd.f32 %v1217_v37, %v740_v27 }
 0x22a   :  { %3574 = vmatmul.msk.bf16.gmra.mxu0 %vm428_vm1, %v4014_v1  ;;  %v1390_v26 = vmax.f32 %v1326_v22, 0.0  ;;  %v5298_v1 = vpop.f32.mrf.mxu1  ;;  %v4077_v22 = vld [vmem:[%s6211_s3 + $0x144] sm:$0xf] }
 0x22b   :  { %6243 = vst [vmem:[#allocation31_spill] sm:$0xff] %v5298_v1  ;;  %v1242_v20 = vpop.permute.xlu0 %1241 }
 0x22d   :  { %v5303_v37 = vpop.f32.mrf.mxu3 }
 0x22e   :  { %6244 = vst [vmem:[#allocation32_spill] sm:$0xff] %v5303_v37 }
 0x22f   :  { %v742_v17 = vpop.f32.mrf.mxu0 }
 0x230   :  { %v1327_v11 = vadd.f32 %v1222_v47, %v742_v17  ;;  %v5289_v18 = vpop.f32.mrf.mxu2  ;;  %v4048_v47 = vld [vmem:[%s6211_s3 + $0x54] sm:$0xf0]  ;;  %v1232_v17 = vpop.permute.xlu1 %1231 }
 0x232   :  { %v1391_v14 = vmax.f32 %v1327_v11, 0.0 }
 0x234   :  { %v5293_v0 = vpack.c.bf16 %v1391_v14, %v1390_v26  ;;  %v3763_v26 = vor.u32 %v4077_v22, %v3760_v16  ;;  %v3639_v14 = vor.u32 %v4048_v47, %v3638_v10  ;;  %v3776_v16 = vld [vmem:[%s6211_s3 + $0x170] sm:$0xf0]  ;;  %v3654_v10 = vld [vmem:[%s6211_s3 + $0x68] sm:$0xf]  ;;  %v4052_v47 = vld [vmem:[%s6211_s3 + $0x74] sm:$0xf0] }
 0x235   :  { %2192 = vmatmul.bf16.gmra.mxu2 %v3747_v39  ;;  %2281 = vmatmul.bf16.gmra.mxu3 %v3623_v9  ;;  %v5323_v24 = vpop.f32.mrf.mxu3 }
 0x236   :  { %6246 = vst [vmem:[#allocation34_spill] sm:$0xff] %v5323_v24 }
 0x237   :  { %v745_v56 = vpop.f32.mrf.mxu0 }
 0x238   :  { %v5300_v27 = vpop.f32.mrf.mxu2  ;;  %v1328_v30 = vadd.f32 %v1227_v15, %v745_v56 }
 0x23a   :  { %3575 = vmatmul.msk.bf16.gmra.mxu0 %vm428_vm1, %v4015_v54  ;;  %v5319_v54 = vpop.f32.mrf.mxu1  ;;  %v1392_v56 = vmax.f32 %v1328_v30, 0.0  ;;  %v4081_v30 = vld [vmem:[%s6211_s3 + $0x164] sm:$0xf] }
 0x23b   :  { %6245 = vst [vmem:[#allocation33_spill] sm:$0xff] %v5319_v54 }
 0x23f   :  { %v747_v11 = vpop.f32.mrf.mxu0 }
 0x240   :  { %v1329_v39 = vadd.f32 %v1232_v17, %v747_v11  ;;  %v5317_v9 = vpop.f32.mrf.mxu2 }
 0x242   :  { %v1393_v15 = vmax.f32 %v1329_v39, 0.0  ;;  %v5333_v22 = vpop.f32.mrf.mxu1  ;;  %v5351_v39 = vpop.f32.mrf.mxu3 }
 0x243   :  { %6248 = vst [vmem:[#allocation36_spill] sm:$0xff] %v5333_v22  ;;  %v1257_v22 = vpop.permute.xlu0 %1256 }
 0x244   :  { %v5321_v44 = vpack.c.bf16 %v1393_v15, %v1392_v56  ;;  %6250 = vst [vmem:[#allocation38_spill] sm:$0xff] %v5351_v39  ;;  %v4017_v15 = vld [vmem:[%s6209_s1 + $0x128] sm:$0xff] }
 0x245   :  { %2197 = vmatmul.bf16.gmra.mxu2 %v3763_v26  ;;  %2286 = vmatmul.bf16.gmra.mxu3 %v3639_v14  ;;  %v3779_v26 = vor.u32 %v4081_v30, %v3776_v16  ;;  %v3655_v14 = vor.u32 %v4052_v47, %v3654_v10  ;;  %v4085_v30 = vld [vmem:[%s6211_s3 + $0x184] sm:$0xf]  ;;  %v3792_v16 = vld [vmem:[%s6211_s3 + $0x190] sm:$0xf0]  ;;  %v3670_v10 = vld [vmem:[%s6211_s3 + $0x88] sm:$0xf] }
 0x246   :  { %v4056_v47 = vld [vmem:[%s6211_s3 + $0x94] sm:$0xf0] }
 0x247   :  { %v5328_v37 = vpop.f32.mrf.mxu0  ;;  %v3671_v39 = vor.u32 %v4056_v47, %v3670_v10 }
 0x248   :  { %v5330_v17 = vpop.f32.mrf.mxu2 }
 0x249   :  { %6247 = vst [vmem:[#allocation35_spill] sm:$0xff] %v5330_v17 }
 0x24a   :  { %3576 = vmatmul.msk.bf16.gmra.mxu0 %vm428_vm1, %v4016_v31  ;;  %v5353_v56 = vpop.f32.mrf.mxu1  ;;  %v5362_v52 = vpop.f32.mrf.mxu3 }
 0x24b   :  { %6251 = vst [vmem:[#allocation39_spill] sm:$0xff] %v5353_v56  ;;  %v1247_v56 = vpop.permute.xlu1 %1246 }
 0x24c   :  { %6253 = vst [vmem:[#allocation41_spill] sm:$0xff] %v5362_v52  ;;  %v3795_v52 = vor.u32 %v4085_v30, %v3792_v16  ;;  %v4089_v30 = vld [vmem:[%s6211_s3 + $0x1a4] sm:$0xf]  ;;  %v4060_v16 = vld [vmem:[%s6211_s3 + $0xb4] sm:$0xf0] }
 0x24f   :  { %v5347_v11 = vpop.f32.mrf.mxu0 }
 0x250   :  { %v5349_v31 = vpop.f32.mrf.mxu2 }
 0x251   :  { %6249 = vst [vmem:[#allocation37_spill] sm:$0xff] %v5349_v31 }
 0x252   :  { %v5381_v40 = vpop.f32.mrf.mxu3 }
 0x253   :  { %6256 = vst [vmem:[#allocation44_spill] sm:$0xff] %v5381_v40 }
 0x255   :  { %2202 = vmatmul.bf16.gmra.mxu2 %v3779_v26  ;;  %2291 = vmatmul.bf16.gmra.mxu3 %v3655_v14  ;;  %v5377_v14 = vpop.f32.mrf.mxu1 }
 0x256   :  { %6254 = vst [vmem:[#allocation42_spill] sm:$0xff] %v5377_v14  ;;  %v1252_v14 = vpop.permute.xlu2 %1251 }
 0x257   :  { %v5358_v24 = vpop.f32.mrf.mxu0 }
 0x258   :  { %v5360_v35 = vpop.f32.mrf.mxu2  ;;  %v1332_v17 = vadd.f32 %v1247_v56, %v5358_v24 }
 0x259   :  { %6252 = vst [vmem:[#allocation40_spill] sm:$0xff] %v5360_v35 }
 0x25a   :  { %3577 = vmatmul.msk.bf16.gmra.mxu0 %vm428_vm1, %v4017_v15  ;;  %v5403_v10 = vpop.f32.mrf.mxu3 }
 0x25b   :  { %6259 = vst [vmem:[#allocation47_spill] sm:$0xff] %v5403_v10  ;;  %v4093_v10 = vld [vmem:[%s6211_s3 + $0x1c4] sm:$0xf] }
 0x25d   :  { %v5388_v13 = vpop.f32.mrf.mxu1 }
 0x25e   :  { %6258 = vst [vmem:[#allocation46_spill] sm:$0xff] %v5388_v13 }
 0x25f   :  { %v757_v26 = vpop.f32.mrf.mxu0 }
 0x260   :  { %v5379_v15 = vpop.f32.mrf.mxu2  ;;  %v1333_v46 = vadd.f32 %v1252_v14, %v757_v26  ;;  %v1396_v26 = vmax.f32 %v1332_v17, 0.0 }
 0x261   :  { %6255 = vst [vmem:[#allocation43_spill] sm:$0xff] %v5379_v15  ;;  %v1267_v15 = vpop.permute.xlu2 %1266 }
 0x262   :  { %v5411_v54 = vpop.f32.mrf.mxu3 }
 0x263   :  { %6263 = vst [vmem:[#allocation51_spill] sm:$0xff] %v5411_v54 }
 0x265   :  { %2207 = vmatmul.bf16.gmra.mxu2 %v3795_v52  ;;  %2296 = vmatmul.bf16.gmra.mxu3 %v3671_v39  ;;  %v3808_v52 = vld [vmem:[%s6211_s3 + $0x1b0] sm:$0xf0]  ;;  %v3686_v39 = vld [vmem:[%s6211_s3 + $0xa8] sm:$0xf]  ;;  %v5407_v42 = vpop.f32.mrf.mxu1 }
 0x266   :  { %v3811_v40 = vor.u32 %v4089_v30, %v3808_v52  ;;  %v3687_v13 = vor.u32 %v4060_v16, %v3686_v39  ;;  %6261 = vst [vmem:[#allocation49_spill] sm:$0xff] %v5407_v42  ;;  %v1262_v30 = vpop.permute.xlu1 %1261  ;;  %v3824_v39 = vld [vmem:[%s6211_s3 + $0x1d0] sm:$0xf0]  ;;  %v1272_v16 = vpop.permute.xlu0 %1271 }
 0x267   :  { %v760_v43 = vpop.f32.mrf.mxu0  ;;  %v3827_v35 = vor.u32 %v4093_v10, %v3824_v39  ;;  %v1331_v10 = vadd.f32 %v1242_v20, %v5347_v11  ;;  %v4097_v20 = vld [vmem:[%s6211_s3 + $0x1e4] sm:$0xf] }
 0x268   :  { %v5386_v51 = vpop.f32.mrf.mxu2 }
 0x269   :  { %6257 = vst [vmem:[#allocation45_spill] sm:$0xff] %v5386_v51  ;;  %v5438_v24 = vpop.permute.xlu2 %2581 }
 0x26a   :  { %3578 = vmatmul.msk.bf16.gmra.mxu0 %vm428_vm1, %v4018_v5  ;;  %v5427_v31 = vpop.f32.mrf.mxu3 }
 0x26b   :  { %6265 = vst [vmem:[#allocation53_spill] sm:$0xff] %v5427_v31 }
 0x26f   :  { %v762_v5 = vpop.f32.mrf.mxu0 }
 0x270   :  { %v5405_v47 = vpop.f32.mrf.mxu2  ;;  %v1335_v42 = vadd.f32 %v1262_v30, %v762_v5  ;;  %v1397_v5 = vmax.f32 %v1333_v46, 0.0 }
 0x271   :  { %6260 = vst [vmem:[#allocation48_spill] sm:$0xff] %v5405_v47  ;;  %v2054_v47 = vpop.f32.mrf.mxu1  ;;  %v5460_v30 = vpop.permute.xlu2 %2596 }
 0x272   :  { %v1399_v63 = vmax.f32 %v1335_v42, 0.0  ;;  %v1431_v42 = vpack.c.bf16 %v1397_v5, %v1396_v26 }
 0x275   :  { %2212 = vmatmul.bf16.gmra.mxu2 %v3811_v40  ;;  %2301 = vmatmul.bf16.gmra.mxu3 %v3687_v13  ;;  %v3702_v13 = vld [vmem:[%s6211_s3 + $0xc8] sm:$0xf]  ;;  %v4064_v40 = vld [vmem:[%s6211_s3 + $0xd4] sm:$0xf0] }
 0x277   :  { %v765_v51 = vpop.f32.mrf.mxu0 }
 0x278   :  { %v5409_v19 = vpop.f32.mrf.mxu2  ;;  %v1336_v52 = vadd.f32 %v1267_v15, %v765_v51  ;;  %v3703_v51 = vor.u32 %v4064_v40, %v3702_v13  ;;  %v1334_v15 = vadd.f32 %v1257_v22, %v760_v43  ;;  %v1330_v22 = vadd.f32 %v1237_v55, %v5328_v37  ;;  %v4068_v55 = vld [vmem:[%s6211_s3 + $0xf4] sm:$0xf0]  ;;  %v5463_v13 = vpop.permute.xlu0 %2586 }
 0x279   :  { %6262 = vst [vmem:[#allocation50_spill] sm:$0xff] %v5409_v19 }
 0x27a   :  { %v1400_v59 = vmax.f32 %v1336_v52, 0.0  ;;  %v1398_v3 = vmax.f32 %v1334_v15, 0.0  ;;  %v2055_v52 = vadd.f32 %v2054_v47, %v4665_v38  ;;  %v4101_v15 = vld [vmem:[%s6211_s3 + $0x204] sm:$0xf]  ;;  %v3856_v38 = vld [vmem:[%s6211_s3 + $0x210] sm:$0xf0] }
 0x27b   :  { %v3734_v47 = vld [vmem:[%s6211_s3 + $0x108] sm:$0xf]  ;;  %v3859_v26 = vor.u32 %v4101_v15, %v3856_v38  ;;  %v4105_v38 = vld [vmem:[%s6211_s3 + $0x224] sm:$0xf] }
 0x27f   :  { %v767_v54 = vpop.f32.mrf.mxu0 }
 0x280   :  { %v1337_v19 = vadd.f32 %v1272_v16, %v767_v54  ;;  %v5425_v1 = vpop.f32.mrf.mxu2  ;;  %v5430_v54 = vpop.f32.mrf.mxu1 }
 0x281   :  { %6264 = vst [vmem:[#allocation52_spill] sm:$0xff] %v5425_v1 }
 0x282   :  { %v1401_v2 = vmax.f32 %v1337_v19, 0.0  ;;  %v1432_v19 = vpack.c.bf16 %v1399_v63, %v1398_v3  ;;  %v3840_v3 = vld [vmem:[%s6211_s3 + $0x1f0] sm:$0xf0]  ;;  %v3718_v63 = vld [vmem:[%s6211_s3 + $0xe8] sm:$0xf] }
 0x283   :  { %v3843_v17 = vor.u32 %v4097_v20, %v3840_v3  ;;  %v3719_v11 = vor.u32 %v4068_v55, %v3718_v63 }
 0x284   :  { %v1433_v45 = vpack.c.bf16 %v1401_v2, %v1400_v59  ;;  %v1395_v59 = vmax.f32 %v1331_v10, 0.0  ;;  %v5452_v2 = vpop.permute.xlu1 %2576  ;;  %v4038_v10 = vld [vmem:[%s6211_s3 + $0xc] sm:$0xf] }
 0x285   :  { %2217 = vmatmul.bf16.gmra.mxu2 %v3827_v35  ;;  %2306 = vmatmul.bf16.gmra.mxu3 %v3703_v51  ;;  %v5436_v35 = vpop.f32.mrf.mxu3 }
 0x286   :  { %2397 = vmatpush.bf16.msrb.mxu1 %v1433_v45  ;;  %4143 = vmatpush.bf16.msrb.mxu3 %v1433_v45  ;;  %6267 = vst [vmem:[#allocation55_spill] sm:$0xff] %v5436_v35  ;;  %v1394_v45 = vmax.f32 %v1330_v22, 0.0  ;;  %v5497_v22 = vpop.permute.xlu2 %2611 }
 0x288   :  { %v5433_v43 = vpop.f32.mrf.mxu2  ;;  %v1430_v37 = vpack.c.bf16 %v1395_v59, %v1394_v45  ;;  %v2059_v56 = vpop.f32.mrf.mxu1 }
 0x289   :  { %6266 = vst [vmem:[#allocation54_spill] sm:$0xff] %v5433_v43  ;;  %v5501_v45 = vpop.permute.xlu0 %2601 }
 0x28a   :  { %2398 = vmatpush.bf16.msrb.mxu1 %v1432_v19  ;;  %4144 = vmatpush.bf16.msrb.mxu3 %v1432_v19 }
 0x28c   :  { %v5467_v16 = vpop.permute.xlu1 %2591 }
 0x28d   :  { %v5458_v14 = vpop.f32.mrf.mxu3 }
 0x28e   :  { %2399 = vmatpush.bf16.msrb.mxu1 %v1431_v42  ;;  %4145 = vmatpush.bf16.msrb.mxu3 %v1431_v42  ;;  %6269 = vst [vmem:[#allocation57_spill] sm:$0xff] %v5458_v14  ;;  %v5512_v15 = vpop.permute.xlu2 %2626 }
 0x28f   :  { %6271 = vst [vmem:[#allocation59_spill] sm:$0xff] %v5512_v15 }
 0x290   :  { %v5454_v46 = vpop.f32.mrf.mxu2  ;;  %v5471_v51 = vpop.f32.mrf.mxu1 }
 0x291   :  { %6268 = vst [vmem:[#allocation56_spill] sm:$0xff] %v5454_v46 }
 0x292   :  { %2400 = vmatpush.bf16.msrb.mxu1 %v1430_v37  ;;  %4146 = vmatpush.bf16.msrb.mxu3 %v1430_v37  ;;  %v2060_v37 = vadd.f32 %v2059_v56, %v4715_v60  ;;  %v3872_v60 = vld [vmem:[%s6211_s3 + $0x230] sm:$0xf0]  ;;  %v4042_v56 = vld [vmem:[%s6211_s3 + $0x2c] sm:$0xf] }
 0x294   :  { %v5504_v3 = vpop.permute.xlu1 %2606 }
 0x295   :  { %2222 = vmatmul.bf16.gmra.mxu2 %v3843_v17  ;;  %2311 = vmatmul.bf16.gmra.mxu3 %v3719_v11  ;;  %v5493_v5 = vpop.f32.mrf.mxu3 }
 0x296   :  { %2401 = vmatpush.bf16.msrb.mxu1 %v5321_v44  ;;  %4147 = vmatpush.bf16.msrb.mxu3 %v5321_v44  ;;  %v770_v44 = vpop.f32.mrf.mxu0  ;;  %6270 = vst [vmem:[#allocation58_spill] sm:$0xff] %v5493_v5 }
 0x297   :  { %v2020_v20 = vadd.f32 %v5148_v62, %v770_v44  ;;  %v5515_v44 = vpop.permute.xlu0 %2616 }
 0x298   :  { %v2183_v39 = vpop.f32.mrf.mxu2  ;;  %v2064_v63 = vpop.f32.mrf.mxu1  ;;  %6272 = vst [vmem:[#allocation60_spill] sm:$0xff] %v5515_v44 }
 0x299   :  { %v5465_v40 = vadd.f32 %v2183_v39, %v2055_v52  ;;  %v2149_v17 = vadd.f32 %v5270_v34, %v2020_v20  ;;  %v3750_v34 = vld [vmem:[%s6211_s3 + $0x128] sm:$0xf]  ;;  %v3875_v20 = vor.u32 %v4105_v38, %v3872_v60 }
 0x29a   :  { %2402 = vmatpush.bf16.msrb.mxu1 %v5293_v0  ;;  %4148 = vmatpush.bf16.msrb.mxu3 %v5293_v0  ;;  %v4072_v0 = vld [vmem:[%s6211_s3 + $0x114] sm:$0xf0] }
 0x29b   :  { %v3735_v59 = vor.u32 %v4072_v0, %v3734_v47  ;;  %v3624_v0 = vld [vmem:[%s6211_s3 + $0x38] sm:$0xf0] }
 0x29c   :  { %v5520_v47 = vpop.permute.xlu1 %2621 }
 0x29d   :  { %6273 = vst [vmem:[#allocation61_spill] sm:$0xff] %v5520_v47 }
 0x29e   :  { %2403 = vmatpush.bf16.msrb.mxu1 %v5265_v25  ;;  %4149 = vmatpush.bf16.msrb.mxu3 %v5265_v25  ;;  %v3608_v25 = vld [vmem:[%s6211_s3 + $0x18] sm:$0xf0]  ;;  %v772_v55 = vpop.f32.mrf.mxu0 }
 0x29f   :  { %v3611_v42 = vor.u32 %v4038_v10, %v3608_v25  ;;  %v2022_v62 = vadd.f32 %v5167_v21, %v772_v55  ;;  %v4076_v21 = vld [vmem:[%s6211_s3 + $0x134] sm:$0xf0]  ;;  %v5547_v35 = vpop.permute.xlu0 %2631 }
 0x2a0   :  { %v5495_v19 = vpop.f32.mrf.mxu2  ;;  %v5537_v10 = vpop.f32.mrf.mxu1  ;;  %v3751_v55 = vor.u32 %v4076_v21, %v3750_v34  ;;  %6275 = vst [vmem:[#allocation63_spill] sm:$0xff] %v5547_v35 }
 0x2a1   :  { %v2151_v25 = vadd.f32 %v5289_v18, %v2022_v62  ;;  %v2065_v18 = vadd.f32 %v2064_v63, %v4759_v23  ;;  %v3766_v23 = vld [vmem:[%s6211_s3 + $0x148] sm:$0xf]  ;;  %v3640_v63 = vld [vmem:[%s6211_s3 + $0x58] sm:$0xf0] }
 0x2a2   :  { %2404 = vmatpush.bf16.msrb.mxu1 %v5235_v33  ;;  %4150 = vmatpush.bf16.msrb.mxu3 %v5235_v33 }
 0x2a4   :  { %v5551_v38 = vpop.permute.xlu1 %2636 }
 0x2a5   :  { %2227 = vmatmul.bf16.gmra.mxu2 %v3859_v26  ;;  %2316 = vmatmul.bf16.gmra.mxu3 %v3735_v59  ;;  %6276 = vst [vmem:[#allocation64_spill] sm:$0xff] %v5551_v38 }
 0x2a6   :  { %2405 = vmatmul.bf16.vlgmr.msrb.gmra.mxu1 %v3611_v42  ;;  %v775_v26 = vpop.f32.mrf.mxu0 }
 0x2a8   :  { %v2188_v11 = vpop.f32.mrf.mxu2  ;;  %v2277_v52 = vpop.f32.mrf.mxu3 }
 0x2a9   :  { %v5508_v39 = vadd.f32 %v2277_v52, %v2149_v17  ;;  %v5510_v33 = vadd.f32 %v2188_v11, %v2060_v37  ;;  %v3627_v17 = vor.u32 %v4042_v56, %v3624_v0  ;;  %v2025_v11 = vadd.f32 %v5177_v36, %v775_v26  ;;  %v5545_v52 = vpop.permute.xlu2 %2641  ;;  %v2069_v60 = vpop.f32.mrf.mxu1  ;;  %v4109_v36 = vld [vmem:[%s6211_s3 + $0x244] sm:$0xf]  ;;  %v3888_v56 = vld [vmem:[%s6211_s3 + $0x250] sm:$0xf0] }
 0x2aa   :  { %6274 = vst [vmem:[#allocation62_spill] sm:$0xff] %v5545_v52  ;;  %v5581_v26 = vpop.permute.xlu0 %2646 }
 0x2ab   :  { %v2154_v62 = vadd.f32 %v5300_v27, %v2025_v11  ;;  %v4080_v27 = vld [vmem:[%s6211_s3 + $0x154] sm:$0xf0]  ;;  %6278 = vst [vmem:[#allocation66_spill] sm:$0xff] %v5581_v26 }
 0x2b0   :  { %v5540_v59 = vpop.f32.mrf.mxu2  ;;  %v2279_v42 = vpop.f32.mrf.mxu3 }
 0x2b1   :  { %v5542_v37 = vadd.f32 %v2279_v42, %v2151_v25  ;;  %v3891_v42 = vor.u32 %v4109_v36, %v3888_v56  ;;  %v5585_v11 = vpop.f32.mrf.mxu1  ;;  %v4113_v56 = vld [vmem:[%s6211_s3 + $0x264] sm:$0xf] }
 0x2b2   :  { %v5594_v26 = vpop.permute.xlu0 %2661 }
 0x2b3   :  { %6281 = vst [vmem:[#allocation69_spill] sm:$0xff] %v5594_v26 }
 0x2b5   :  { %2232 = vmatmul.bf16.gmra.mxu2 %v3875_v20  ;;  %2321 = vmatmul.bf16.gmra.mxu3 %v3751_v55  ;;  %v3767_v20 = vor.u32 %v4080_v27, %v3766_v23  ;;  %v4084_v27 = vld [vmem:[%s6211_s3 + $0x174] sm:$0xf0] }
 0x2b6   :  { %2410 = vmatmul.bf16.gmra.mxu1 %v3627_v17  ;;  %v5583_v17 = vpop.permute.xlu1 %2651 }
 0x2b7   :  { %6279 = vst [vmem:[#allocation67_spill] sm:$0xff] %v5583_v17 }
 0x2b8   :  { %v2193_v5 = vpop.f32.mrf.mxu2  ;;  %v2282_v14 = vpop.f32.mrf.mxu3 }
 0x2b9   :  { %v5553_v34 = vadd.f32 %v2282_v14, %v2154_v62  ;;  %v5555_v21 = vadd.f32 %v2193_v5, %v2065_v18  ;;  %v5569_v14 = vpop.permute.xlu2 %2656  ;;  %v4046_v5 = vld [vmem:[%s6211_s3 + $0x4c] sm:$0xf]  ;;  %v2070_v18 = vadd.f32 %v2069_v60, %v4805_v49  ;;  %v2074_v23 = vpop.f32.mrf.mxu1  ;;  %v3904_v49 = vld [vmem:[%s6211_s3 + $0x270] sm:$0xf0]  ;;  %v3782_v60 = vld [vmem:[%s6211_s3 + $0x168] sm:$0xf] }
 0x2ba   :  { %6277 = vst [vmem:[#allocation65_spill] sm:$0xff] %v5569_v14  ;;  %v3643_v55 = vor.u32 %v4046_v5, %v3640_v63  ;;  %v4050_v5 = vld [vmem:[%s6211_s3 + $0x6c] sm:$0xf]  ;;  %v3656_v63 = vld [vmem:[%s6211_s3 + $0x78] sm:$0xf0]  ;;  %v2075_v17 = vadd.f32 %v2074_v23, %v4851_v7 }
 0x2bb   :  { %v3798_v7 = vld [vmem:[%s6211_s3 + $0x188] sm:$0xf]  ;;  %v4088_v23 = vld [vmem:[%s6211_s3 + $0x194] sm:$0xf0] }
 0x2be   :  { %v5596_v36 = vpop.permute.xlu1 %2666 }
 0x2bf   :  { %6282 = vst [vmem:[#allocation70_spill] sm:$0xff] %v5596_v36  ;;  %v5622_v36 = vpop.permute.xlu0 %2676 }
 0x2c0   :  { %v5577_v0 = vpop.f32.mrf.mxu2  ;;  %v5579_v25 = vpop.f32.mrf.mxu3  ;;  %6284 = vst [vmem:[#allocation72_spill] sm:$0xff] %v5622_v36 }
 0x2c1   :  { %v5590_v14 = vpop.permute.xlu2 %2671  ;;  %v5627_v46 = vpop.f32.mrf.mxu1 }
 0x2c2   :  { %6280 = vst [vmem:[#allocation68_spill] sm:$0xff] %v5590_v14 }
 0x2c5   :  { %2237 = vmatmul.bf16.gmra.mxu2 %v3891_v42  ;;  %2326 = vmatmul.bf16.gmra.mxu3 %v3767_v20 }
 0x2c6   :  { %2415 = vmatmul.bf16.gmra.mxu1 %v3643_v55  ;;  %v3907_v55 = vor.u32 %v4113_v56, %v3904_v49  ;;  %v5624_v26 = vpop.permute.xlu1 %2681  ;;  %v4117_v49 = vld [vmem:[%s6211_s3 + $0x284] sm:$0xf] }
 0x2c7   :  { %6285 = vst [vmem:[#allocation73_spill] sm:$0xff] %v5624_v26 }
 0x2c8   :  { %v2198_v62 = vpop.f32.mrf.mxu2  ;;  %v5588_v31 = vpop.f32.mrf.mxu3 }
 0x2c9   :  { %v5592_v52 = vadd.f32 %v2198_v62, %v2070_v18  ;;  %v3783_v18 = vor.u32 %v4084_v27, %v3782_v60  ;;  %v3659_v62 = vor.u32 %v4050_v5, %v3656_v63  ;;  %v5620_v14 = vpop.permute.xlu2 %2686  ;;  %v3920_v60 = vld [vmem:[%s6211_s3 + $0x290] sm:$0xf0]  ;;  %v3672_v27 = vld [vmem:[%s6211_s3 + $0x98] sm:$0xf0] }
 0x2ca   :  { %6283 = vst [vmem:[#allocation71_spill] sm:$0xff] %v5620_v14  ;;  %v2079_v14 = vpop.f32.mrf.mxu1 }
 0x2cb   :  { %v2080_v26 = vadd.f32 %v2079_v14, %v4897_v29  ;;  %v3814_v29 = vld [vmem:[%s6211_s3 + $0x1a8] sm:$0xf]  ;;  %v4092_v14 = vld [vmem:[%s6211_s3 + $0x1b4] sm:$0xf0] }
 0x2d0   :  { %v5616_v42 = vpop.f32.mrf.mxu2  ;;  %v5618_v20 = vpop.f32.mrf.mxu3 }
 0x2d1   :  { %v5633_v56 = vpop.permute.xlu2 %2701 }
 0x2d2   :  { %6286 = vst [vmem:[#allocation74_spill] sm:$0xff] %v5633_v56 }
 0x2d5   :  { %2242 = vmatmul.bf16.gmra.mxu2 %v3907_v55  ;;  %2331 = vmatmul.bf16.gmra.mxu3 %v3783_v18  ;;  %v5659_v55 = vpop.permute.xlu1 %2696  ;;  %v3923_v18 = vor.u32 %v4117_v49, %v3920_v60  ;;  %v5672_v49 = vpop.f32.mrf.mxu1  ;;  %v4121_v60 = vld [vmem:[%s6211_s3 + $0x2a4] sm:$0xf] }
 0x2d6   :  { %2420 = vmatmul.bf16.gmra.mxu1 %v3659_v62  ;;  %6288 = vst [vmem:[#allocation76_spill] sm:$0xff] %v5659_v55  ;;  %v3799_v62 = vor.u32 %v4088_v23, %v3798_v7 }
 0x2d7   :  { %6293 = vst [vmem:[#allocation81_spill] sm:$0xff] %v5672_v49 }
 0x2d8   :  { %v2203_v38 = vpop.f32.mrf.mxu2  ;;  %v5629_v43 = vpop.f32.mrf.mxu3 }
 0x2d9   :  { %v5631_v35 = vadd.f32 %v2203_v38, %v2075_v17  ;;  %v5647_v38 = vpop.permute.xlu0 %2691  ;;  %v4054_v17 = vld [vmem:[%s6211_s3 + $0x8c] sm:$0xf] }
 0x2da   :  { %6287 = vst [vmem:[#allocation75_spill] sm:$0xff] %v5647_v38  ;;  %v3675_v56 = vor.u32 %v4054_v17, %v3672_v27  ;;  %v5661_v38 = vpop.permute.xlu2 %2716 }
 0x2db   :  { %6289 = vst [vmem:[#allocation77_spill] sm:$0xff] %v5661_v38 }
 0x2dd   :  { %v5670_v44 = vpop.permute.xlu1 %2711 }
 0x2de   :  { %6292 = vst [vmem:[#allocation80_spill] sm:$0xff] %v5670_v44 }
 0x2e0   :  { %v5655_v5 = vpop.f32.mrf.mxu2  ;;  %v5657_v63 = vpop.f32.mrf.mxu3 }
 0x2e1   :  { %v5666_v15 = vpop.permute.xlu0 %2706 }
 0x2e2   :  { %6290 = vst [vmem:[#allocation78_spill] sm:$0xff] %v5666_v15  ;;  %v5696_v17 = vpop.permute.xlu2 %2731  ;;  %v2084_v15 = vpop.f32.mrf.mxu1 }
 0x2e3   :  { %6296 = vst [vmem:[#allocation84_spill] sm:$0xff] %v5696_v17  ;;  %v2085_v55 = vadd.f32 %v2084_v15, %v4941_v58  ;;  %v3830_v58 = vld [vmem:[%s6211_s3 + $0x1c8] sm:$0xf]  ;;  %v4096_v15 = vld [vmem:[%s6211_s3 + $0x1d4] sm:$0xf0] }
 0x2e5   :  { %2247 = vmatmul.bf16.gmra.mxu2 %v3923_v18  ;;  %2336 = vmatmul.bf16.gmra.mxu3 %v3799_v62  ;;  %v3815_v18 = vor.u32 %v4092_v14, %v3814_v29  ;;  %v5700_v44 = vpop.permute.xlu1 %2726  ;;  %v3952_v29 = vld [vmem:[%s6211_s3 + $0x2d0] sm:$0xf0]  ;;  %v3704_v14 = vld [vmem:[%s6211_s3 + $0xd8] sm:$0xf0] }
 0x2e6   :  { %2425 = vmatmul.bf16.gmra.mxu1 %v3675_v56  ;;  %v3936_v56 = vld [vmem:[%s6211_s3 + $0x2b0] sm:$0xf0]  ;;  %6298 = vst [vmem:[#allocation86_spill] sm:$0xff] %v5700_v44 }
 0x2e7   :  { %v3939_v27 = vor.u32 %v4121_v60, %v3936_v56  ;;  %v4125_v56 = vld [vmem:[%s6211_s3 + $0x2c4] sm:$0xf] }
 0x2e8   :  { %v2208_v36 = vpop.f32.mrf.mxu2  ;;  %v5664_v1 = vpop.f32.mrf.mxu3 }
 0x2e9   :  { %v5668_v47 = vadd.f32 %v2208_v36, %v2080_v26  ;;  %v4058_v26 = vld [vmem:[%s6211_s3 + $0xac] sm:$0xf]  ;;  %v3688_v36 = vld [vmem:[%s6211_s3 + $0xb8] sm:$0xf0]  ;;  %v5698_v38 = vpop.permute.xlu0 %2721 }
 0x2ea   :  { %v3691_v62 = vor.u32 %v4058_v26, %v3688_v36  ;;  %6297 = vst [vmem:[#allocation85_spill] sm:$0xff] %v5698_v38 }
 0x2eb   :  { %6291 = vst [vmem:[#allocation79_spill] sm:$0xff] %v5668_v47 }
 0x2f0   :  { %v5692_v7 = vpop.f32.mrf.mxu2  ;;  %v5694_v23 = vpop.f32.mrf.mxu3 }
 0x2f1   :  { %6294 = vst [vmem:[#allocation82_spill] sm:$0xff] %v5692_v7  ;;  %v5709_v60 = vpop.permute.xlu0 %2736 }
 0x2f2   :  { %6295 = vst [vmem:[#allocation83_spill] sm:$0xff] %v5694_v23  ;;  %v5707_v23 = vpop.permute.xlu2 %2746 }
 0x2f3   :  { %6299 = vst [vmem:[#allocation87_spill] sm:$0xff] %v5707_v23 }
 0x2f4   :  { %6300 = vst [vmem:[#allocation88_spill] sm:$0xff] %v5709_v60  ;;  %v2090_v60 = vadd.f32 %v5171_v28, %v4989_v53  ;;  %v4100_v53 = vld [vmem:[%s6211_s3 + $0x1f4] sm:$0xf0] }
 0x2f5   :  { %2252 = vmatmul.bf16.gmra.mxu2 %v3939_v27  ;;  %2341 = vmatmul.bf16.gmra.mxu3 %v3815_v18  ;;  %v3955_v27 = vor.u32 %v4125_v56, %v3952_v29  ;;  %v3831_v18 = vor.u32 %v4096_v15, %v3830_v58  ;;  %v4129_v56 = vld [vmem:[%s6211_s3 + $0x2e4] sm:$0xf]  ;;  %v3968_v29 = vld [vmem:[%s6211_s3 + $0x2f0] sm:$0xf0]  ;;  %v3846_v58 = vld [vmem:[%s6211_s3 + $0x1e8] sm:$0xf] }
 0x2f6   :  { %2430 = vmatmul.bf16.gmra.mxu1 %v3691_v62 }
 0x2f8   :  { %v2213_v49 = vpop.f32.mrf.mxu2  ;;  %v5703_v47 = vpop.f32.mrf.mxu3 }
 0x2f9   :  { %v5705_v7 = vadd.f32 %v2213_v49, %v2085_v55  ;;  %v5723_v55 = vpop.permute.xlu1 %2741  ;;  %v4062_v49 = vld [vmem:[%s6211_s3 + $0xcc] sm:$0xf] }
 0x2fa   :  { %6301 = vst [vmem:[#allocation89_spill] sm:$0xff] %v5723_v55  ;;  %v3707_v62 = vor.u32 %v4062_v49, %v3704_v14  ;;  %v5735_v23 = vpop.permute.xlu2 %2761  ;;  %v5737_v55 = vpop.permute.xlu0 %2751 }
 0x2fb   :  { %6303 = vst [vmem:[#allocation91_spill] sm:$0xff] %v5735_v23 }
 0x2fc   :  { %6304 = vst [vmem:[#allocation92_spill] sm:$0xff] %v5737_v55 }
 0x300   :  { %v5731_v26 = vpop.f32.mrf.mxu2  ;;  %v5733_v36 = vpop.f32.mrf.mxu3 }
 0x301   :  { %6302 = vst [vmem:[#allocation90_spill] sm:$0xff] %v5731_v26  ;;  %v5743_v38 = vpop.permute.xlu1 %2756 }
 0x302   :  { %6305 = vst [vmem:[#allocation93_spill] sm:$0xff] %v5743_v38  ;;  %v5759_v28 = vpop.permute.xlu2 %2776  ;;  %v5771_v14 = vpop.permute.xlu0 %2766 }
 0x303   :  { %6307 = vst [vmem:[#allocation95_spill] sm:$0xff] %v5759_v28  ;;  %v2095_v28 = vadd.f32 %v5202_v6, %v5031_v50  ;;  %v3862_v50 = vld [vmem:[%s6211_s3 + $0x208] sm:$0xf]  ;;  %v4104_v6 = vld [vmem:[%s6211_s3 + $0x214] sm:$0xf0] }
 0x305   :  { %2257 = vmatmul.bf16.gmra.mxu2 %v3955_v27  ;;  %2346 = vmatmul.bf16.gmra.mxu3 %v3831_v18  ;;  %v3971_v27 = vor.u32 %v4129_v56, %v3968_v29  ;;  %v3847_v18 = vor.u32 %v4100_v53, %v3846_v58  ;;  %v5786_v29 = vpop.f32.mrf.mxu1  ;;  %v2057_v53 = vadd.f32 %v5430_v54, %v4693_v48 }
 0x306   :  { %2435 = vmatmul.bf16.gmra.mxu1 %v3707_v62 }
 0x308   :  { %v2218_v17 = vpop.f32.mrf.mxu2  ;;  %v5741_v44 = vpop.f32.mrf.mxu3 }
 0x309   :  { %v5745_v26 = vadd.f32 %v2218_v17, %v2090_v60  ;;  %v4066_v17 = vld [vmem:[%s6211_s3 + $0xec] sm:$0xf]  ;;  %v3720_v60 = vld [vmem:[%s6211_s3 + $0xf8] sm:$0xf0]  ;;  %v5773_v23 = vpop.permute.xlu1 %2771 }
 0x30a   :  { %v3723_v62 = vor.u32 %v4066_v17, %v3720_v60  ;;  %6310 = vst [vmem:[#allocation98_spill] sm:$0xff] %v5773_v23  ;;  %v5784_v56 = vpop.permute.xlu0 %2781  ;;  %v777_v17 = vpop.f32.mrf.mxu0  ;;  %v3863_v60 = vor.u32 %v4104_v6, %v3862_v50 }
 0x30b   :  { %6306 = vst [vmem:[#allocation94_spill] sm:$0xff] %v5745_v26 }
 0x30c   :  { %6312 = vst [vmem:[#allocation100_spill] sm:$0xff] %v5784_v56 }
 0x310   :  { %v5767_v15 = vpop.f32.mrf.mxu2  ;;  %v5769_v49 = vpop.f32.mrf.mxu3 }
 0x311   :  { %6308 = vst [vmem:[#allocation96_spill] sm:$0xff] %v5767_v15  ;;  %v5788_v58 = vpop.permute.xlu1 %2786 }
 0x312   :  { %6309 = vst [vmem:[#allocation97_spill] sm:$0xff] %v5769_v49  ;;  %v5782_v49 = vpop.permute.xlu2 %2791  ;;  %v780_v56 = vpop.f32.mrf.mxu0 }
 0x313   :  { %6311 = vst [vmem:[#allocation99_spill] sm:$0xff] %v5782_v49 }
 0x314   :  { %6313 = vst [vmem:[#allocation101_spill] sm:$0xff] %v5788_v58  ;;  %v2100_v58 = vadd.f32 %v5222_v61, %v5091_v4  ;;  %v3878_v4 = vld [vmem:[%s6211_s3 + $0x228] sm:$0xf]  ;;  %v4108_v61 = vld [vmem:[%s6211_s3 + $0x234] sm:$0xf0] }
 0x315   :  { %2262 = vmatmul.bf16.gmra.mxu2 %v3971_v27  ;;  %2351 = vmatmul.bf16.gmra.mxu3 %v3847_v18 }
 0x316   :  { %2440 = vmatmul.bf16.gmra.mxu1 %v3723_v62 }
 0x318   :  { %v2223_v38 = vpop.f32.mrf.mxu2  ;;  %v2312_v55 = vpop.f32.mrf.mxu3 }
 0x319   :  { %v5777_v26 = vadd.f32 %v2223_v38, %v2095_v28  ;;  %v5780_v15 = vadd.f32 %v2312_v55, %v5465_v40  ;;  %v2186_v40 = vadd.f32 %v5495_v19, %v2057_v53  ;;  %v4070_v38 = vld [vmem:[%s6211_s3 + $0x10c] sm:$0xf]  ;;  %v3736_v55 = vld [vmem:[%s6211_s3 + $0x118] sm:$0xf0]  ;;  %v5812_v19 = vpop.permute.xlu0 %2796  ;;  %v5814_v53 = vpop.permute.xlu1 %2801 }
 0x31a   :  { %v3739_v27 = vor.u32 %v4070_v38, %v3736_v55  ;;  %v5810_v49 = vpop.permute.xlu2 %2806  ;;  %6315 = vst [vmem:[#allocation103_spill] sm:$0xff] %v5812_v19  ;;  %v2062_v55 = vadd.f32 %v5471_v51, %v4739_v12  ;;  %v4074_v12 = vld [vmem:[%s6211_s3 + $0x12c] sm:$0xf]  ;;  %v2105_v19 = vadd.f32 %v5260_v32, %v5115_v41  ;;  %v6318_v32 = vld [vmem:[#allocation3_spill] sm:$0xff] }
 0x31b   :  { %6314 = vst [vmem:[#allocation102_spill] sm:$0xff] %v5810_v49 }
 0x31c   :  { %6316 = vst [vmem:[#allocation104_spill] sm:$0xff] %v5814_v53  ;;  %v2027_v53 = vadd.f32 %v5195_v57, %v777_v17 }
 0x320   :  { %v5805_v48 = vpop.f32.mrf.mxu2  ;;  %v2314_v54 = vpop.f32.mrf.mxu3 }
 0x321   :  { %v5807_v28 = vadd.f32 %v2314_v54, %v2186_v40 }
 0x323   :  { %v2406_v18 = vpop.f32.mrf.mxu1 }
 0x324   :  { %v2407_v62 = vadd.f32 %v2406_v18, %v5508_v39  ;;  %v2961_v18 = vpop.permute.xlu1 %2960 }
 0x325   :  { %2356 = vmatmul.bf16.gmra.mxu3 %v3863_v60 }
 0x326   :  { %2445 = vmatmul.bf16.gmra.mxu1 %v3739_v27  ;;  %v2814_v39 = vadd.f32 %v5452_v2, %v2407_v62  ;;  %v2191_v2 = vadd.f32 %v5540_v59, %v2062_v55  ;;  %v782_v62 = vpop.f32.mrf.mxu0 }
 0x328   :  { %v2228_v23 = vpop.f32.mrf.mxu2  ;;  %v2317_v40 = vpop.f32.mrf.mxu3  ;;  %v2862_v60 = vmax.f32 %v2814_v39, 0.0  ;;  %v3879_v39 = vor.u32 %v4108_v61, %v3878_v4 }
 0x329   :  { %v5818_v54 = vadd.f32 %v2228_v23, %v2100_v58  ;;  %v5821_v50 = vadd.f32 %v2317_v40, %v5510_v33  ;;  %v2966_v33 = vpop.permute.xlu2 %2965  ;;  %v5834_v23 = vpop.permute.xlu0 %2811 }
 0x32a   :  { %6317 = vst [vmem:[#allocation105_spill] sm:$0xff] %v5834_v23 }
 0x32b   :  { %v2408_v6 = vpop.f32.mrf.mxu1 }
 0x32c   :  { %v2409_v38 = vadd.f32 %v2408_v6, %v5542_v37  ;;  %v3198_v6 = vmul.f32 %v2961_v18, %v2862_v60 }
 0x32e   :  { %v2815_v27 = vadd.f32 %v5438_v24, %v2409_v38  ;;  %v3752_v24 = vld [vmem:[%s6211_s3 + $0x138] sm:$0xf0] }
 0x32f   :  { %v3755_v59 = vor.u32 %v4074_v12, %v3752_v24  ;;  %v785_v12 = vpop.f32.mrf.mxu0 }
 0x330   :  { %v2863_v51 = vmax.f32 %v2815_v27, 0.0  ;;  %v5843_v37 = vpop.f32.mrf.mxu2  ;;  %v2319_v58 = vpop.f32.mrf.mxu3 }
 0x331   :  { %v5845_v40 = vadd.f32 %v2319_v58, %v2191_v2  ;;  %v2156_v2 = vadd.f32 %v5317_v9, %v2027_v53  ;;  %v2971_v61 = vpop.permute.xlu0 %2970  ;;  %v2067_v9 = vadd.f32 %v5537_v10, %v6318_v32  ;;  %v3768_v10 = vld [vmem:[%s6211_s3 + $0x158] sm:$0xf0] }
 0x332   :  { %v3199_v38 = vmul.f32 %v2966_v33, %v2863_v51 }
 0x333   :  { %v2411_v55 = vpop.f32.mrf.mxu1 }
 0x334   :  { %v3246_v23 = vadd.f32 %v3199_v38, %v3198_v6  ;;  %v2412_v49 = vadd.f32 %v2411_v55, %v5553_v34  ;;  %v2285_v34 = vadd.f32 %v5579_v25, %v2156_v2  ;;  %v2196_v25 = vadd.f32 %v5577_v0, %v2067_v9  ;;  %v6320_v2 = vld [vmem:[#allocation27_spill] sm:$0xff] }
 0x335   :  { %2361 = vmatmul.bf16.gmra.mxu3 %v3879_v39  ;;  %v2976_v39 = vpop.permute.xlu1 %2975 }
 0x336   :  { %v2816_v27 = vadd.f32 %v5463_v13, %v2412_v49  ;;  %2450 = vmatmul.bf16.gmra.mxu1 %v3755_v59  ;;  %v2030_v49 = vadd.f32 %v5241_v8, %v780_v56  ;;  %v4078_v8 = vld [vmem:[%s6211_s3 + $0x14c] sm:$0xf]  ;;  %v6319_v56 = vld [vmem:[#allocation35_spill] sm:$0xff] }
 0x337   :  { %v3771_v55 = vor.u32 %v4078_v8, %v3768_v10 }
 0x338   :  { %v2864_v58 = vmax.f32 %v2816_v27, 0.0  ;;  %v2233_v4 = vpop.f32.mrf.mxu2  ;;  %v2322_v60 = vpop.f32.mrf.mxu3 }
 0x339   :  { %v5853_v33 = vadd.f32 %v2233_v4, %v2105_v19  ;;  %v5856_v57 = vadd.f32 %v2322_v60, %v5555_v21  ;;  %v3894_v19 = vld [vmem:[%s6211_s3 + $0x248] sm:$0xf]  ;;  %v4112_v21 = vld [vmem:[%s6211_s3 + $0x254] sm:$0xf0] }
 0x33a   :  { %v3200_v17 = vmul.f32 %v2971_v61, %v2864_v58  ;;  %v3895_v38 = vor.u32 %v4112_v21, %v3894_v19  ;;  %v2032_v58 = vadd.f32 %v6320_v2, %v782_v62  ;;  %v787_v61 = vpop.f32.mrf.mxu0  ;;  %v2986_v2 = vpop.permute.xlu0 %2985 }
 0x33b   :  { %v2413_v13 = vpop.f32.mrf.mxu1 }
 0x33c   :  { %v3247_v24 = vadd.f32 %v3246_v23, %v3200_v17  ;;  %v2414_v41 = vadd.f32 %v2413_v13, %v2285_v34  ;;  %v6321_v34 = vld [vmem:[#allocation15_spill] sm:$0xff]  ;;  %v6322_v13 = vld [vmem:[#allocation30_spill] sm:$0xff] }
 0x33e   :  { %v2817_v53 = vadd.f32 %v5467_v16, %v2414_v41  ;;  %v2159_v16 = vadd.f32 %v6319_v56, %v2030_v49  ;;  %v2110_v49 = vadd.f32 %v6322_v13, %v6321_v34  ;;  %v6323_v41 = vld [vmem:[#allocation37_spill] sm:$0xff]  ;;  %v6327_v13 = vld [vmem:[#allocation31_spill] sm:$0xff] }
 0x33f   :  { %v2161_v32 = vadd.f32 %v6323_v41, %v2032_v58 }
 0x340   :  { %v2865_v23 = vmax.f32 %v2817_v53, 0.0  ;;  %v5877_v51 = vpop.f32.mrf.mxu2  ;;  %v2324_v18 = vpop.f32.mrf.mxu3  ;;  %v2288_v0 = vadd.f32 %v5588_v31, %v2159_v16 }
 0x341   :  { %v5879_v6 = vadd.f32 %v2324_v18, %v2196_v25  ;;  %v2981_v31 = vpop.permute.xlu2 %2980  ;;  %v2290_v25 = vadd.f32 %v5618_v20, %v2161_v32 }
 0x342   :  { %v3201_v59 = vmul.f32 %v2976_v39, %v2865_v23  ;;  %v6325_v23 = vld [vmem:[#allocation4_spill] sm:$0xff] }
 0x343   :  { %v2416_v27 = vpop.f32.mrf.mxu1  ;;  %v2072_v18 = vadd.f32 %v5585_v11, %v6325_v23  ;;  %v3784_v11 = vld [vmem:[%s6211_s3 + $0x178] sm:$0xf0] }
 0x344   :  { %v3248_v4 = vadd.f32 %v3247_v24, %v3201_v59  ;;  %v2417_v60 = vadd.f32 %v2416_v27, %v2288_v0  ;;  %v790_v59 = vpop.f32.mrf.mxu0 }
 0x345   :  { %2366 = vmatmul.bf16.gmra.mxu3 %v3895_v38  ;;  %v3910_v38 = vld [vmem:[%s6211_s3 + $0x268] sm:$0xf]  ;;  %v2201_v20 = vadd.f32 %v5616_v42, %v2072_v18 }
 0x346   :  { %v2818_v17 = vadd.f32 %v5460_v30, %v2417_v60  ;;  %2455 = vmatmul.bf16.gmra.mxu1 %v3771_v55  ;;  %v6324_v30 = vld [vmem:[#allocation29_spill] sm:$0xff] }
 0x347   :  { %v2035_v10 = vadd.f32 %v6324_v30, %v785_v12  ;;  %v4082_v12 = vld [vmem:[%s6211_s3 + $0x16c] sm:$0xf] }
 0x348   :  { %v2866_v9 = vmax.f32 %v2818_v17, 0.0  ;;  %v2238_v53 = vpop.f32.mrf.mxu2  ;;  %v2327_v19 = vpop.f32.mrf.mxu3  ;;  %v3787_v42 = vor.u32 %v4082_v12, %v3784_v11 }
 0x349   :  { %v5887_v21 = vadd.f32 %v2238_v53, %v2110_v49  ;;  %v5890_v62 = vadd.f32 %v2327_v19, %v5592_v52  ;;  %v4116_v52 = vld [vmem:[%s6211_s3 + $0x274] sm:$0xf0]  ;;  %v2037_v49 = vadd.f32 %v6327_v13, %v787_v61  ;;  %v6328_v53 = vld [vmem:[#allocation43_spill] sm:$0xff] }
 0x34a   :  { %v3202_v24 = vmul.f32 %v2981_v31, %v2866_v9  ;;  %v6329_v61 = vld [vmem:[#allocation33_spill] sm:$0xff] }
 0x34b   :  { %v2418_v8 = vpop.f32.mrf.mxu1  ;;  %v2166_v19 = vadd.f32 %v6328_v53, %v2037_v49  ;;  %v6333_v49 = vld [vmem:[#allocation60_spill] sm:$0xff] }
 0x34c   :  { %v3249_v56 = vadd.f32 %v3248_v4, %v3202_v24  ;;  %v2419_v16 = vadd.f32 %v2418_v8, %v2290_v25  ;;  %v3911_v4 = vor.u32 %v4116_v52, %v3910_v38  ;;  %v2991_v25 = vpop.permute.xlu1 %2990  ;;  %v792_v8 = vpop.f32.mrf.mxu0  ;;  %v3926_v52 = vld [vmem:[%s6211_s3 + $0x288] sm:$0xf] }
 0x34e   :  { %v2819_v39 = vadd.f32 %v5501_v45, %v2419_v16  ;;  %v6326_v45 = vld [vmem:[#allocation40_spill] sm:$0xff] }
 0x34f   :  { %v2164_v0 = vadd.f32 %v6326_v45, %v2035_v10  ;;  %v2295_v10 = vadd.f32 %v5657_v63, %v2166_v19  ;;  %v2996_v45 = vpop.permute.xlu2 %2995 }
 0x350   :  { %v2867_v55 = vmax.f32 %v2819_v39, 0.0  ;;  %v2329_v27 = vpop.f32.mrf.mxu3  ;;  %v6330_v39 = vld [vmem:[#allocation5_spill] sm:$0xff] }
 0x351   :  { %v5911_v58 = vadd.f32 %v2329_v27, %v2201_v20  ;;  %v2293_v17 = vadd.f32 %v5629_v43, %v2164_v0  ;;  %v6331_v20 = vld [vmem:[#allocation45_spill] sm:$0xff] }
 0x352   :  { %v3203_v60 = vmul.f32 %v2986_v2, %v2867_v55 }
 0x353   :  { %v2421_v34 = vpop.f32.mrf.mxu1 }
 0x354   :  { %v3250_v41 = vadd.f32 %v3249_v56, %v3203_v60  ;;  %v2422_v32 = vadd.f32 %v2421_v34, %v2293_v17  ;;  %v2040_v56 = vadd.f32 %v6329_v61, %v790_v59  ;;  %v4086_v59 = vld [vmem:[%s6211_s3 + $0x18c] sm:$0xf]  ;;  %v6337_v61 = vld [vmem:[#allocation39_spill] sm:$0xff] }
 0x355   :  { %2371 = vmatmul.bf16.gmra.mxu3 %v3911_v4  ;;  %v795_v4 = vpop.f32.mrf.mxu0  ;;  %v6332_v17 = vld [vmem:[#allocation36_spill] sm:$0xff] }
 0x356   :  { %v2820_v9 = vadd.f32 %v5504_v3, %v2422_v32  ;;  %2460 = vmatmul.bf16.gmra.mxu1 %v3787_v42  ;;  %v2077_v3 = vadd.f32 %v5627_v46, %v6330_v39  ;;  %v3800_v46 = vld [vmem:[%s6211_s3 + $0x198] sm:$0xf0]  ;;  %v2042_v42 = vadd.f32 %v6332_v17, %v792_v8  ;;  %v6334_v32 = vld [vmem:[#allocation48_spill] sm:$0xff]  ;;  %v2045_v8 = vadd.f32 %v6337_v61, %v795_v4  ;;  %v6339_v39 = vld [vmem:[#allocation81_spill] sm:$0xff] }
 0x358   :  { %v2868_v31 = vmax.f32 %v2820_v9, 0.0  ;;  %v2332_v24 = vpop.f32.mrf.mxu3  ;;  %v2206_v63 = vadd.f32 %v5655_v5, %v2077_v3  ;;  %v3803_v5 = vor.u32 %v4086_v59, %v3800_v46  ;;  %v2171_v9 = vadd.f32 %v6334_v32, %v2042_v42  ;;  %v4124_v59 = vld [vmem:[%s6211_s3 + $0x2b4] sm:$0xf0] }
 0x359   :  { %v5918_v30 = vadd.f32 %v2332_v24, %v5631_v35  ;;  %v4120_v35 = vld [vmem:[%s6211_s3 + $0x294] sm:$0xf0]  ;;  %v6335_v24 = vld [vmem:[#allocation79_spill] sm:$0xff] }
 0x35a   :  { %v3204_v43 = vmul.f32 %v2991_v25, %v2868_v31  ;;  %v3927_v55 = vor.u32 %v4120_v35, %v3926_v52  ;;  %v3001_v31 = vpop.permute.xlu0 %3000  ;;  %v6340_v52 = vld [vmem:[#allocation61_spill] sm:$0xff]  ;;  %v6341_v46 = vld [vmem:[#allocation82_spill] sm:$0xff] }
 0x35b   :  { %v2423_v16 = vpop.f32.mrf.mxu1 }
 0x35c   :  { %v3251_v23 = vadd.f32 %v3250_v41, %v3204_v43  ;;  %v2424_v18 = vadd.f32 %v2423_v16, %v2295_v10  ;;  %v6336_v43 = vld [vmem:[#allocation83_spill] sm:$0xff] }
 0x35d   :  { %v2300_v10 = vadd.f32 %v6336_v43, %v2171_v9  ;;  %v6344_v9 = vld [vmem:[#allocation59_spill] sm:$0xff] }
 0x35e   :  { %v2821_v38 = vadd.f32 %v5497_v22, %v2424_v18  ;;  %v2169_v22 = vadd.f32 %v6331_v20, %v2040_v56  ;;  %v6338_v18 = vld [vmem:[#allocation6_spill] sm:$0xff] }
 0x35f   :  { %v2082_v3 = vadd.f32 %v6339_v39, %v6338_v18 }
 0x360   :  { %v2869_v12 = vmax.f32 %v2821_v38, 0.0  ;;  %v2334_v11 = vpop.f32.mrf.mxu3  ;;  %v2298_v2 = vadd.f32 %v5664_v1, %v2169_v22  ;;  %v797_v38 = vpop.f32.mrf.mxu0  ;;  %v4090_v22 = vld [vmem:[%s6211_s3 + $0x1ac] sm:$0xf] }
 0x361   :  { %v5939_v0 = vadd.f32 %v2334_v11, %v2206_v63  ;;  %v3942_v63 = vld [vmem:[%s6211_s3 + $0x2a8] sm:$0xf]  ;;  %v2211_v20 = vadd.f32 %v6341_v46, %v2082_v3  ;;  %v6342_v11 = vld [vmem:[#allocation50_spill] sm:$0xff]  ;;  %v4094_v46 = vld [vmem:[%s6211_s3 + $0x1cc] sm:$0xf] }
 0x362   :  { %v3205_v27 = vmul.f32 %v2996_v45, %v2869_v12  ;;  %v3816_v12 = vld [vmem:[%s6211_s3 + $0x1b8] sm:$0xf0]  ;;  %v2174_v45 = vadd.f32 %v6342_v11, %v2045_v8  ;;  %v3943_v4 = vor.u32 %v4124_v59, %v3942_v63  ;;  %v6347_v3 = vld [vmem:[#allocation7_spill] sm:$0xff] }
 0x363   :  { %v2426_v60 = vpop.f32.mrf.mxu1  ;;  %v3819_v42 = vor.u32 %v4090_v22, %v3816_v12  ;;  %v3958_v63 = vld [vmem:[%s6211_s3 + $0x2c8] sm:$0xf]  ;;  %v6349_v59 = vld [vmem:[#allocation90_spill] sm:$0xff] }
 0x364   :  { %v3252_v34 = vadd.f32 %v3251_v23, %v3205_v27  ;;  %v2427_v13 = vadd.f32 %v2426_v60, %v2298_v2  ;;  %v3006_v2 = vpop.permute.xlu1 %3005  ;;  %v2303_v17 = vadd.f32 %v5703_v47, %v2174_v45  ;;  %v3016_v45 = vpop.permute.xlu0 %3015 }
 0x365   :  { %2376 = vmatmul.bf16.gmra.mxu3 %v3927_v55 }
 0x366   :  { %v2822_v41 = vadd.f32 %v6333_v49, %v2427_v13  ;;  %2465 = vmatmul.bf16.gmra.mxu1 %v3803_v5  ;;  %v6343_v13 = vld [vmem:[#allocation42_spill] sm:$0xff] }
 0x367   :  { %v2047_v49 = vadd.f32 %v6343_v13, %v797_v38  ;;  %v2087_v38 = vadd.f32 %v5786_v29, %v6347_v3  ;;  %v3832_v29 = vld [vmem:[%s6211_s3 + $0x1d8] sm:$0xf0] }
 0x368   :  { %v2870_v53 = vmax.f32 %v2822_v41, 0.0  ;;  %v2337_v19 = vpop.f32.mrf.mxu3 }
 0x369   :  { %v5946_v25 = vadd.f32 %v2337_v19, %v6335_v24  ;;  %v800_v19 = vpop.f32.mrf.mxu0 }
 0x36a   :  { %v3206_v1 = vmul.f32 %v3001_v31, %v2870_v53  ;;  %v6345_v31 = vld [vmem:[#allocation52_spill] sm:$0xff] }
 0x36b   :  { %v2428_v16 = vpop.f32.mrf.mxu1  ;;  %v2176_v24 = vadd.f32 %v6345_v31, %v2047_v49 }
 0x36c   :  { %v3253_v56 = vadd.f32 %v3252_v34, %v3206_v1  ;;  %v2429_v23 = vadd.f32 %v2428_v16, %v2300_v10  ;;  %v3011_v10 = vpop.permute.xlu2 %3010 }
 0x36d   :  { %v2305_v61 = vadd.f32 %v5733_v36, %v2176_v24  ;;  %v2216_v36 = vadd.f32 %v6349_v59, %v2087_v38  ;;  %v6358_v38 = vld [vmem:[#allocation62_spill] sm:$0xff] }
 0x36e   :  { %v2823_v35 = vadd.f32 %v6340_v52, %v2429_v23  ;;  %v6346_v23 = vld [vmem:[#allocation46_spill] sm:$0xff]  ;;  %v6348_v52 = vld [vmem:[#allocation63_spill] sm:$0xff] }
 0x370   :  { %v2871_v55 = vmax.f32 %v2823_v35, 0.0  ;;  %v2339_v27 = vpop.f32.mrf.mxu3 }
 0x371   :  { %v5967_v5 = vadd.f32 %v2339_v27, %v2211_v20  ;;  %v6350_v20 = vld [vmem:[#allocation54_spill] sm:$0xff] }
 0x372   :  { %v3207_v60 = vmul.f32 %v3006_v2, %v2871_v55  ;;  %v802_v55 = vpop.f32.mrf.mxu0 }
 0x373   :  { %v2431_v34 = vpop.f32.mrf.mxu1 }
 0x374   :  { %v3254_v41 = vadd.f32 %v3253_v56, %v3207_v60  ;;  %v2432_v32 = vadd.f32 %v2431_v34, %v2303_v17  ;;  %v2050_v56 = vadd.f32 %v6346_v23, %v800_v19  ;;  %v3835_v17 = vor.u32 %v4094_v46, %v3832_v29  ;;  %v6351_v34 = vld [vmem:[#allocation49_spill] sm:$0xff]  ;;  %v3848_v46 = vld [vmem:[%s6211_s3 + $0x1f8] sm:$0xf0] }
 0x375   :  { %2381 = vmatmul.bf16.gmra.mxu3 %v3943_v4  ;;  %v2052_v13 = vadd.f32 %v6351_v34, %v802_v55 }
 0x376   :  { %v2824_v53 = vadd.f32 %v6344_v9, %v2432_v32  ;;  %2470 = vmatmul.bf16.gmra.mxu1 %v3819_v42  ;;  %v2179_v22 = vadd.f32 %v6350_v20, %v2050_v56  ;;  %v6352_v32 = vld [vmem:[#allocation64_spill] sm:$0xff] }
 0x378   :  { %v2872_v1 = vmax.f32 %v2824_v53, 0.0  ;;  %v2342_v43 = vpop.f32.mrf.mxu3  ;;  %v2308_v60 = vadd.f32 %v5741_v44, %v2179_v22  ;;  %v6353_v53 = vld [vmem:[#allocation56_spill] sm:$0xff]  ;;  %v6355_v44 = vld [vmem:[#allocation97_spill] sm:$0xff]  ;;  %v3026_v22 = vpop.permute.xlu2 %3025 }
 0x379   :  { %v5974_v16 = vadd.f32 %v2342_v43, %v5705_v7  ;;  %v4128_v7 = vld [vmem:[%s6211_s3 + $0x2d4] sm:$0xf0]  ;;  %v2181_v19 = vadd.f32 %v6353_v53, %v2052_v13 }
 0x37a   :  { %v3208_v47 = vmul.f32 %v3011_v10, %v2872_v1  ;;  %v3959_v2 = vor.u32 %v4128_v7, %v3958_v63  ;;  %v3021_v1 = vpop.permute.xlu1 %3020  ;;  %v6354_v43 = vld [vmem:[#allocation94_spill] sm:$0xff]  ;;  %v6359_v7 = vld [vmem:[#allocation96_spill] sm:$0xff] }
 0x37b   :  { %v2433_v8 = vpop.f32.mrf.mxu1  ;;  %v4132_v63 = vld [vmem:[%s6211_s3 + $0x2f4] sm:$0xf0] }
 0x37c   :  { %v3255_v18 = vadd.f32 %v3254_v41, %v3208_v47  ;;  %v2434_v39 = vadd.f32 %v2433_v8, %v2305_v61  ;;  %v2310_v61 = vadd.f32 %v6355_v44, %v2181_v19  ;;  %v3976_v44 = vld [vmem:[%s6211_s3 + $0x2f8] sm:$0xf0] }
 0x37e   :  { %v2825_v35 = vadd.f32 %v6348_v52, %v2434_v39  ;;  %v6357_v39 = vld [vmem:[#allocation19_spill] sm:$0xff] }
 0x380   :  { %v2873_v12 = vmax.f32 %v2825_v35, 0.0  ;;  %v2344_v11 = vpop.f32.mrf.mxu3  ;;  %v3974_v35 = vld [vmem:[%s6211_s3 + $0x2e8] sm:$0xf] }
 0x381   :  { %v5995_v27 = vadd.f32 %v2344_v11, %v2216_v36  ;;  %v4098_v36 = vld [vmem:[%s6211_s3 + $0x1ec] sm:$0xf]  ;;  %v3975_v11 = vor.u32 %v4132_v63, %v3974_v35  ;;  %v6364_v63 = vld [vmem:[#allocation65_spill] sm:$0xff] }
 0x382   :  { %v3209_v4 = vmul.f32 %v3016_v45, %v2873_v12  ;;  %v3851_v55 = vor.u32 %v4098_v36, %v3848_v46  ;;  %v3041_v46 = vpop.permute.xlu2 %3040 }
 0x383   :  { %v2436_v42 = vpop.f32.mrf.mxu1 }
 0x384   :  { %v3256_v49 = vadd.f32 %v3255_v18, %v3209_v4  ;;  %v2437_v41 = vadd.f32 %v2436_v42, %v2308_v60  ;;  %v6356_v18 = vld [vmem:[#allocation8_spill] sm:$0xff] }
 0x385   :  { %2386 = vmatmul.bf16.gmra.mxu3 %v3959_v2  ;;  %v2092_v3 = vadd.f32 %v6357_v39, %v6356_v18 }
 0x386   :  { %v2826_v9 = vadd.f32 %v6352_v32, %v2437_v41  ;;  %2475 = vmatmul.bf16.gmra.mxu1 %v3835_v17  ;;  %v6360_v17 = vld [vmem:[#allocation66_spill] sm:$0xff] }
 0x387   :  { %v2221_v59 = vadd.f32 %v6359_v7, %v2092_v3 }
 0x388   :  { %v2874_v31 = vmax.f32 %v2826_v9, 0.0  ;;  %v2347_v24 = vpop.f32.mrf.mxu3 }
 0x389   :  { %v6002_v10 = vadd.f32 %v2347_v24, %v6354_v43  ;;  %v6362_v24 = vld [vmem:[#allocation22_spill] sm:$0xff]  ;;  %v6363_v43 = vld [vmem:[#allocation67_spill] sm:$0xff] }
 0x38a   :  { %v3210_v47 = vmul.f32 %v3021_v1, %v2874_v31  ;;  %v6361_v31 = vld [vmem:[#allocation9_spill] sm:$0xff] }
 0x38b   :  { %v2438_v8 = vpop.f32.mrf.mxu1  ;;  %v2097_v1 = vadd.f32 %v6362_v24, %v6361_v31 }
 0x38c   :  { %v3257_v23 = vadd.f32 %v3256_v49, %v3210_v47  ;;  %v2439_v56 = vadd.f32 %v2438_v8, %v2310_v61  ;;  %v3031_v49 = vpop.permute.xlu0 %3030  ;;  %v4130_v47 = vld [vmem:[%s6211_s3 + $0x2ec] sm:$0xf] }
 0x38d   :  { %v4102_v61 = vld [vmem:[%s6211_s3 + $0x20c] sm:$0xf]  ;;  %v3979_v39 = vor.u32 %v4130_v47, %v3976_v44 }
 0x38e   :  { %v2827_v52 = vadd.f32 %v6358_v38, %v2439_v56  ;;  %v3036_v56 = vpop.permute.xlu1 %3035 }
 0x390   :  { %v2875_v29 = vmax.f32 %v2827_v52, 0.0  ;;  %v2349_v20 = vpop.f32.mrf.mxu3 }
 0x391   :  { %v6021_v12 = vadd.f32 %v2349_v20, %v2221_v59 }
 0x392   :  { %v3211_v45 = vmul.f32 %v3026_v22, %v2875_v29 }
 0x393   :  { %v2441_v2 = vpop.f32.mrf.mxu1 }
 0x394   :  { %v3258_v4 = vadd.f32 %v3257_v23, %v3211_v45  ;;  %v2442_v60 = vadd.f32 %v2441_v2, %v5780_v15  ;;  %v6366_v2 = vld [vmem:[#allocation25_spill] sm:$0xff] }
 0x395   :  { %2391 = vmatmul.bf16.gmra.mxu3 %v3975_v11 }
 0x396   :  { %v2828_v42 = vadd.f32 %v6360_v17, %v2442_v60  ;;  %2480 = vmatmul.bf16.gmra.mxu1 %v3851_v55  ;;  %v6365_v55 = vld [vmem:[#allocation10_spill] sm:$0xff]  ;;  %v6367_v60 = vld [vmem:[#allocation69_spill] sm:$0xff] }
 0x398   :  { %v2876_v34 = vmax.f32 %v2828_v42, 0.0  ;;  %v2352_v13 = vpop.f32.mrf.mxu3  ;;  %v4106_v42 = vld [vmem:[%s6211_s3 + $0x22c] sm:$0xf] }
 0x399   :  { %v6026_v41 = vadd.f32 %v2352_v13, %v5777_v26  ;;  %v2226_v26 = vadd.f32 %v5805_v48, %v2097_v1 }
 0x39a   :  { %v3212_v32 = vmul.f32 %v3031_v49, %v2876_v34  ;;  %v3046_v49 = vpop.permute.xlu0 %3045 }
 0x39b   :  { %v2443_v9 = vpop.f32.mrf.mxu1 }
 0x39c   :  { %v3259_v53 = vadd.f32 %v3258_v4, %v3212_v32  ;;  %v2444_v19 = vadd.f32 %v2443_v9, %v5807_v28  ;;  %v3864_v28 = vld [vmem:[%s6211_s3 + $0x218] sm:$0xf0]  ;;  %v2102_v4 = vadd.f32 %v6366_v2, %v6365_v55  ;;  %v6088_v2 = vpop.f32.mrf.mxu2 }
 0x39d   :  { %v3867_v38 = vor.u32 %v4102_v61, %v3864_v28 }
 0x39e   :  { %v2829_v15 = vadd.f32 %v6363_v43, %v2444_v19  ;;  %v2231_v17 = vadd.f32 %v5843_v37, %v2102_v4  ;;  %v6368_v37 = vld [vmem:[#allocation70_spill] sm:$0xff] }
 0x3a0   :  { %v2877_v8 = vmax.f32 %v2829_v15, 0.0  ;;  %v2354_v23 = vpop.f32.mrf.mxu3  ;;  %v3051_v15 = vpop.permute.xlu1 %3050 }
 0x3a1   :  { %v6045_v18 = vadd.f32 %v2354_v23, %v2226_v26  ;;  %v6370_v23 = vld [vmem:[#allocation28_spill] sm:$0xff] }
 0x3a2   :  { %v3213_v3 = vmul.f32 %v3036_v56, %v2877_v8  ;;  %v6369_v8 = vld [vmem:[#allocation13_spill] sm:$0xff] }
 0x3a3   :  { %v2446_v52 = vpop.f32.mrf.mxu1  ;;  %v2107_v56 = vadd.f32 %v6370_v23, %v6369_v8 }
 0x3a4   :  { %v3260_v35 = vadd.f32 %v3259_v53, %v3213_v3  ;;  %v2447_v48 = vadd.f32 %v2446_v52, %v5821_v50 }
 0x3a5   :  { %2520 = vmatmul.bf16.vlgmr.msrb.gmra.mxu3 %v3979_v39  ;;  %v6371_v39 = vld [vmem:[#allocation68_spill] sm:$0xff] }
 0x3a6   :  { %v2830_v7 = vadd.f32 %v6364_v63, %v2447_v48  ;;  %2485 = vmatmul.bf16.gmra.mxu1 %v3867_v38  ;;  %v4110_v38 = vld [vmem:[%s6211_s3 + $0x24c] sm:$0xf]  ;;  %v3056_v48 = vpop.permute.xlu2 %3055 }
 0x3a8   :  { %v2878_v59 = vmax.f32 %v2830_v7, 0.0  ;;  %v2357_v36 = vpop.f32.mrf.mxu3 }
 0x3a9   :  { %v6050_v29 = vadd.f32 %v2357_v36, %v5818_v54  ;;  %v3880_v54 = vld [vmem:[%s6211_s3 + $0x238] sm:$0xf0] }
 0x3aa   :  { %v3214_v20 = vmul.f32 %v3041_v46, %v2878_v59  ;;  %v3883_v9 = vor.u32 %v4106_v42, %v3880_v54  ;;  %v6373_v42 = vld [vmem:[#allocation73_spill] sm:$0xff] }
 0x3ab   :  { %v2448_v22 = vpop.f32.mrf.mxu1 }
 0x3ac   :  { %v3261_v11 = vadd.f32 %v3260_v35, %v3214_v20  ;;  %v2449_v45 = vadd.f32 %v2448_v22, %v5845_v40 }
 0x3ae   :  { %v2831_v50 = vadd.f32 %v6367_v60, %v2449_v45  ;;  %v3061_v45 = vpop.permute.xlu0 %3060 }
 0x3b0   :  { %v2879_v34 = vmax.f32 %v2831_v50, 0.0  ;;  %v2359_v13 = vpop.f32.mrf.mxu3 }
 0x3b1   :  { %v6063_v32 = vadd.f32 %v2359_v13, %v2231_v17 }
 0x3b2   :  { %v3215_v40 = vmul.f32 %v3046_v49, %v2879_v34  ;;  %v3912_v34 = vld [vmem:[%s6211_s3 + $0x278] sm:$0xf0]  ;;  %v3066_v49 = vpop.permute.xlu1 %3065 }
 0x3b3   :  { %v2451_v53 = vpop.f32.mrf.mxu1 }
 0x3b4   :  { %v3262_v19 = vadd.f32 %v3261_v11, %v3215_v40  ;;  %v2452_v31 = vadd.f32 %v2451_v53, %v5856_v57  ;;  %v2236_v57 = vadd.f32 %v5877_v51, %v2107_v56  ;;  %v6372_v51 = vld [vmem:[#allocation72_spill] sm:$0xff] }
 0x3b6   :  { %v2832_v24 = vadd.f32 %v6368_v37, %v2452_v31  ;;  %2490 = vmatmul.bf16.gmra.mxu1 %v3883_v9  ;;  %v6374_v37 = vld [vmem:[#allocation18_spill] sm:$0xff] }
 0x3b8   :  { %v2880_v1 = vmax.f32 %v2832_v24, 0.0  ;;  %v2362_v43 = vpop.f32.mrf.mxu3  ;;  %v6375_v24 = vld [vmem:[#allocation34_spill] sm:$0xff] }
 0x3b9   :  { %v6068_v47 = vadd.f32 %v2362_v43, %v5853_v33  ;;  %v3896_v33 = vld [vmem:[%s6211_s3 + $0x258] sm:$0xf0]  ;;  %v6376_v43 = vld [vmem:[#allocation71_spill] sm:$0xff] }
 0x3ba   :  { %v3216_v44 = vmul.f32 %v3051_v15, %v2880_v1  ;;  %v3899_v7 = vor.u32 %v4110_v38, %v3896_v33  ;;  %v2115_v1 = vadd.f32 %v6375_v24, %v6374_v37  ;;  %v3928_v33 = vld [vmem:[%s6211_s3 + $0x298] sm:$0xf0] }
 0x3bb   :  { %v2453_v26 = vpop.f32.mrf.mxu1 }
 0x3bc   :  { %v3263_v61 = vadd.f32 %v3262_v19, %v3216_v44  ;;  %v2454_v28 = vadd.f32 %v2453_v26, %v5879_v6  ;;  %v2243_v19 = vpop.f32.mrf.mxu2 }
 0x3bd   :  { %v2244_v44 = vadd.f32 %v2243_v19, %v2115_v1  ;;  %v6381_v1 = vld [vmem:[#allocation80_spill] sm:$0xff] }
 0x3be   :  { %v2833_v3 = vadd.f32 %v6371_v39, %v2454_v28  ;;  %v3071_v28 = vpop.permute.xlu2 %3070 }
 0x3c0   :  { %v2881_v52 = vmax.f32 %v2833_v3, 0.0  ;;  %v2364_v35 = vpop.f32.mrf.mxu3 }
 0x3c1   :  { %v6081_v63 = vadd.f32 %v2364_v35, %v2236_v57  ;;  %v6377_v57 = vld [vmem:[#allocation75_spill] sm:$0xff]  ;;  %v3076_v35 = vpop.permute.xlu0 %3075 }
 0x3c2   :  { %v3217_v6 = vmul.f32 %v3056_v48, %v2881_v52 }
 0x3c3   :  { %v2456_v59 = vpop.f32.mrf.mxu1 }
 0x3c4   :  { %v3264_v36 = vadd.f32 %v3263_v61, %v3217_v6  ;;  %v2457_v46 = vadd.f32 %v2456_v59, %v5890_v62  ;;  %v4114_v62 = vld [vmem:[%s6211_s3 + $0x26c] sm:$0xf] }
 0x3c5   :  { %v3915_v9 = vor.u32 %v4114_v62, %v3912_v34 }
 0x3c6   :  { %v2834_v20 = vadd.f32 %v6372_v51, %v2457_v46  ;;  %2495 = vmatmul.bf16.gmra.mxu1 %v3899_v7  ;;  %v6378_v46 = vld [vmem:[#allocation76_spill] sm:$0xff] }
 0x3c8   :  { %v2882_v22 = vmax.f32 %v2834_v20, 0.0  ;;  %v2367_v11 = vpop.f32.mrf.mxu3  ;;  %v3081_v20 = vpop.permute.xlu1 %3080 }
 0x3c9   :  { %v6086_v55 = vadd.f32 %v2367_v11, %v5887_v21  ;;  %v3091_v19 = vpop.permute.xlu0 %3090 }
 0x3ca   :  { %v3218_v4 = vmul.f32 %v3061_v45, %v2882_v22 }
 0x3cb   :  { %v2458_v60 = vpop.f32.mrf.mxu1 }
 0x3cc   :  { %v3265_v50 = vadd.f32 %v3264_v36, %v3218_v4  ;;  %v2459_v17 = vadd.f32 %v2458_v60, %v5911_v58  ;;  %v6379_v60 = vld [vmem:[#allocation74_spill] sm:$0xff] }
 0x3ce   :  { %v2835_v54 = vadd.f32 %v6373_v42, %v2459_v17  ;;  %v4122_v17 = vld [vmem:[%s6211_s3 + $0x2ac] sm:$0xf] }
 0x3d0   :  { %v2883_v13 = vmax.f32 %v2835_v54, 0.0  ;;  %v6098_v21 = vpop.f32.mrf.mxu3  ;;  %v3086_v54 = vpop.permute.xlu2 %3085 }
 0x3d2   :  { %v3219_v40 = vmul.f32 %v3066_v49, %v2883_v13 }
 0x3d3   :  { %v2461_v53 = vpop.f32.mrf.mxu1 }
 0x3d4   :  { %v3266_v31 = vadd.f32 %v3265_v50, %v3219_v40  ;;  %v2462_v58 = vadd.f32 %v2461_v53, %v5918_v30  ;;  %v4118_v30 = vld [vmem:[%s6211_s3 + $0x28c] sm:$0xf] }
 0x3d5   :  { %v3931_v6 = vor.u32 %v4118_v30, %v3928_v33 }
 0x3d6   :  { %v2836_v15 = vadd.f32 %v6376_v43, %v2462_v58  ;;  %2500 = vmatmul.bf16.gmra.mxu1 %v3915_v9  ;;  %v6380_v9 = vld [vmem:[#allocation78_spill] sm:$0xff] }
 0x3d8   :  { %v2884_v26 = vmax.f32 %v2836_v15, 0.0  ;;  %v2372_v61 = vpop.f32.mrf.mxu3  ;;  %v4126_v15 = vld [vmem:[%s6211_s3 + $0x2cc] sm:$0xf] }
 0x3d9   :  { %v6104_v8 = vadd.f32 %v2372_v61, %v2244_v44 }
 0x3da   :  { %v3220_v23 = vmul.f32 %v3071_v28, %v2884_v26  ;;  %v3096_v26 = vpop.permute.xlu1 %3095 }
 0x3db   :  { %v2463_v56 = vpop.f32.mrf.mxu1 }
 0x3dc   :  { %v3267_v39 = vadd.f32 %v3266_v31, %v3220_v23  ;;  %v2464_v3 = vadd.f32 %v2463_v56, %v5939_v0 }
 0x3de   :  { %v2837_v38 = vadd.f32 %v6377_v57, %v2464_v3  ;;  %v6382_v3 = vld [vmem:[#allocation77_spill] sm:$0xff] }
 0x3e0   :  { %v2885_v52 = vmax.f32 %v2837_v38, 0.0  ;;  %v3101_v38 = vpop.permute.xlu2 %3100 }
 0x3e2   :  { %v3221_v48 = vmul.f32 %v3076_v35, %v2885_v52 }
 0x3e3   :  { %v2466_v7 = vpop.f32.mrf.mxu1 }
 0x3e4   :  { %v3268_v59 = vadd.f32 %v3267_v39, %v3221_v48  ;;  %v2467_v36 = vadd.f32 %v2466_v7, %v5946_v25  ;;  %v3944_v25 = vld [vmem:[%s6211_s3 + $0x2b8] sm:$0xf0]  ;;  %v6383_v48 = vld [vmem:[#allocation85_spill] sm:$0xff] }
 0x3e5   :  { %v3947_v34 = vor.u32 %v4122_v17, %v3944_v25  ;;  %v6385_v17 = vld [vmem:[#allocation84_spill] sm:$0xff] }
 0x3e6   :  { %v2838_v0 = vadd.f32 %v6378_v46, %v2467_v36  ;;  %2505 = vmatmul.bf16.gmra.mxu1 %v3931_v6 }
 0x3e8   :  { %v2886_v51 = vmax.f32 %v2838_v0, 0.0 }
 0x3ea   :  { %v3222_v22 = vmul.f32 %v3081_v20, %v2886_v51 }
 0x3eb   :  { %v2468_v11 = vpop.f32.mrf.mxu1 }
 0x3ec   :  { %v3269_v45 = vadd.f32 %v3268_v59, %v3222_v22  ;;  %v2469_v4 = vadd.f32 %v2468_v11, %v5967_v5  ;;  %v3106_v59 = vpop.permute.xlu0 %3105  ;;  %v3111_v11 = vpop.permute.xlu1 %3110 }
 0x3ee   :  { %v2839_v50 = vadd.f32 %v6379_v60, %v2469_v4 }
 0x3f0   :  { %v2887_v42 = vmax.f32 %v2839_v50, 0.0 }
 0x3f2   :  { %v3223_v62 = vmul.f32 %v3086_v54, %v2887_v42  ;;  %v3116_v42 = vpop.permute.xlu2 %3115 }
 0x3f3   :  { %v2471_v13 = vpop.f32.mrf.mxu1 }
 0x3f4   :  { %v3270_v49 = vadd.f32 %v3269_v45, %v3223_v62  ;;  %v2472_v40 = vadd.f32 %v2471_v13, %v5974_v16  ;;  %v3960_v16 = vld [vmem:[%s6211_s3 + $0x2d8] sm:$0xf0]  ;;  %v6142_v62 = vpop.f32.mrf.mxu3 }
 0x3f5   :  { %v3963_v28 = vor.u32 %v4126_v15, %v3960_v16  ;;  %v2245_v16 = vpop.f32.mrf.mxu2 }
 0x3f6   :  { %v2840_v5 = vadd.f32 %v6380_v9, %v2472_v40  ;;  %2510 = vmatmul.bf16.gmra.mxu1 %v3947_v34 }
 0x3f8   :  { %v2888_v53 = vmax.f32 %v2840_v5, 0.0  ;;  %v3121_v5 = vpop.permute.xlu0 %3120 }
 0x3fa   :  { %v3224_v31 = vmul.f32 %v3091_v19, %v2888_v53 }
 0x3fb   :  { %v2473_v58 = vpop.f32.mrf.mxu1 }
 0x3fc   :  { %v3271_v37 = vadd.f32 %v3270_v49, %v3224_v31  ;;  %v2474_v24 = vadd.f32 %v2473_v58, %v5995_v27  ;;  %v6386_v49 = vld [vmem:[#allocation88_spill] sm:$0xff]  ;;  %v2377_v58 = vpop.f32.mrf.mxu3 }
 0x3fe   :  { %v2841_v43 = vadd.f32 %v6381_v1, %v2474_v24 }
 0x400   :  { %v2889_v44 = vmax.f32 %v2841_v43, 0.0  ;;  %v3126_v43 = vpop.permute.xlu1 %3125 }
 0x402   :  { %v3225_v61 = vmul.f32 %v3096_v26, %v2889_v44 }
 0x403   :  { %v2476_v23 = vpop.f32.mrf.mxu1 }
 0x404   :  { %v3272_v56 = vadd.f32 %v3271_v37, %v3225_v61  ;;  %v2477_v39 = vadd.f32 %v2476_v23, %v6002_v10  ;;  %v6384_v10 = vld [vmem:[#allocation86_spill] sm:$0xff]  ;;  %v6387_v37 = vld [vmem:[#allocation89_spill] sm:$0xff]  ;;  %v6388_v61 = vld [vmem:[#allocation87_spill] sm:$0xff]  ;;  %v6150_v23 = vpop.f32.mrf.mxu3 }
 0x406   :  { %v2842_v27 = vadd.f32 %v6382_v3, %v2477_v39  ;;  %2515 = vmatmul.bf16.gmra.mxu1 %v3963_v28  ;;  %v3131_v39 = vpop.permute.xlu2 %3130 }
 0x408   :  { %v2890_v57 = vmax.f32 %v2842_v27, 0.0 }
 0x40a   :  { %v3226_v30 = vmul.f32 %v3101_v38, %v2890_v57  ;;  %v2248_v38 = vpop.f32.mrf.mxu2 }
 0x40b   :  { %v2478_v33 = vpop.f32.mrf.mxu1 }
 0x40c   :  { %v3273_v52 = vadd.f32 %v3272_v56, %v3226_v30  ;;  %v2479_v35 = vadd.f32 %v2478_v33, %v6021_v12  ;;  %v6389_v30 = vld [vmem:[#allocation92_spill] sm:$0xff] }
 0x40e   :  { %v2843_v6 = vadd.f32 %v6383_v48, %v2479_v35  ;;  %v3136_v35 = vpop.permute.xlu0 %3135  ;;  %v6154_v48 = vpop.f32.mrf.mxu3 }
 0x410   :  { %v2891_v7 = vmax.f32 %v2843_v6, 0.0 }
 0x412   :  { %v3227_v36 = vmul.f32 %v3106_v59, %v2891_v7 }
 0x413   :  { %v2481_v46 = vpop.f32.mrf.mxu1 }
 0x414   :  { %v3274_v0 = vadd.f32 %v3273_v52, %v3227_v36  ;;  %v2482_v51 = vadd.f32 %v2481_v46, %v6026_v41  ;;  %v6390_v36 = vld [vmem:[#allocation17_spill] sm:$0xff]  ;;  %v6391_v46 = vld [vmem:[#allocation32_spill] sm:$0xff] }
 0x416   :  { %v2844_v20 = vadd.f32 %v6384_v10, %v2482_v51  ;;  %v6392_v51 = vld [vmem:[#allocation93_spill] sm:$0xff] }
 0x418   :  { %v2892_v22 = vmax.f32 %v2844_v20, 0.0  ;;  %v2250_v20 = vpop.f32.mrf.mxu2 }
 0x41a   :  { %v3228_v45 = vmul.f32 %v3111_v11, %v2892_v22  ;;  %v3141_v11 = vpop.permute.xlu1 %3140 }
 0x41b   :  { %v2483_v4 = vpop.f32.mrf.mxu1 }
 0x41c   :  { %v3275_v60 = vadd.f32 %v3274_v0, %v3228_v45  ;;  %v2484_v50 = vadd.f32 %v2483_v4, %v6045_v18  ;;  %v2112_v0 = vadd.f32 %v6391_v46, %v6390_v36 }
 0x41e   :  { %v2845_v12 = vadd.f32 %v6385_v17, %v2484_v50 }
 0x420   :  { %v2893_v25 = vmax.f32 %v2845_v12, 0.0 }
 0x422   :  { %v3229_v54 = vmul.f32 %v3116_v42, %v2893_v25  ;;  %v6393_v25 = vld [vmem:[#allocation91_spill] sm:$0xff] }
 0x423   :  { %v2486_v34 = vpop.f32.mrf.mxu1 }
 0x424   :  { %v3276_v13 = vadd.f32 %v3275_v60, %v3229_v54  ;;  %v2487_v41 = vadd.f32 %v2486_v34, %v6050_v29  ;;  %v6162_v60 = vpop.f32.mrf.mxu3  ;;  %v3146_v54 = vpop.permute.xlu2 %3145 }
 0x425   :  { %v2253_v34 = vpop.f32.mrf.mxu2 }
 0x426   :  { %v2846_v40 = vadd.f32 %v6386_v49, %v2487_v41 }
 0x428   :  { %v2894_v9 = vmax.f32 %v2846_v40, 0.0 }
 0x42a   :  { %v3230_v53 = vmul.f32 %v3121_v5, %v2894_v9  ;;  %v6394_v9 = vld [vmem:[#allocation20_spill] sm:$0xff] }
 0x42b   :  { %v2488_v19 = vpop.f32.mrf.mxu1 }
 0x42c   :  { %v3277_v31 = vadd.f32 %v3276_v13, %v3230_v53  ;;  %v2489_v18 = vadd.f32 %v2488_v19, %v6063_v32  ;;  %v6166_v40 = vpop.f32.mrf.mxu3 }
 0x42e   :  { %v2847_v24 = vadd.f32 %v6387_v37, %v2489_v18  ;;  %v3151_v18 = vpop.permute.xlu0 %3150 }
 0x430   :  { %v2895_v1 = vmax.f32 %v2847_v24, 0.0 }
 0x432   :  { %v3231_v15 = vmul.f32 %v3126_v43, %v2895_v1  ;;  %v2255_v1 = vpop.f32.mrf.mxu2 }
 0x433   :  { %v2491_v44 = vpop.f32.mrf.mxu1 }
 0x434   :  { %v3278_v26 = vadd.f32 %v3277_v31, %v3231_v15  ;;  %v2492_v29 = vadd.f32 %v2491_v44, %v6068_v47 }
 0x436   :  { %v2848_v28 = vadd.f32 %v6388_v61, %v2492_v29  ;;  %v6397_v29 = vld [vmem:[#allocation41_spill] sm:$0xff]  ;;  %v6398_v61 = vld [vmem:[#allocation98_spill] sm:$0xff] }
 0x438   :  { %v2896_v56 = vmax.f32 %v2848_v28, 0.0 }
 0x43a   :  { %v3232_v3 = vmul.f32 %v3131_v39, %v2896_v56  ;;  %v6175_v56 = vpop.f32.mrf.mxu3 }
 0x43b   :  { %v2493_v27 = vpop.f32.mrf.mxu1 }
 0x43c   :  { %v3279_v32 = vadd.f32 %v3278_v26, %v3232_v3  ;;  %v2494_v57 = vadd.f32 %v2493_v27, %v6081_v63  ;;  %v2241_v63 = vadd.f32 %v6088_v2, %v2112_v0  ;;  %v6396_v26 = vld [vmem:[#allocation21_spill] sm:$0xff] }
 0x43e   :  { %v2849_v33 = vadd.f32 %v6389_v30, %v2494_v57  ;;  %v2370_v45 = vadd.f32 %v6098_v21, %v2241_v63  ;;  %v6395_v21 = vld [vmem:[#allocation38_spill] sm:$0xff]  ;;  %v2258_v57 = vpop.f32.mrf.mxu2  ;;  %v6400_v30 = vld [vmem:[#allocation44_spill] sm:$0xff] }
 0x43f   :  { %v2117_v5 = vadd.f32 %v6395_v21, %v6394_v9  ;;  %v6402_v63 = vld [vmem:[#allocation24_spill] sm:$0xff] }
 0x440   :  { %v2897_v52 = vmax.f32 %v2849_v33, 0.0 }
 0x441   :  { %v2246_v19 = vadd.f32 %v2245_v16, %v2117_v5 }
 0x442   :  { %v3233_v6 = vmul.f32 %v3136_v35, %v2897_v52  ;;  %v6401_v35 = vld [vmem:[#allocation95_spill] sm:$0xff]  ;;  %v2392_v36 = vpop.f32.mrf.mxu3 }
 0x443   :  { %v2496_v47 = vpop.f32.mrf.mxu1  ;;  %v2375_v37 = vadd.f32 %v6142_v62, %v2246_v19  ;;  %v6399_v62 = vld [vmem:[#allocation23_spill] sm:$0xff] }
 0x444   :  { %v3280_v7 = vadd.f32 %v3279_v32, %v3233_v6  ;;  %v2497_v59 = vadd.f32 %v2496_v47, %v6086_v55  ;;  %v3156_v32 = vpop.permute.xlu1 %3155  ;;  %v2122_v33 = vadd.f32 %v6400_v30, %v6399_v62  ;;  %v6413_v62 = vld [vmem:[#allocation16_spill] sm:$0xff]  ;;  %v6414_v30 = vld [vmem:[#allocation58_spill] sm:$0xff] }
 0x446   :  { %v2850_v10 = vadd.f32 %v6392_v51, %v2497_v59  ;;  %v2251_v47 = vadd.f32 %v2250_v20, %v2122_v33  ;;  %v3161_v59 = vpop.permute.xlu2 %3160  ;;  %v2137_v33 = vadd.f32 %v6414_v30, %v6413_v62 }
 0x448   :  { %v2898_v22 = vmax.f32 %v2850_v10, 0.0  ;;  %v2380_v46 = vadd.f32 %v6150_v23, %v2251_v47  ;;  %v6405_v23 = vld [vmem:[#allocation26_spill] sm:$0xff]  ;;  %v6415_v47 = vld [vmem:[#allocation12_spill] sm:$0xff] }
 0x44a   :  { %v3234_v4 = vmul.f32 %v3141_v11, %v2898_v22  ;;  %v6403_v22 = vld [vmem:[#allocation47_spill] sm:$0xff] }
 0x44b   :  { %v2498_v50 = vpop.f32.mrf.mxu1  ;;  %v2125_v11 = vadd.f32 %v6403_v22, %v6402_v63 }
 0x44c   :  { %v3281_v17 = vadd.f32 %v3280_v7, %v3234_v4  ;;  %v2499_v12 = vadd.f32 %v2498_v50, %v2370_v45  ;;  %v6404_v45 = vld [vmem:[#allocation100_spill] sm:$0xff]  ;;  %v2260_v50 = vpop.f32.mrf.mxu2 }
 0x44e   :  { %v2851_v55 = vadd.f32 %v6393_v25, %v2499_v12  ;;  %v2394_v25 = vpop.f32.mrf.mxu3 }
 0x450   :  { %v2899_v42 = vmax.f32 %v2851_v55, 0.0 }
 0x452   :  { %v3235_v13 = vmul.f32 %v3146_v54, %v2899_v42  ;;  %v3166_v54 = vpop.permute.xlu0 %3165 }
 0x453   :  { %v2501_v41 = vpop.f32.mrf.mxu1 }
 0x454   :  { %v3282_v49 = vadd.f32 %v3281_v17, %v3235_v13  ;;  %v2502_v2 = vadd.f32 %v2501_v41, %v6104_v8  ;;  %v2120_v8 = vadd.f32 %v6397_v29, %v6396_v26  ;;  %v2254_v17 = vadd.f32 %v2253_v34, %v2125_v11  ;;  %v6406_v13 = vld [vmem:[#allocation51_spill] sm:$0xff]  ;;  %v2263_v19 = vpop.f32.mrf.mxu2 }
 0x455   :  { %v2127_v41 = vadd.f32 %v6406_v13, %v6405_v23  ;;  %v6410_v29 = vld [vmem:[#allocation99_spill] sm:$0xff] }
 0x456   :  { %v2852_v53 = vadd.f32 %v5771_v14, %v2502_v2  ;;  %v2249_v39 = vadd.f32 %v2248_v38, %v2120_v8  ;;  %v2383_v12 = vadd.f32 %v6154_v48, %v2254_v17  ;;  %v6407_v2 = vld [vmem:[#allocation101_spill] sm:$0xff] }
 0x457   :  { %v2256_v21 = vadd.f32 %v2255_v1, %v2127_v41  ;;  %v6411_v1 = vld [vmem:[#allocation14_spill] sm:$0xff] }
 0x458   :  { %v2900_v31 = vmax.f32 %v2852_v53, 0.0  ;;  %v2378_v3 = vadd.f32 %v2377_v58, %v2249_v39  ;;  %v3171_v53 = vpop.permute.xlu1 %3170  ;;  %v3176_v39 = vpop.permute.xlu2 %3175 }
 0x45a   :  { %v3236_v24 = vmul.f32 %v3151_v18, %v2900_v31  ;;  %v2385_v31 = vadd.f32 %v6162_v60, %v2256_v21  ;;  %v3181_v22 = vpop.permute.xlu0 %3180 }
 0x45b   :  { %v2503_v43 = vpop.f32.mrf.mxu1 }
 0x45c   :  { %v3283_v15 = vadd.f32 %v3282_v49, %v3236_v24  ;;  %v2504_v44 = vadd.f32 %v2503_v43, %v2375_v37  ;;  %v2521_v43 = vpop.f32.mrf.mxu3 }
 0x45e   :  { %v2853_v28 = vadd.f32 %v6398_v61, %v2504_v44  ;;  %v6409_v44 = vld [vmem:[#allocation53_spill] sm:$0xff] }
 0x460   :  { %v2901_v14 = vmax.f32 %v2853_v28, 0.0 }
 0x462   :  { %v3237_v52 = vmul.f32 %v3156_v32, %v2901_v14 }
 0x463   :  { %v2506_v16 = vpop.f32.mrf.mxu1 }
 0x464   :  { %v2507_v27 = vadd.f32 %v2506_v16, %v2378_v3  ;;  %v3284_v0 = vadd.f32 %v3283_v15, %v3237_v52  ;;  %v6408_v15 = vld [vmem:[#allocation11_spill] sm:$0xff]  ;;  %v6412_v3 = vld [vmem:[#allocation57_spill] sm:$0xff] }
 0x465   :  { %v2130_v26 = vadd.f32 %v6409_v44, %v6408_v15  ;;  %v2135_v14 = vadd.f32 %v6412_v3, %v6411_v1 }
 0x466   :  { %v2854_v6 = vadd.f32 %v6401_v35, %v2507_v27  ;;  %v2265_v27 = vpop.f32.mrf.mxu2 }
 0x467   :  { %v2259_v61 = vadd.f32 %v2258_v57, %v2130_v26  ;;  %v2264_v52 = vadd.f32 %v2263_v19, %v2135_v14  ;;  %v2266_v57 = vadd.f32 %v2265_v27, %v2137_v33 }
 0x468   :  { %v2902_v7 = vmax.f32 %v2854_v6, 0.0 }
 0x469   :  { %v2388_v16 = vadd.f32 %v6166_v40, %v2259_v61 }
 0x46a   :  { %v3238_v38 = vmul.f32 %v3161_v59, %v2902_v7  ;;  %v6416_v7 = vld [vmem:[#allocation55_spill] sm:$0xff] }
 0x46b   :  { %v2508_v58 = vpop.f32.mrf.mxu1  ;;  %v2132_v59 = vadd.f32 %v6416_v7, %v6415_v47 }
 0x46c   :  { %v3285_v51 = vadd.f32 %v3284_v0, %v3238_v38  ;;  %v2509_v10 = vadd.f32 %v2508_v58, %v2380_v46  ;;  %v2393_v46 = vadd.f32 %v2392_v36, %v2264_v52  ;;  %v6417_v0 = vld [vmem:[#allocation103_spill] sm:$0xff]  ;;  %v2523_v58 = vpop.f32.mrf.mxu3  ;;  %v6420_v36 = vld [vmem:[#allocation104_spill] sm:$0xff] }
 0x46e   :  { %v2855_v4 = vadd.f32 %v6404_v45, %v2509_v10  ;;  %v2395_v10 = vadd.f32 %v2394_v25, %v2266_v57  ;;  %v2522_v40 = vadd.f32 %v2521_v43, %v2393_v46 }
 0x470   :  { %v2903_v20 = vmax.f32 %v2855_v4, 0.0  ;;  %v2524_v45 = vadd.f32 %v2523_v58, %v2395_v10 }
 0x472   :  { %v3239_v49 = vmul.f32 %v3166_v54, %v2903_v20  ;;  %v6419_v54 = vld [vmem:[#allocation105_spill] sm:$0xff] }
 0x473   :  { %v2511_v55 = vpop.f32.mrf.mxu1  ;;  %v2861_v23 = vadd.f32 %v6419_v54, %v2524_v45 }
 0x474   :  { %v2512_v42 = vadd.f32 %v2511_v55, %v2383_v12  ;;  %v3286_v34 = vadd.f32 %v3285_v51, %v3239_v49  ;;  %v2261_v51 = vadd.f32 %v2260_v50, %v2132_v59  ;;  %v6418_v12 = vld [vmem:[#allocation102_spill] sm:$0xff]  ;;  %v3186_v50 = vpop.permute.xlu1 %3185 }
 0x475   :  { %v2860_v20 = vadd.f32 %v6418_v12, %v2522_v40  ;;  %v2909_v25 = vmax.f32 %v2861_v23, 0.0 }
 0x476   :  { %v2856_v9 = vadd.f32 %v6407_v2, %v2512_v42  ;;  %v2390_v11 = vadd.f32 %v6175_v56, %v2261_v51  ;;  %v3196_v56 = vpop.permute.xlu0 %3195 }
 0x477   :  { %v2908_v41 = vmax.f32 %v2860_v20, 0.0 }
 0x478   :  { %v2904_v5 = vmax.f32 %v2856_v9, 0.0  ;;  %v3191_v9 = vpop.permute.xlu2 %3190 }
 0x479   :  { %v3244_v21 = vmul.f32 %v3191_v9, %v2908_v41 }
 0x47a   :  { %v3240_v18 = vmul.f32 %v3171_v53, %v2904_v5  ;;  %v3245_v53 = vmul.f32 %v3196_v56, %v2909_v25 }
 0x47b   :  { %v2513_v48 = vpop.f32.mrf.mxu1 }
 0x47c   :  { %v3287_v37 = vadd.f32 %v3286_v34, %v3240_v18  ;;  %v2514_v24 = vadd.f32 %v2513_v48, %v2385_v31 }
 0x47e   :  { %v2857_v8 = vadd.f32 %v6410_v29, %v2514_v24  ;;  %v3303_v24 = vpop.permute.xlu1 %3302 }
 0x47f   :  { %v3305_v15 = vperm.slane %v3303_v24, 0 }
 0x480   :  { %v2905_v28 = vmax.f32 %v2857_v8, 0.0 }
 0x482   :  { %v3241_v60 = vmul.f32 %v3176_v39, %v2905_v28 }
 0x483   :  { %v2516_v32 = vpop.f32.mrf.mxu1 }
 0x484   :  { %v3288_v35 = vadd.f32 %v3287_v37, %v3241_v60  ;;  %v2517_v6 = vadd.f32 %v2516_v32, %v2388_v16 }
 0x486   :  { %v2858_v38 = vadd.f32 %v6417_v0, %v2517_v6 }
 0x488   :  { %v2906_v63 = vmax.f32 %v2858_v38, 0.0 }
 0x48a   :  { %v3242_v4 = vmul.f32 %v3181_v22, %v2906_v63 }
 0x48b   :  { %v2518_v17 = vpop.f32.mrf.mxu1 }
 0x48c   :  { %v3289_v55 = vadd.f32 %v3288_v35, %v3242_v4  ;;  %v2519_v42 = vadd.f32 %v2518_v17, %v2390_v11 }
 0x48e   :  { %v2859_v13 = vadd.f32 %v6420_v36, %v2519_v42 }
 0x490   :  { %v2907_v49 = vmax.f32 %v2859_v13, 0.0 }
 0x492   :  { %v3243_v2 = vmul.f32 %v3186_v50, %v2907_v49 }
 0x494   :  { %v3290_v5 = vadd.f32 %v3289_v55, %v3243_v2 }
 0x496   :  { %v3291_v19 = vadd.f32 %v3290_v5, %v3244_v21 }
 0x498   :  { %v3292_v31 = vadd.f32 %v3291_v19, %v3245_v53 }
 0x49a   :  { %v3293_v34 = vrot.slane %v3292_v31, 4 }
 0x49c   :  { %v3294_v18 = vadd.f32 %v3293_v34, %v3292_v31 }
 0x49e   :  { %v3295_v48 = vrot.slane %v3294_v18, 2 }
 0x4a0   :  { %v3296_v37 = vadd.f32 %v3295_v48, %v3294_v18 }
 0x4a2   :  { %v3297_v43 = vrot.slane %v3296_v37, 1 }
 0x4a4   :  { %v3298_v44 = vadd.f32 %v3297_v43, %v3296_v37 }
 0x4a6   :  { %v3306_v26 = vadd.f32 %v3305_v15, %v3298_v44 }
 0x4a8   :  { %3307 = vst [vmem:[%s6214_s7] sm:$0x1] %v3306_v26 }

</bundles_post_ra>
